<compile_context>
chip_gen: v7x
topology: tpu7x:2x2x1
jax: 0.10.0
libtpu: 0.0.40
codegen_flags: <defaults>
</compile_context>

<pallas_src>
import jax
import jax.numpy as jnp
from jax.experimental import pallas as pl
from jax.experimental.pallas import tpu as pltpu

EPS = 1e-5          # PyTorch BatchNorm1d default eps
NEG_SLOPE = 0.25    # LeakyReLU(0.25)


def _bn_leaky_fused(h, gamma, beta, inv_b):
    """Training-mode BatchNorm (biased variance) + LeakyReLU, fused.

    h: [F, B] (batch on lanes); gamma/beta: [F, 1]; inv_b = 1/B (static).
    """
    s = jnp.sum(h, axis=1, keepdims=True)            # [F, 1]
    ss = jnp.sum(h * h, axis=1, keepdims=True)       # [F, 1]
    mean = s * inv_b
    var = jnp.maximum(ss * inv_b - mean * mean, 0.0)  # clamp tiny negatives from cancellation
    scale = gamma * jax.lax.rsqrt(var + EPS)          # [F, 1]
    shift = beta - mean * scale                       # [F, 1]
    hn = h * scale + shift                            # single big elementwise pass
    return jnp.where(hn >= 0, hn, NEG_SLOPE * hn)     # LeakyReLU(0.25)


def disc_kernel(x_ref,
                w1_ref, g1_ref, be1_ref,
                w2_ref, g2_ref, be2_ref,
                w3_ref, b3_ref,
                o_ref):
    B = x_ref.shape[1]
    inv_b = jnp.float32(1.0 / B)

    x = x_ref[...]                                                     # [10, B]

    # Layer 1: Linear(10, 512) (bias cancelled by BN) + fused BN + LeakyReLU.
    h1 = jnp.dot(w1_ref[...], x, preferred_element_type=jnp.float32)  # [512, B]
    h1 = _bn_leaky_fused(h1, g1_ref[...], be1_ref[...], inv_b)

    # Layer 2: Linear(512, 256) (bias cancelled by BN) + fused BN + LeakyReLU.
    h2 = jnp.dot(w2_ref[...], h1, preferred_element_type=jnp.float32)  # [256, B]
    h2 = _bn_leaky_fused(h2, g2_ref[...], be2_ref[...], inv_b)

    # Layer 3: Linear(256, 1) + Sigmoid as VPU multiply + sublane reduce (lane-dense [1, B]).
    h3 = jnp.sum(h2 * w3_ref[...], axis=0, keepdims=True) + b3_ref[...]  # [1, B]
    o_ref[...] = jax.nn.sigmoid(h3).astype(o_ref.dtype)


def discriminator_forward(x, params):
    """x: [B, 10] float32 -> [B, 1] float32 probabilities."""
    B = x.shape[0]
    assert B >= 2, "training-mode BatchNorm needs batch size >= 2 (PyTorch raises otherwise)"
    x_t = x.T  # [10, B] : batch rides the lane axis inside the kernel
    n_in = 1 + len(params)
    vmem = pl.BlockSpec(memory_space=pltpu.MemorySpace.VMEM)
    out = pl.pallas_call(
        disc_kernel,
        out_shape=jax.ShapeDtypeStruct((1, B), jnp.float32),
        in_specs=[vmem] * n_in,
        out_specs=vmem,
    )(x_t, *params)
    return out.reshape(B, 1)


def init_params(key):
    """Deterministic PyTorch-style Kaiming-uniform init.

    Weights stored [out, in] (w3 as an [in, 1] column for the VPU reduction).
    Layer-1/2 Linear biases are intentionally omitted: training-mode BN cancels them.
    """
    f_in = [10, 512, 256]
    f_out = [512, 256, 1]
    ws, bs = [], []
    for fin, fout in zip(f_in, f_out):
        key, kw, kb = jax.random.split(key, 3)
        bound = 1.0 / float(fin) ** 0.5
        ws.append(jax.random.uniform(kw, (fout, fin), jnp.float32, -bound, bound))
        bs.append(jax.random.uniform(kb, (1, fout), jnp.float32, -bound, bound))
    w1, w2, w3 = ws
    w3_col = w3.reshape(256, 1)     # [in, 1]
    b3 = bs[2].reshape(1, 1)
    g1 = jnp.ones((512, 1), jnp.float32)
    be1 = jnp.zeros((512, 1), jnp.float32)
    g2 = jnp.ones((256, 1), jnp.float32)
    be2 = jnp.zeros((256, 1), jnp.float32)
    return (w1, g1, be1, w2, g2, be2, w3_col, b3)


def _reference_forward(x, params):
    """Pure-JAX reference (same math, batch-major layout)."""
    w1, g1, be1, w2, g2, be2, w3_col, b3 = params

    def bn_leaky(h, g, b):
        mean = jnp.mean(h, axis=0, keepdims=True)
        var = jnp.mean((h - mean) ** 2, axis=0, keepdims=True)
        hn = (h - mean) / jnp.sqrt(var + EPS) * g + b
        return jnp.where(hn >= 0, hn, NEG_SLOPE * hn)

    h1 = bn_leaky(x @ w1.T, g1.reshape(1, -1), be1.reshape(1, -1))
    h2 = bn_leaky(h1 @ w2.T, g2.reshape(1, -1), be2.reshape(1, -1))
    h3 = h2 @ w3_col + b3.reshape(1, 1)
    return jax.nn.sigmoid(h3)


if __name__ == "__main__":
    key = jax.random.PRNGKey(0)
    key, kx = jax.random.split(key)
    B = 8
    x = jax.random.normal(kx, (B, 10), jnp.float32)

    params = init_params(key)

    out = jax.block_until_ready(discriminator_forward(x, params))

    assert out.shape == (B, 1), out.shape
    assert bool(jnp.all(jnp.isfinite(out)))
    assert bool(jnp.all((out >= 0.0) & (out <= 1.0)))

    ref = _reference_forward(x, params)
    # Loose tolerance: default-precision MXU dots (bf16 passes) differ slightly between
    # the kernel's feature-major layout and the reference's batch-major layout.
    assert bool(jnp.allclose(out, ref, atol=2e-2, rtol=2e-2)), (out, ref)

    print("KERNEL_OK")
</pallas_src>

<mosaic_0001>
module attributes {stable_mosaic.version = 11 : i64} {
  func.func @disc_kernel(%arg0: memref<10x8xf32, #tpu.memory_space<vmem>>, %arg1: memref<512x10xf32, #tpu.memory_space<vmem>>, %arg2: memref<512x1xf32, #tpu.memory_space<vmem>>, %arg3: memref<512x1xf32, #tpu.memory_space<vmem>>, %arg4: memref<256x512xf32, #tpu.memory_space<vmem>>, %arg5: memref<256x1xf32, #tpu.memory_space<vmem>>, %arg6: memref<256x1xf32, #tpu.memory_space<vmem>>, %arg7: memref<256x1xf32, #tpu.memory_space<vmem>>, %arg8: memref<1x1xf32, #tpu.memory_space<vmem>>, %arg9: memref<1x8xf32, #tpu.memory_space<vmem>>) attributes {dimension_semantics = [], scalar_prefetch = 0 : i64, scratch_operands = 0 : i64, tpu.core_type = #tpu.core_type<tc>} {
    %c0 = arith.constant 0 : index
    %c0_0 = arith.constant 0 : index
    %0 = vector.load %arg0[%c0, %c0_0] : memref<10x8xf32, #tpu.memory_space<vmem>>, vector<10x8xf32>
    %c0_1 = arith.constant 0 : index
    %c0_2 = arith.constant 0 : index
    %1 = vector.load %arg1[%c0_1, %c0_2] : memref<512x10xf32, #tpu.memory_space<vmem>>, vector<512x10xf32>
    %cst = arith.constant dense<0.000000e+00> : vector<512x8xf32>
    %2 = tpu.matmul %1, %0, %cst {dimension_numbers = #tpu.dot_dimension_numbers<[1], [0], [0], [1], [0, 0, 1, 1], [], []>} : vector<512x10xf32>, vector<10x8xf32>, vector<512x8xf32> -> vector<512x8xf32>
    %c0_3 = arith.constant 0 : index
    %c0_4 = arith.constant 0 : index
    %3 = vector.load %arg2[%c0_3, %c0_4] : memref<512x1xf32, #tpu.memory_space<vmem>>, vector<512x1xf32>
    %c0_5 = arith.constant 0 : index
    %c0_6 = arith.constant 0 : index
    %4 = vector.load %arg3[%c0_5, %c0_6] : memref<512x1xf32, #tpu.memory_space<vmem>>, vector<512x1xf32>
    %cst_7 = arith.constant dense<0.000000e+00> : vector<512xf32>
    %5 = vector.multi_reduction <add>, %2, %cst_7 [1] : vector<512x8xf32> to vector<512xf32>
    %6 = vector.shape_cast %5 : vector<512xf32> to vector<512x1xf32>
    %7 = arith.mulf %2, %2 : vector<512x8xf32>
    %cst_8 = arith.constant dense<0.000000e+00> : vector<512xf32>
    %8 = vector.multi_reduction <add>, %7, %cst_8 [1] : vector<512x8xf32> to vector<512xf32>
    %9 = vector.shape_cast %8 : vector<512xf32> to vector<512x1xf32>
    %cst_9 = arith.constant 1.250000e-01 : f32
    %10 = vector.broadcast %cst_9 : f32 to vector<512x1xf32>
    %11 = arith.mulf %6, %10 : vector<512x1xf32>
    %cst_10 = arith.constant 1.250000e-01 : f32
    %12 = vector.broadcast %cst_10 : f32 to vector<512x1xf32>
    %13 = arith.mulf %9, %12 : vector<512x1xf32>
    %14 = arith.mulf %11, %11 : vector<512x1xf32>
    %15 = arith.subf %13, %14 : vector<512x1xf32>
    %cst_11 = arith.constant 0.000000e+00 : f32
    %16 = vector.broadcast %cst_11 : f32 to vector<512x1xf32>
    %17 = arith.maximumf %15, %16 : vector<512x1xf32>
    %cst_12 = arith.constant 9.99999974E-6 : f32
    %18 = vector.broadcast %cst_12 : f32 to vector<512x1xf32>
    %19 = arith.addf %17, %18 : vector<512x1xf32>
    %20 = math.rsqrt %19 : vector<512x1xf32>
    %21 = arith.mulf %3, %20 : vector<512x1xf32>
    %22 = arith.mulf %11, %21 : vector<512x1xf32>
    %23 = arith.subf %4, %22 : vector<512x1xf32>
    %24 = vector.broadcast %21 : vector<512x1xf32> to vector<512x8xf32>
    %25 = arith.mulf %2, %24 : vector<512x8xf32>
    %26 = vector.broadcast %23 : vector<512x1xf32> to vector<512x8xf32>
    %27 = arith.addf %25, %26 : vector<512x8xf32>
    %cst_13 = arith.constant 0.000000e+00 : f32
    %28 = vector.broadcast %cst_13 : f32 to vector<512x8xf32>
    %29 = arith.cmpf oge, %27, %28 : vector<512x8xf32>
    %cst_14 = arith.constant 2.500000e-01 : f32
    %30 = vector.broadcast %cst_14 : f32 to vector<512x8xf32>
    %31 = arith.mulf %30, %27 : vector<512x8xf32>
    %32 = arith.select %29, %27, %31 : vector<512x8xi1>, vector<512x8xf32>
    %c0_15 = arith.constant 0 : index
    %c0_16 = arith.constant 0 : index
    %33 = vector.load %arg4[%c0_15, %c0_16] : memref<256x512xf32, #tpu.memory_space<vmem>>, vector<256x512xf32>
    %cst_17 = arith.constant dense<0.000000e+00> : vector<256x8xf32>
    %34 = tpu.matmul %33, %32, %cst_17 {dimension_numbers = #tpu.dot_dimension_numbers<[1], [0], [0], [1], [0, 0, 1, 1], [], []>} : vector<256x512xf32>, vector<512x8xf32>, vector<256x8xf32> -> vector<256x8xf32>
    %c0_18 = arith.constant 0 : index
    %c0_19 = arith.constant 0 : index
    %35 = vector.load %arg5[%c0_18, %c0_19] : memref<256x1xf32, #tpu.memory_space<vmem>>, vector<256x1xf32>
    %c0_20 = arith.constant 0 : index
    %c0_21 = arith.constant 0 : index
    %36 = vector.load %arg6[%c0_20, %c0_21] : memref<256x1xf32, #tpu.memory_space<vmem>>, vector<256x1xf32>
    %cst_22 = arith.constant dense<0.000000e+00> : vector<256xf32>
    %37 = vector.multi_reduction <add>, %34, %cst_22 [1] : vector<256x8xf32> to vector<256xf32>
    %38 = vector.shape_cast %37 : vector<256xf32> to vector<256x1xf32>
    %39 = arith.mulf %34, %34 : vector<256x8xf32>
    %cst_23 = arith.constant dense<0.000000e+00> : vector<256xf32>
    %40 = vector.multi_reduction <add>, %39, %cst_23 [1] : vector<256x8xf32> to vector<256xf32>
    %41 = vector.shape_cast %40 : vector<256xf32> to vector<256x1xf32>
    %cst_24 = arith.constant 1.250000e-01 : f32
    %42 = vector.broadcast %cst_24 : f32 to vector<256x1xf32>
    %43 = arith.mulf %38, %42 : vector<256x1xf32>
    %cst_25 = arith.constant 1.250000e-01 : f32
    %44 = vector.broadcast %cst_25 : f32 to vector<256x1xf32>
    %45 = arith.mulf %41, %44 : vector<256x1xf32>
    %46 = arith.mulf %43, %43 : vector<256x1xf32>
    %47 = arith.subf %45, %46 : vector<256x1xf32>
    %cst_26 = arith.constant 0.000000e+00 : f32
    %48 = vector.broadcast %cst_26 : f32 to vector<256x1xf32>
    %49 = arith.maximumf %47, %48 : vector<256x1xf32>
    %cst_27 = arith.constant 9.99999974E-6 : f32
    %50 = vector.broadcast %cst_27 : f32 to vector<256x1xf32>
    %51 = arith.addf %49, %50 : vector<256x1xf32>
    %52 = math.rsqrt %51 : vector<256x1xf32>
    %53 = arith.mulf %35, %52 : vector<256x1xf32>
    %54 = arith.mulf %43, %53 : vector<256x1xf32>
    %55 = arith.subf %36, %54 : vector<256x1xf32>
    %56 = vector.broadcast %53 : vector<256x1xf32> to vector<256x8xf32>
    %57 = arith.mulf %34, %56 : vector<256x8xf32>
    %58 = vector.broadcast %55 : vector<256x1xf32> to vector<256x8xf32>
    %59 = arith.addf %57, %58 : vector<256x8xf32>
    %cst_28 = arith.constant 0.000000e+00 : f32
    %60 = vector.broadcast %cst_28 : f32 to vector<256x8xf32>
    %61 = arith.cmpf oge, %59, %60 : vector<256x8xf32>
    %cst_29 = arith.constant 2.500000e-01 : f32
    %62 = vector.broadcast %cst_29 : f32 to vector<256x8xf32>
    %63 = arith.mulf %62, %59 : vector<256x8xf32>
    %64 = arith.select %61, %59, %63 : vector<256x8xi1>, vector<256x8xf32>
    %c0_30 = arith.constant 0 : index
    %c0_31 = arith.constant 0 : index
    %65 = vector.load %arg7[%c0_30, %c0_31] : memref<256x1xf32, #tpu.memory_space<vmem>>, vector<256x1xf32>
    %66 = vector.broadcast %65 : vector<256x1xf32> to vector<256x8xf32>
    %67 = arith.mulf %64, %66 : vector<256x8xf32>
    %cst_32 = arith.constant dense<0.000000e+00> : vector<8xf32>
    %68 = vector.multi_reduction <add>, %67, %cst_32 [0] : vector<256x8xf32> to vector<8xf32>
    %69 = vector.shape_cast %68 : vector<8xf32> to vector<1x8xf32>
    %c0_33 = arith.constant 0 : index
    %c0_34 = arith.constant 0 : index
    %70 = vector.load %arg8[%c0_33, %c0_34] : memref<1x1xf32, #tpu.memory_space<vmem>>, vector<1x1xf32>
    %71 = vector.broadcast %70 : vector<1x1xf32> to vector<1x8xf32>
    %72 = arith.addf %69, %71 : vector<1x8xf32>
    %73 = arith.negf %72 : vector<1x8xf32>
    %74 = math.exp %73 : vector<1x8xf32>
    %cst_35 = arith.constant 1.000000e+00 : f32
    %75 = vector.broadcast %cst_35 : f32 to vector<1x8xf32>
    %76 = arith.addf %75, %74 : vector<1x8xf32>
    %77 = arith.divf %75, %76 : vector<1x8xf32>
    %c0_36 = arith.constant 0 : index
    %c0_37 = arith.constant 0 : index
    %78 = vector.load %arg9[%c0_36, %c0_37] : memref<1x8xf32, #tpu.memory_space<vmem>>, vector<1x8xf32>
    tpu.vector_store %arg9[%c0_36, %c0_37], %77 {strides = array<i32>} : memref<1x8xf32, #tpu.memory_space<vmem>>, vector<1x8xf32>,
    return
  }
}

</mosaic_0001>

<bundles_post_ra>
// kernel: tpu_custom_call.1
= control target key start
LH: loop header
LB: loop body
LE: loop exit
PB: predicated region body
PF: predicated region fallthrough
CT: control target
= control target key end

     0   :  { %s9042_s0 = inlined_call_operand.vmem [shape: f32[10,8], index: 0, kind: input, shape index: {}]   ;;  %s9043_s1 = inlined_call_operand.vmem [shape: f32[512,10], index: 1, kind: input, shape index: {}]   ;;  %s9044_s2 = inlined_call_operand.vmem [shape: f32[512,1], index: 2, kind: input, shape index: {}]   ;;  %s9045_s3 = inlined_call_operand.vmem [shape: f32[512,1], index: 3, kind: input, shape index: {}]   ;;  %s9046_s4 = inlined_call_operand.vmem [shape: f32[256,512], index: 4, kind: input, shape index: {}]   ;;  %s9047_s5 = inlined_call_operand.vmem [shape: f32[256,1], index: 5, kind: input, shape index: {}]   ;;  %s9048_s6 = inlined_call_operand.vmem [shape: f32[256,1], index: 6, kind: input, shape index: {}]   ;;  %s9049_s7 = inlined_call_operand.vmem [shape: f32[256,1], index: 7, kind: input, shape index: {}]   ;;  %s9050_s8 = inlined_call_operand.<no memory space> [shape: f32[1,1], index: 8, kind: input, shape index: {}]   ;;  %s9051_s9 = inlined_call_operand.hbm [shape: f32[1,8], index: 9, kind: output, shape index: {}]  }
   0x1   :  { %v14_v0 = vstv %s9050_s8 }
   0x2   :  { %15 = vst [vmem:[#allocation2] sm:$0x1] %v14_v0 }
   0x3   :  { %v35_v1 = vld [vmem:[%s9042_s0] sm:$0xff]  ;;  %v36_v2 = vld [vmem:[%s9042_s0 + $0x8] sm:$0x3]  ;;  %vm294_vm0 = vcmask 1041408   ;;  %vm5485_vm1 = vmmov 1   ;;  %vm101_vm3 = vcmask 80896  }
   0x4   :  { %v37_v3 = vld [vmem:[%s9043_s1] sm:$0xff]  ;;  %v5084_v4 = vpack.c.bf16 %v36_v2, %v35_v1  ;;  %vm5085_vm2 = vmpackc.low %vm294_vm0, %vm5485_vm1  ;;  %v38_v5 = vld [vmem:[%s9043_s1 + $0x8] sm:$0xff] }
   0x5   :  { %4988 = vmatprep.mubr.msk.f32.mxu0 %vm101_vm3, %v37_v3  ;;  %v39_v6 = vld [vmem:[%s9043_s1 + $0x10] sm:$0xff]  ;;  %v40_v7 = vld [vmem:[%s9043_s1 + $0x18] sm:$0xff]  ;;  %v41_v8 = vld [vmem:[%s9043_s1 + $0x20] sm:$0xff] }
   0x6   :  { %5086 = vmatprep.subr.msk.bf16.mxu0 %vm5085_vm2, %v5084_v4  ;;  %v42_v9 = vld [vmem:[%s9043_s1 + $0x28] sm:$0xff]  ;;  %v43_v10 = vld [vmem:[%s9043_s1 + $0x30] sm:$0xff]  ;;  %v44_v11 = vld [vmem:[%s9043_s1 + $0x38] sm:$0xff] }
   0x7   :  { %5089 = vmatpush3.bf16.msk.msra.mxu0 %vm5085_vm2, %v5084_v4  ;;  %v45_v12 = vld [vmem:[%s9043_s1 + $0x40] sm:$0xff] }
   0xa   :  { %4989 = vmatmul.mubr.msk.f32.vlgmr.msra.gmra.mrb[0].mxu0 %vm101_vm3, %v38_v5 }
   0xb   :  { %4991 = vmatprep.mubr.msk.f32.mxu0 %vm101_vm3, %v39_v6 }
   0xe   :  { %4992 = vmatmul.mubr.msk.f32.gmra.mrb[2].mxu0 %vm101_vm3, %v40_v7 }
   0xf   :  { %4994 = vmatprep.mubr.msk.f32.mxu0 %vm101_vm3, %v41_v8 }
  0x12   :  { %4995 = vmatmul.mubr.msk.f32.gmra.mrb[4].mxu0 %vm101_vm3, %v42_v9 }
  0x13   :  { %4997 = vmatprep.mubr.msk.f32.mxu0 %vm101_vm3, %v43_v10 }
  0x16   :  { %4998 = vmatmul.mubr.msk.f32.gmra.mrb[6].mxu0 %vm101_vm3, %v44_v11 }
  0x17   :  { %16 = vsyncpa [#allocation4], 0  ;;  %5000 = vmatprep.mubr.msk.f32.mxu0 %vm101_vm3, %v45_v12  ;;  %v46_v13 = vld [vmem:[%s9043_s1 + $0x48] sm:$0xff]  ;;  %v47_v14 = vld [vmem:[%s9043_s1 + $0x50] sm:$0xff]  ;;  %vm811_vm4 = vcmask 64512  }
  0x18   :  { %v48_v15 = vld [vmem:[%s9043_s1 + $0x58] sm:$0xff]  ;;  %v49_v16 = vld [vmem:[%s9043_s1 + $0x60] sm:$0xff]  ;;  %v50_v17 = vld [vmem:[%s9043_s1 + $0x68] sm:$0xff] }
  0x19   :  { %v51_v18 = vld [vmem:[%s9043_s1 + $0x70] sm:$0xff]  ;;  %v52_v19 = vld [vmem:[%s9043_s1 + $0x78] sm:$0xff]  ;;  %v53_v20 = vld [vmem:[%s9043_s1 + $0x80] sm:$0xff] }
  0x1a   :  { %5001 = vmatmul.mubr.msk.f32.gmra.mrb[8].mxu0 %vm101_vm3, %v46_v13  ;;  %v54_v21 = vld [vmem:[%s9043_s1 + $0x88] sm:$0xff]  ;;  %v55_v22 = vld [vmem:[%s9043_s1 + $0x90] sm:$0xff]  ;;  %v56_v23 = vld [vmem:[%s9043_s1 + $0x98] sm:$0xff] }
  0x1b   :  { %5003 = vmatprep.mubr.msk.f32.mxu0 %vm101_vm3, %v47_v14  ;;  %v57_v24 = vld [vmem:[%s9043_s1 + $0xa0] sm:$0xff]  ;;  %v58_v25 = vld [vmem:[%s9043_s1 + $0xa8] sm:$0xff]  ;;  %v59_v26 = vld [vmem:[%s9043_s1 + $0xb0] sm:$0xff] }
  0x1c   :  { %v60_v27 = vld [vmem:[%s9043_s1 + $0xb8] sm:$0xff]  ;;  %v61_v28 = vld [vmem:[%s9043_s1 + $0xc0] sm:$0xff]  ;;  %v62_v29 = vld [vmem:[%s9043_s1 + $0xc8] sm:$0xff] }
  0x1d   :  { %v63_v30 = vld [vmem:[%s9043_s1 + $0xd0] sm:$0xff]  ;;  %v64_v31 = vld [vmem:[%s9043_s1 + $0xd8] sm:$0xff]  ;;  %v65_v32 = vld [vmem:[%s9043_s1 + $0xe0] sm:$0xff] }
  0x1e   :  { %5004 = vmatmul.mubr.msk.f32.gmra.mrb[10].mxu0 %vm101_vm3, %v48_v15  ;;  %v66_v33 = vld [vmem:[%s9043_s1 + $0xe8] sm:$0xff]  ;;  %v67_v34 = vld [vmem:[%s9043_s1 + $0xf0] sm:$0xff]  ;;  %v68_v35 = vld [vmem:[%s9043_s1 + $0xf8] sm:$0xff] }
  0x1f   :  { %5006 = vmatprep.mubr.msk.f32.mxu0 %vm101_vm3, %v49_v16  ;;  %v69_v36 = vld [vmem:[%s9043_s1 + $0x100] sm:$0xff]  ;;  %v70_v37 = vld [vmem:[%s9043_s1 + $0x108] sm:$0xff]  ;;  %v71_v38 = vld [vmem:[%s9043_s1 + $0x110] sm:$0xff] }
  0x20   :  { %v72_v39 = vld [vmem:[%s9043_s1 + $0x118] sm:$0xff]  ;;  %v73_v40 = vld [vmem:[%s9043_s1 + $0x120] sm:$0xff]  ;;  %v74_v41 = vld [vmem:[%s9043_s1 + $0x128] sm:$0xff] }
  0x21   :  { %v75_v42 = vld [vmem:[%s9043_s1 + $0x130] sm:$0xff]  ;;  %v76_v43 = vld [vmem:[%s9043_s1 + $0x138] sm:$0xff]  ;;  %v77_v44 = vld [vmem:[%s9043_s1 + $0x140] sm:$0xff] }
  0x22   :  { %5007 = vmatmul.mubr.msk.f32.gmra.mrb[12].mxu0 %vm101_vm3, %v50_v17  ;;  %v78_v45 = vld [vmem:[%s9043_s1 + $0x148] sm:$0xff]  ;;  %v79_v46 = vld [vmem:[%s9043_s1 + $0x150] sm:$0xff]  ;;  %v80_v47 = vld [vmem:[%s9043_s1 + $0x158] sm:$0xff] }
  0x23   :  { %5009 = vmatprep.mubr.msk.f32.mxu0 %vm101_vm3, %v51_v18  ;;  %v81_v48 = vld [vmem:[%s9043_s1 + $0x160] sm:$0xff]  ;;  %v82_v49 = vld [vmem:[%s9043_s1 + $0x168] sm:$0xff]  ;;  %v83_v50 = vld [vmem:[%s9043_s1 + $0x170] sm:$0xff] }
  0x24   :  { %v84_v51 = vld [vmem:[%s9043_s1 + $0x178] sm:$0xff]  ;;  %v85_v52 = vld [vmem:[%s9043_s1 + $0x180] sm:$0xff]  ;;  %v86_v53 = vld [vmem:[%s9043_s1 + $0x188] sm:$0xff] }
  0x25   :  { %v87_v54 = vld [vmem:[%s9043_s1 + $0x190] sm:$0xff]  ;;  %v88_v55 = vld [vmem:[%s9043_s1 + $0x198] sm:$0xff]  ;;  %v89_v56 = vld [vmem:[%s9043_s1 + $0x1a0] sm:$0xff] }
  0x26   :  { %5010 = vmatmul.mubr.msk.f32.gmra.mrb[14].mxu0 %vm101_vm3, %v52_v19  ;;  %v90_v57 = vld [vmem:[%s9043_s1 + $0x1a8] sm:$0xff]  ;;  %v91_v58 = vld [vmem:[%s9043_s1 + $0x1b0] sm:$0xff]  ;;  %v92_v59 = vld [vmem:[%s9043_s1 + $0x1b8] sm:$0xff] }
  0x27   :  { %5012 = vmatprep.mubr.msk.f32.mxu0 %vm101_vm3, %v53_v20  ;;  %v93_v60 = vld [vmem:[%s9043_s1 + $0x1c0] sm:$0xff]  ;;  %v94_v61 = vld [vmem:[%s9043_s1 + $0x1c8] sm:$0xff]  ;;  %v95_v62 = vld [vmem:[%s9043_s1 + $0x1d0] sm:$0xff] }
  0x28   :  { %v96_v63 = vld [vmem:[%s9043_s1 + $0x1d8] sm:$0xff]  ;;  %v97_v0 = vld [vmem:[%s9043_s1 + $0x1e0] sm:$0xff]  ;;  %v98_v1 = vld [vmem:[%s9043_s1 + $0x1e8] sm:$0xff] }
  0x29   :  { %v99_v2 = vld [vmem:[%s9043_s1 + $0x1f0] sm:$0xff]  ;;  %v100_v3 = vld [vmem:[%s9043_s1 + $0x1f8] sm:$0xff] }
  0x2a   :  { %5013 = vmatmul.mubr.msk.f32.gmra.mrb[16].mxu0 %vm101_vm3, %v54_v21 }
  0x2b   :  { %5015 = vmatprep.mubr.msk.f32.mxu0 %vm101_vm3, %v55_v22 }
  0x2e   :  { %5016 = vmatmul.mubr.msk.f32.gmra.mrb[18].mxu0 %vm101_vm3, %v56_v23 }
  0x2f   :  { %5018 = vmatprep.mubr.msk.f32.mxu0 %vm101_vm3, %v57_v24 }
  0x32   :  { %5019 = vmatmul.mubr.msk.f32.gmra.mrb[20].mxu0 %vm101_vm3, %v58_v25 }
  0x33   :  { %5021 = vmatprep.mubr.msk.f32.mxu0 %vm101_vm3, %v59_v26 }
  0x36   :  { %5022 = vmatmul.mubr.msk.f32.gmra.mrb[22].mxu0 %vm101_vm3, %v60_v27 }
  0x37   :  { %5024 = vmatprep.mubr.msk.f32.mxu0 %vm101_vm3, %v61_v28 }
  0x3a   :  { %5025 = vmatmul.mubr.msk.f32.gmra.mrb[24].mxu0 %vm101_vm3, %v62_v29 }
  0x3b   :  { %5027 = vmatprep.mubr.msk.f32.mxu0 %vm101_vm3, %v63_v30 }
  0x3e   :  { %5028 = vmatmul.mubr.msk.f32.gmra.mrb[26].mxu0 %vm101_vm3, %v64_v31 }
  0x3f   :  { %5030 = vmatprep.mubr.msk.f32.mxu0 %vm101_vm3, %v65_v32 }
  0x42   :  { %5031 = vmatmul.mubr.msk.f32.gmra.mrb[28].mxu0 %vm101_vm3, %v66_v33 }
  0x43   :  { %5033 = vmatprep.mubr.msk.f32.mxu0 %vm101_vm3, %v67_v34 }
  0x46   :  { %5034 = vmatmul.mubr.msk.f32.gmra.mrb[30].mxu0 %vm101_vm3, %v68_v35 }
  0x47   :  { %5036 = vmatprep.mubr.msk.f32.mxu0 %vm101_vm3, %v69_v36 }
  0x4a   :  { %5037 = vmatmul.mubr.msk.f32.gmra.mrb[32].mxu0 %vm101_vm3, %v70_v37 }
  0x4b   :  { %5039 = vmatprep.mubr.msk.f32.mxu0 %vm101_vm3, %v71_v38 }
  0x4e   :  { %5040 = vmatmul.mubr.msk.f32.gmra.mrb[34].mxu0 %vm101_vm3, %v72_v39 }
  0x4f   :  { %5042 = vmatprep.mubr.msk.f32.mxu0 %vm101_vm3, %v73_v40 }
  0x52   :  { %5043 = vmatmul.mubr.msk.f32.gmra.mrb[36].mxu0 %vm101_vm3, %v74_v41 }
  0x53   :  { %5045 = vmatprep.mubr.msk.f32.mxu0 %vm101_vm3, %v75_v42 }
  0x56   :  { %5046 = vmatmul.mubr.msk.f32.gmra.mrb[38].mxu0 %vm101_vm3, %v76_v43 }
  0x57   :  { %5048 = vmatprep.mubr.msk.f32.mxu0 %vm101_vm3, %v77_v44 }
  0x5a   :  { %5049 = vmatmul.mubr.msk.f32.gmra.mrb[40].mxu0 %vm101_vm3, %v78_v45 }
  0x5b   :  { %5051 = vmatprep.mubr.msk.f32.mxu0 %vm101_vm3, %v79_v46 }
  0x5e   :  { %5052 = vmatmul.mubr.msk.f32.gmra.mrb[42].mxu0 %vm101_vm3, %v80_v47 }
  0x5f   :  { %5054 = vmatprep.mubr.msk.f32.mxu0 %vm101_vm3, %v81_v48 }
  0x62   :  { %5055 = vmatmul.mubr.msk.f32.gmra.mrb[44].mxu0 %vm101_vm3, %v82_v49 }
  0x63   :  { %5057 = vmatprep.mubr.msk.f32.mxu0 %vm101_vm3, %v83_v50 }
  0x66   :  { %5058 = vmatmul.mubr.msk.f32.gmra.mrb[46].mxu0 %vm101_vm3, %v84_v51 }
  0x67   :  { %5060 = vmatprep.mubr.msk.f32.mxu0 %vm101_vm3, %v85_v52 }
  0x6a   :  { %5061 = vmatmul.mubr.msk.f32.gmra.mrb[48].mxu0 %vm101_vm3, %v86_v53 }
  0x6b   :  { %5063 = vmatprep.mubr.msk.f32.mxu0 %vm101_vm3, %v87_v54 }
  0x6e   :  { %5064 = vmatmul.mubr.msk.f32.gmra.mrb[50].mxu0 %vm101_vm3, %v88_v55 }
  0x6f   :  { %5066 = vmatprep.mubr.msk.f32.mxu0 %vm101_vm3, %v89_v56 }
  0x72   :  { %5067 = vmatmul.mubr.msk.f32.gmra.mrb[52].mxu0 %vm101_vm3, %v90_v57 }
  0x73   :  { %5069 = vmatprep.mubr.msk.f32.mxu0 %vm101_vm3, %v91_v58 }
  0x76   :  { %5070 = vmatmul.mubr.msk.f32.gmra.mrb[54].mxu0 %vm101_vm3, %v92_v59 }
  0x77   :  { %5072 = vmatprep.mubr.msk.f32.mxu0 %vm101_vm3, %v93_v60 }
  0x7a   :  { %5073 = vmatmul.mubr.msk.f32.gmra.mrb[56].mxu0 %vm101_vm3, %v94_v61 }
  0x7b   :  { %5075 = vmatprep.mubr.msk.f32.mxu0 %vm101_vm3, %v95_v62 }
  0x7e   :  { %5076 = vmatmul.mubr.msk.f32.gmra.mrb[58].mxu0 %vm101_vm3, %v96_v63 }
  0x7f   :  { %5078 = vmatprep.mubr.msk.f32.mxu0 %vm101_vm3, %v97_v0 }
  0x82   :  { %5079 = vmatmul.mubr.msk.f32.gmra.mrb[60].mxu0 %vm101_vm3, %v98_v1 }
  0x83   :  { %5081 = vmatprep.mubr.msk.f32.mxu0 %vm101_vm3, %v99_v2 }
  0x86   :  { %5082 = vmatmul.mubr.msk.f32.gmra.mrb[62].mxu0 %vm101_vm3, %v100_v3 }
  0xdd   :  { %v5804_v4 = vpop.f32.mrb[0].mxu0 }
  0xde   :  { %9131 = vst [vmem:[#allocation6_spill] sm:$0xff] %v5804_v4  ;;  %v5806_v5 = vpop.f32.mrb[1].mxu0  ;;  %v815_v6 = vsel %vm811_vm4, %v5804_v4, 0.0  ;;  %v1005_v7 = vmul.f32 %v5804_v4, %v5804_v4 }
  0xdf   :  { %9132 = vst [vmem:[#allocation7_spill] sm:$0xff] %v5806_v5  ;;  %816 = vadd.xlane.f32.xlu0 %v815_v6  ;;  %v812_v10 = vsel %vm811_vm4, %v5806_v5, 0.0  ;;  %v1004_v13 = vmul.f32 %v5806_v5, %v5806_v5 }
  0xe0   :  { %v1071_v8 = vsel %vm811_vm4, %v1005_v7, 0.0 }
  0xe1   :  { %1072 = vadd.xlane.f32.xlu1 %v1071_v8  ;;  %v5813_v9 = vpop.f32.mrb[2].mxu0  ;;  %v1068_v15 = vsel %vm811_vm4, %v1004_v13, 0.0 }
  0xe2   :  { %9133 = vst [vmem:[#allocation8_spill] sm:$0xff] %v5813_v9  ;;  %v5817_v11 = vpop.f32.mrb[3].mxu0  ;;  %v821_v12 = vsel %vm811_vm4, %v5813_v9, 0.0  ;;  %v1007_v19 = vmul.f32 %v5813_v9, %v5813_v9 }
  0xe3   :  { %9134 = vst [vmem:[#allocation9_spill] sm:$0xff] %v5817_v11  ;;  %813 = vadd.xlane.f32.xlu0 %v812_v10  ;;  %v1006_v16 = vmul.f32 %v5817_v11, %v5817_v11  ;;  %v818_v18 = vsel %vm811_vm4, %v5817_v11, 0.0 }
  0xe4   :  { %v1077_v23 = vsel %vm811_vm4, %v1007_v19, 0.0 }
  0xe5   :  { %822 = vadd.xlane.f32.xlu1 %v821_v12  ;;  %v5823_v14 = vpop.f32.mrb[4].mxu0  ;;  %v1074_v21 = vsel %vm811_vm4, %v1006_v16, 0.0 }
  0xe6   :  { %9135 = vst [vmem:[#allocation10_spill] sm:$0xff] %v5823_v14  ;;  %v5828_v17 = vpop.f32.mrb[5].mxu0  ;;  %v827_v27 = vsel %vm811_vm4, %v5823_v14, 0.0  ;;  %v1009_v30 = vmul.f32 %v5823_v14, %v5823_v14 }
  0xe7   :  { %9136 = vst [vmem:[#allocation11_spill] sm:$0xff] %v5828_v17  ;;  %1069 = vadd.xlane.f32.xlu0 %v1068_v15  ;;  %v824_v24 = vsel %vm811_vm4, %v5828_v17, 0.0  ;;  %v1008_v25 = vmul.f32 %v5828_v17, %v5828_v17 }
  0xe8   :  { %v1083_v33 = vsel %vm811_vm4, %v1009_v30, 0.0 }
  0xe9   :  { %819 = vadd.xlane.f32.xlu1 %v818_v18  ;;  %v5834_v20 = vpop.f32.mrb[6].mxu0  ;;  %v1080_v29 = vsel %vm811_vm4, %v1008_v25, 0.0 }
  0xea   :  { %9137 = vst [vmem:[#allocation12_spill] sm:$0xff] %v5834_v20  ;;  %v5837_v22 = vpop.f32.mrb[7].mxu0  ;;  %v833_v37 = vsel %vm811_vm4, %v5834_v20, 0.0  ;;  %v1011_v40 = vmul.f32 %v5834_v20, %v5834_v20 }
  0xeb   :  { %9138 = vst [vmem:[#allocation13_spill] sm:$0xff] %v5837_v22  ;;  %1075 = vadd.xlane.f32.xlu0 %v1074_v21  ;;  %v830_v34 = vsel %vm811_vm4, %v5837_v22, 0.0  ;;  %v1010_v35 = vmul.f32 %v5837_v22, %v5837_v22 }
  0xec   :  { %v1089_v43 = vsel %vm811_vm4, %v1011_v40, 0.0 }
  0xed   :  { %1078 = vadd.xlane.f32.xlu1 %v1077_v23  ;;  %v5844_v26 = vpop.f32.mrb[8].mxu0  ;;  %v1086_v39 = vsel %vm811_vm4, %v1010_v35, 0.0 }
  0xee   :  { %9139 = vst [vmem:[#allocation14_spill] sm:$0xff] %v5844_v26  ;;  %v5848_v28 = vpop.f32.mrb[9].mxu0  ;;  %v839_v47 = vsel %vm811_vm4, %v5844_v26, 0.0  ;;  %v1013_v50 = vmul.f32 %v5844_v26, %v5844_v26 }
  0xef   :  { %9140 = vst [vmem:[#allocation15_spill] sm:$0xff] %v5848_v28  ;;  %825 = vadd.xlane.f32.xlu0 %v824_v24  ;;  %v836_v44 = vsel %vm811_vm4, %v5848_v28, 0.0  ;;  %v1012_v45 = vmul.f32 %v5848_v28, %v5848_v28 }
  0xf0   :  { %v1095_v53 = vsel %vm811_vm4, %v1013_v50, 0.0 }
  0xf1   :  { %828 = vadd.xlane.f32.xlu1 %v827_v27  ;;  %v5853_v31 = vpop.f32.mrb[10].mxu0  ;;  %v1092_v49 = vsel %vm811_vm4, %v1012_v45, 0.0 }
  0xf2   :  { %9141 = vst [vmem:[#allocation16_spill] sm:$0xff] %v5853_v31  ;;  %v5855_v32 = vpop.f32.mrb[11].mxu0  ;;  %v845_v57 = vsel %vm811_vm4, %v5853_v31, 0.0  ;;  %v1015_v60 = vmul.f32 %v5853_v31, %v5853_v31 }
  0xf3   :  { %9142 = vst [vmem:[#allocation17_spill] sm:$0xff] %v5855_v32  ;;  %1081 = vadd.xlane.f32.xlu0 %v1080_v29  ;;  %v842_v54 = vsel %vm811_vm4, %v5855_v32, 0.0  ;;  %v1014_v55 = vmul.f32 %v5855_v32, %v5855_v32 }
  0xf4   :  { %v1101_v63 = vsel %vm811_vm4, %v1015_v60, 0.0 }
  0xf5   :  { %1084 = vadd.xlane.f32.xlu1 %v1083_v33  ;;  %v5862_v36 = vpop.f32.mrb[12].mxu0  ;;  %v1098_v59 = vsel %vm811_vm4, %v1014_v55, 0.0 }
  0xf6   :  { %9143 = vst [vmem:[#allocation18_spill] sm:$0xff] %v5862_v36  ;;  %v5866_v38 = vpop.f32.mrb[13].mxu0  ;;  %v851_v3 = vsel %vm811_vm4, %v5862_v36, 0.0  ;;  %v1017_v8 = vmul.f32 %v5862_v36, %v5862_v36 }
  0xf7   :  { %9144 = vst [vmem:[#allocation19_spill] sm:$0xff] %v5866_v38  ;;  %831 = vadd.xlane.f32.xlu0 %v830_v34  ;;  %v848_v0 = vsel %vm811_vm4, %v5866_v38, 0.0  ;;  %v1016_v1 = vmul.f32 %v5866_v38, %v5866_v38 }
  0xf8   :  { %v1107_v13 = vsel %vm811_vm4, %v1017_v8, 0.0 }
  0xf9   :  { %834 = vadd.xlane.f32.xlu1 %v833_v37  ;;  %v5871_v41 = vpop.f32.mrb[14].mxu0  ;;  %v1104_v7 = vsel %vm811_vm4, %v1016_v1, 0.0 }
  0xfa   :  { %9145 = vst [vmem:[#allocation20_spill] sm:$0xff] %v5871_v41  ;;  %v5873_v42 = vpop.f32.mrb[15].mxu0  ;;  %v857_v19 = vsel %vm811_vm4, %v5871_v41, 0.0  ;;  %v1019_v24 = vmul.f32 %v5871_v41, %v5871_v41 }
  0xfb   :  { %9146 = vst [vmem:[#allocation21_spill] sm:$0xff] %v5873_v42  ;;  %1087 = vadd.xlane.f32.xlu0 %v1086_v39  ;;  %v854_v15 = vsel %vm811_vm4, %v5873_v42, 0.0  ;;  %v1018_v16 = vmul.f32 %v5873_v42, %v5873_v42 }
  0xfc   :  { %v1113_v29 = vsel %vm811_vm4, %v1019_v24, 0.0 }
  0xfd   :  { %1090 = vadd.xlane.f32.xlu1 %v1089_v43  ;;  %v5880_v46 = vpop.f32.mrb[16].mxu0  ;;  %v1110_v23 = vsel %vm811_vm4, %v1018_v16, 0.0 }
  0xfe   :  { %9147 = vst [vmem:[#allocation22_spill] sm:$0xff] %v5880_v46  ;;  %v5884_v48 = vpop.f32.mrb[17].mxu0  ;;  %v863_v35 = vsel %vm811_vm4, %v5880_v46, 0.0  ;;  %v1021_v40 = vmul.f32 %v5880_v46, %v5880_v46 }
  0xff   :  { %9148 = vst [vmem:[#allocation23_spill] sm:$0xff] %v5884_v48  ;;  %837 = vadd.xlane.f32.xlu0 %v836_v44  ;;  %v860_v30 = vsel %vm811_vm4, %v5884_v48, 0.0  ;;  %v1020_v33 = vmul.f32 %v5884_v48, %v5884_v48 }
 0x100   :  { %v1119_v45 = vsel %vm811_vm4, %v1021_v40, 0.0 }
 0x101   :  { %840 = vadd.xlane.f32.xlu1 %v839_v47  ;;  %v5889_v51 = vpop.f32.mrb[18].mxu0  ;;  %v1116_v39 = vsel %vm811_vm4, %v1020_v33, 0.0 }
 0x102   :  { %9149 = vst [vmem:[#allocation24_spill] sm:$0xff] %v5889_v51  ;;  %v5891_v52 = vpop.f32.mrb[19].mxu0 }
 0x103   :  { %9150 = vst [vmem:[#allocation25_spill] sm:$0xff] %v5891_v52  ;;  %1093 = vadd.xlane.f32.xlu0 %v1092_v49  ;;  %v866_v47 = vsel %vm811_vm4, %v5891_v52, 0.0  ;;  %v1022_v49 = vmul.f32 %v5891_v52, %v5891_v52 }
 0x105   :  { %1096 = vadd.xlane.f32.xlu1 %v1095_v53  ;;  %v5898_v56 = vpop.f32.mrb[20].mxu0  ;;  %v869_v53 = vsel %vm811_vm4, %v5889_v51, 0.0  ;;  %v1122_v55 = vsel %vm811_vm4, %v1022_v49, 0.0 }
 0x106   :  { %9151 = vst [vmem:[#allocation26_spill] sm:$0xff] %v5898_v56  ;;  %v5902_v58 = vpop.f32.mrb[21].mxu0 }
 0x107   :  { %9152 = vst [vmem:[#allocation27_spill] sm:$0xff] %v5902_v58  ;;  %843 = vadd.xlane.f32.xlu0 %v842_v54  ;;  %v1024_v1 = vmul.f32 %v5902_v58, %v5902_v58 }
 0x109   :  { %846 = vadd.xlane.f32.xlu1 %v845_v57  ;;  %v5907_v61 = vpop.f32.mrb[22].mxu0  ;;  %v1023_v57 = vmul.f32 %v5889_v51, %v5889_v51 }
 0x10a   :  { %9153 = vst [vmem:[#allocation28_spill] sm:$0xff] %v5907_v61  ;;  %v5909_v62 = vpop.f32.mrb[23].mxu0  ;;  %v881_v33 = vsel %vm811_vm4, %v5907_v61, 0.0  ;;  %v1027_v40 = vmul.f32 %v5907_v61, %v5907_v61 }
 0x10b   :  { %9154 = vst [vmem:[#allocation29_spill] sm:$0xff] %v5909_v62  ;;  %1099 = vadd.xlane.f32.xlu0 %v1098_v59  ;;  %v878_v24 = vsel %vm811_vm4, %v5909_v62, 0.0 }
 0x10c   :  { %v1137_v49 = vsel %vm811_vm4, %v1027_v40, 0.0 }
 0x10d   :  { %1102 = vadd.xlane.f32.xlu1 %v1101_v63  ;;  %v5916_v2 = vpop.f32.mrb[24].mxu0  ;;  %v1125_v63 = vsel %vm811_vm4, %v1023_v57, 0.0 }
 0x10e   :  { %9155 = vst [vmem:[#allocation30_spill] sm:$0xff] %v5916_v2  ;;  %v5920_v6 = vpop.f32.mrb[25].mxu0 }
 0x10f   :  { %9156 = vst [vmem:[#allocation31_spill] sm:$0xff] %v5920_v6  ;;  %849 = vadd.xlane.f32.xlu0 %v848_v0  ;;  %v872_v0 = vsel %vm811_vm4, %v5902_v58, 0.0 }
 0x111   :  { %852 = vadd.xlane.f32.xlu1 %v851_v3  ;;  %v5925_v10 = vpop.f32.mrb[26].mxu0 }
 0x112   :  { %9157 = vst [vmem:[#allocation32_spill] sm:$0xff] %v5925_v10  ;;  %v5927_v12 = vpop.f32.mrb[27].mxu0 }
 0x113   :  { %9158 = vst [vmem:[#allocation33_spill] sm:$0xff] %v5927_v12  ;;  %1105 = vadd.xlane.f32.xlu0 %v1104_v7  ;;  %v875_v7 = vsel %vm811_vm4, %v5898_v56, 0.0 }
 0x115   :  { %1108 = vadd.xlane.f32.xlu1 %v1107_v13  ;;  %v5934_v18 = vpop.f32.mrb[28].mxu0  ;;  %v1128_v13 = vsel %vm811_vm4, %v1024_v1, 0.0 }
 0x116   :  { %9159 = vst [vmem:[#allocation34_spill] sm:$0xff] %v5934_v18  ;;  %v5938_v21 = vpop.f32.mrb[29].mxu0 }
 0x117   :  { %9160 = vst [vmem:[#allocation35_spill] sm:$0xff] %v5938_v21  ;;  %855 = vadd.xlane.f32.xlu0 %v854_v15  ;;  %v1025_v15 = vmul.f32 %v5898_v56, %v5898_v56 }
 0x119   :  { %858 = vadd.xlane.f32.xlu1 %v857_v19  ;;  %v5943_v25 = vpop.f32.mrb[30].mxu0 }
 0x11a   :  { %9161 = vst [vmem:[#allocation36_spill] sm:$0xff] %v5943_v25  ;;  %v5945_v27 = vpop.f32.mrb[31].mxu0 }
 0x11b   :  { %9162 = vst [vmem:[#allocation37_spill] sm:$0xff] %v5945_v27  ;;  %1111 = vadd.xlane.f32.xlu0 %v1110_v23  ;;  %v1131_v23 = vsel %vm811_vm4, %v1025_v15, 0.0 }
 0x11d   :  { %1114 = vadd.xlane.f32.xlu1 %v1113_v29  ;;  %v5952_v34 = vpop.f32.mrb[32].mxu0  ;;  %v1026_v29 = vmul.f32 %v5909_v62, %v5909_v62 }
 0x11e   :  { %9163 = vst [vmem:[#allocation38_spill] sm:$0xff] %v5952_v34  ;;  %v5956_v37 = vpop.f32.mrb[33].mxu0 }
 0x11f   :  { %9164 = vst [vmem:[#allocation39_spill] sm:$0xff] %v5956_v37  ;;  %861 = vadd.xlane.f32.xlu0 %v860_v30  ;;  %v1036_v62 = vmul.f32 %v5956_v37, %v5956_v37 }
 0x121   :  { %864 = vadd.xlane.f32.xlu1 %v863_v35  ;;  %v5961_v43 = vpop.f32.mrb[34].mxu0 }
 0x122   :  { %9165 = vst [vmem:[#allocation40_spill] sm:$0xff] %v5961_v43  ;;  %v5963_v44 = vpop.f32.mrb[35].mxu0 }
 0x123   :  { %9166 = vst [vmem:[#allocation41_spill] sm:$0xff] %v5963_v44  ;;  %1117 = vadd.xlane.f32.xlu0 %v1116_v39  ;;  %v1134_v39 = vsel %vm811_vm4, %v1026_v29, 0.0  ;;  %v1030_v29 = vmul.f32 %v5927_v12, %v5927_v12 }
 0x125   :  { %1120 = vadd.xlane.f32.xlu1 %v1119_v45  ;;  %v5970_v50 = vpop.f32.mrb[36].mxu0 }
 0x126   :  { %9167 = vst [vmem:[#allocation42_spill] sm:$0xff] %v5970_v50  ;;  %v5974_v54 = vpop.f32.mrb[37].mxu0 }
 0x127   :  { %9168 = vst [vmem:[#allocation43_spill] sm:$0xff] %v5974_v54  ;;  %867 = vadd.xlane.f32.xlu0 %v866_v47 }
 0x129   :  { %870 = vadd.xlane.f32.xlu1 %v869_v53  ;;  %v5979_v59 = vpop.f32.mrb[38].mxu0  ;;  %v884_v53 = vsel %vm811_vm4, %v5920_v6, 0.0 }
 0x12a   :  { %9169 = vst [vmem:[#allocation44_spill] sm:$0xff] %v5979_v59  ;;  %v5981_v60 = vpop.f32.mrb[39].mxu0 }
 0x12b   :  { %9170 = vst [vmem:[#allocation45_spill] sm:$0xff] %v5981_v60  ;;  %1123 = vadd.xlane.f32.xlu0 %v1122_v55  ;;  %v1028_v55 = vmul.f32 %v5920_v6, %v5920_v6  ;;  %v1034_v6 = vmul.f32 %v5945_v27, %v5945_v27 }
 0x12d   :  { %1126 = vadd.xlane.f32.xlu1 %v1125_v63  ;;  %v5988_v3 = vpop.f32.mrb[40].mxu0  ;;  %v887_v63 = vsel %vm811_vm4, %v5916_v2, 0.0  ;;  %v1140_v1 = vsel %vm811_vm4, %v1028_v55, 0.0 }
 0x12e   :  { %9171 = vst [vmem:[#allocation46_spill] sm:$0xff] %v5988_v3  ;;  %v5992_v8 = vpop.f32.mrb[41].mxu0 }
 0x12f   :  { %9172 = vst [vmem:[#allocation47_spill] sm:$0xff] %v5992_v8  ;;  %873 = vadd.xlane.f32.xlu0 %v872_v0 }
 0x131   :  { %876 = vadd.xlane.f32.xlu1 %v875_v7  ;;  %v5997_v16 = vpop.f32.mrb[42].mxu0  ;;  %v1029_v7 = vmul.f32 %v5916_v2, %v5916_v2 }
 0x132   :  { %9173 = vst [vmem:[#allocation48_spill] sm:$0xff] %v5997_v16  ;;  %v5999_v19 = vpop.f32.mrb[43].mxu0 }
 0x133   :  { %9174 = vst [vmem:[#allocation49_spill] sm:$0xff] %v5999_v19  ;;  %1129 = vadd.xlane.f32.xlu0 %v1128_v13 }
 0x135   :  { %1132 = vadd.xlane.f32.xlu1 %v1131_v23  ;;  %v6006_v30 = vpop.f32.mrb[44].mxu0  ;;  %v1143_v23 = vsel %vm811_vm4, %v1029_v7, 0.0  ;;  %v896_v7 = vsel %vm811_vm4, %v5938_v21, 0.0 }
 0x136   :  { %9175 = vst [vmem:[#allocation50_spill] sm:$0xff] %v6006_v30  ;;  %v6010_v35 = vpop.f32.mrb[45].mxu0 }
 0x137   :  { %9176 = vst [vmem:[#allocation51_spill] sm:$0xff] %v6010_v35  ;;  %879 = vadd.xlane.f32.xlu0 %v878_v24  ;;  %v890_v24 = vsel %vm811_vm4, %v5927_v12, 0.0 }
 0x139   :  { %882 = vadd.xlane.f32.xlu1 %v881_v33  ;;  %v6015_v45 = vpop.f32.mrb[46].mxu0 }
 0x13a   :  { %9177 = vst [vmem:[#allocation52_spill] sm:$0xff] %v6015_v45  ;;  %v6017_v47 = vpop.f32.mrb[47].mxu0 }
 0x13b   :  { %9178 = vst [vmem:[#allocation53_spill] sm:$0xff] %v6017_v47  ;;  %1135 = vadd.xlane.f32.xlu0 %v1134_v39  ;;  %v893_v39 = vsel %vm811_vm4, %v5925_v10, 0.0 }
 0x13d   :  { %1138 = vadd.xlane.f32.xlu1 %v1137_v49  ;;  %v6024_v57 = vpop.f32.mrb[48].mxu0  ;;  %v1146_v49 = vsel %vm811_vm4, %v1030_v29, 0.0  ;;  %v899_v29 = vsel %vm811_vm4, %v5934_v18, 0.0 }
 0x13e   :  { %9179 = vst [vmem:[#allocation54_spill] sm:$0xff] %v6024_v57  ;;  %v6028_v0 = vpop.f32.mrb[49].mxu0 }
 0x13f   :  { %9180 = vst [vmem:[#allocation55_spill] sm:$0xff] %v6028_v0  ;;  %885 = vadd.xlane.f32.xlu0 %v884_v53  ;;  %v1031_v53 = vmul.f32 %v5925_v10, %v5925_v10 }
 0x141   :  { %888 = vadd.xlane.f32.xlu1 %v887_v63  ;;  %v6033_v13 = vpop.f32.mrb[50].mxu0 }
 0x142   :  { %9181 = vst [vmem:[#allocation56_spill] sm:$0xff] %v6033_v13  ;;  %v6035_v15 = vpop.f32.mrb[51].mxu0 }
 0x143   :  { %9182 = vst [vmem:[#allocation57_spill] sm:$0xff] %v6035_v15  ;;  %1141 = vadd.xlane.f32.xlu0 %v1140_v1  ;;  %v1149_v1 = vsel %vm811_vm4, %v1031_v53, 0.0 }
 0x145   :  { %1144 = vadd.xlane.f32.xlu1 %v1143_v23  ;;  %v6042_v33 = vpop.f32.mrb[52].mxu0  ;;  %v1032_v23 = vmul.f32 %v5938_v21, %v5938_v21  ;;  %v902_v21 = vsel %vm811_vm4, %v5945_v27, 0.0  ;;  %v908_v27 = vsel %vm811_vm4, %v5956_v37, 0.0  ;;  %v1038_v37 = vmul.f32 %v5963_v44, %v5963_v44 }
 0x146   :  { %9183 = vst [vmem:[#allocation58_spill] sm:$0xff] %v6042_v33  ;;  %v6046_v40 = vpop.f32.mrb[53].mxu0 }
 0x147   :  { %9184 = vst [vmem:[#allocation59_spill] sm:$0xff] %v6046_v40  ;;  %891 = vadd.xlane.f32.xlu0 %v890_v24  ;;  %v1152_v12 = vsel %vm811_vm4, %v1032_v23, 0.0  ;;  %v905_v23 = vsel %vm811_vm4, %v5943_v25, 0.0 }
 0x149   :  { %894 = vadd.xlane.f32.xlu1 %v893_v39  ;;  %v6051_v55 = vpop.f32.mrb[54].mxu0 }
 0x14a   :  { %9185 = vst [vmem:[#allocation60_spill] sm:$0xff] %v6051_v55  ;;  %v6053_v63 = vpop.f32.mrb[55].mxu0  ;;  %v1059_v20 = vmul.f32 %v6051_v55, %v6051_v55 }
 0x14b   :  { %9186 = vst [vmem:[#allocation61_spill] sm:$0xff] %v6053_v63  ;;  %1147 = vadd.xlane.f32.xlu0 %v1146_v49  ;;  %v1033_v49 = vmul.f32 %v5934_v18, %v5934_v18  ;;  %v1158_v18 = vsel %vm811_vm4, %v1034_v6, 0.0  ;;  %v911_v6 = vsel %vm811_vm4, %v5952_v34, 0.0 }
 0x14d   :  { %1150 = vadd.xlane.f32.xlu1 %v1149_v1  ;;  %v6060_v24 = vpop.f32.mrb[56].mxu0  ;;  %v1155_v1 = vsel %vm811_vm4, %v1033_v49, 0.0 }
 0x14e   :  { %9187 = vst [vmem:[#allocation62_spill] sm:$0xff] %v6060_v24  ;;  %v6064_v39 = vpop.f32.mrb[57].mxu0 }
 0x14f   :  { %9188 = vst [vmem:[#allocation63_spill] sm:$0xff] %v6064_v39  ;;  %897 = vadd.xlane.f32.xlu0 %v896_v7 }
 0x151   :  { %900 = vadd.xlane.f32.xlu1 %v899_v29  ;;  %v6069_v53 = vpop.f32.mrb[58].mxu0 }
 0x152   :  { %9189 = vst [vmem:[#allocation64_spill] sm:$0xff] %v6069_v53  ;;  %v6071_v10 = vpop.f32.mrb[59].mxu0 }
 0x153   :  { %9190 = vst [vmem:[#allocation65_spill] sm:$0xff] %v6071_v10  ;;  %1153 = vadd.xlane.f32.xlu0 %v1152_v12  ;;  %v1035_v12 = vmul.f32 %v5943_v25, %v5943_v25 }
 0x155   :  { %1156 = vadd.xlane.f32.xlu1 %v1155_v1  ;;  %v6078_v7 = vpop.f32.mrb[60].mxu0  ;;  %v1161_v1 = vsel %vm811_vm4, %v1035_v12, 0.0  ;;  %v914_v12 = vsel %vm811_vm4, %v5963_v44, 0.0 }
 0x156   :  { %9191 = vst [vmem:[#allocation66_spill] sm:$0xff] %v6078_v7  ;;  %v6082_v29 = vpop.f32.mrb[61].mxu0 }
 0x157   :  { %9192 = vst [vmem:[#allocation67_spill] sm:$0xff] %v6082_v29  ;;  %903 = vadd.xlane.f32.xlu0 %v902_v21  ;;  %v1164_v21 = vsel %vm811_vm4, %v1036_v62, 0.0  ;;  %v1170_v62 = vsel %vm811_vm4, %v1038_v37, 0.0 }
 0x159   :  { %906 = vadd.xlane.f32.xlu1 %v905_v23  ;;  %v6087_v49 = vpop.f32.mrb[62].mxu0  ;;  %v1037_v23 = vmul.f32 %v5952_v34, %v5952_v34 }
 0x15a   :  { %9193 = vst [vmem:[#allocation68_spill] sm:$0xff] %v6087_v49  ;;  %v6089_v2 = vpop.f32.mrb[63].mxu0 }
 0x15b   :  { %9194 = vst [vmem:[#allocation69_spill] sm:$0xff] %v6089_v2  ;;  %1159 = vadd.xlane.f32.xlu0 %v1158_v18  ;;  %v1167_v18 = vsel %vm811_vm4, %v1037_v23, 0.0  ;;  %v920_v23 = vsel %vm811_vm4, %v5974_v54, 0.0 }
 0x15d   :  { %1162 = vadd.xlane.f32.xlu1 %v1161_v1  ;;  %v917_v1 = vsel %vm811_vm4, %v5961_v43, 0.0 }
 0x15f   :  { %909 = vadd.xlane.f32.xlu0 %v908_v27  ;;  %v1039_v27 = vmul.f32 %v5961_v43, %v5961_v43  ;;  %v923_v43 = vsel %vm811_vm4, %v5970_v50, 0.0 }
 0x161   :  { %912 = vadd.xlane.f32.xlu1 %v911_v6 }
 0x163   :  { %1165 = vadd.xlane.f32.xlu0 %v1164_v21  ;;  %v1173_v21 = vsel %vm811_vm4, %v1039_v27, 0.0 }
 0x165   :  { %1168 = vadd.xlane.f32.xlu1 %v1167_v18  ;;  %v1040_v18 = vmul.f32 %v5974_v54, %v5974_v54 }
 0x167   :  { %915 = vadd.xlane.f32.xlu0 %v914_v12  ;;  %v5486_v12 = vmov 0   ;;  %v1176_v34 = vsel %vm811_vm4, %v1040_v18, 0.0 }
 0x168   :  { %5264 = vset.pattern.permute.xlu0 %v5486_v12  ;;  %5263 = vset.pattern.permute.xlu1 %v5486_v12 }
 0x169   :  { %918 = vadd.xlane.f32.xlu1 %v917_v1 }
 0x16b   :  { %1171 = vadd.xlane.f32.xlu0 %v1170_v62 }
 0x16c   :  { %v817_v6 = vpop.xlane.xlu0 %816 }
 0x16d   :  { %v6116_v44 = vmul.f32 0.125, %v817_v6  ;;  %1174 = vadd.xlane.f32.xlu1 %v1173_v21  ;;  %v1041_v6 = vmul.f32 %v5970_v50, %v5970_v50 }
 0x16e   :  { %v1073_v37 = vpop.xlane.xlu1 %1072 }
 0x16f   :  { %v1389_v1 = vmul.f32 %v6116_v44, %v6116_v44  ;;  %v1325_v62 = vmul.f32 0.125, %v1073_v37  ;;  %921 = vadd.xlane.f32.xlu0 %v920_v23  ;;  %v1179_v12 = vsel %vm811_vm4, %v1041_v6, 0.0  ;;  %v926_v37 = vsel %vm811_vm4, %v5981_v60, 0.0 }
 0x170   :  { %v814_v27 = vpop.xlane.xlu0 %813  ;;  %v1042_v23 = vmul.f32 %v5981_v60, %v5981_v60 }
 0x171   :  { %v1453_v54 = vsub.f32 %v1325_v62, %v1389_v1  ;;  %v6125_v21 = vmul.f32 0.125, %v814_v27  ;;  %924 = vadd.xlane.f32.xlu1 %v923_v43  ;;  %v929_v43 = vsel %vm811_vm4, %v5979_v59, 0.0 }
 0x172   :  { %v823_v25 = vpop.xlane.xlu1 %822  ;;  %v1182_v60 = vsel %vm811_vm4, %v1042_v23, 0.0 }
 0x173   :  { %v1517_v61 = vmax.f32 %v1453_v54, 0.0  ;;  %1177 = vadd.xlane.f32.xlu0 %v1176_v34  ;;  %v1388_v50 = vmul.f32 %v6125_v21, %v6125_v21  ;;  %v6136_v34 = vmul.f32 0.125, %v823_v25 }
 0x174   :  { %v1070_v58 = vpop.xlane.xlu0 %1069 }
 0x175   :  { %v1581_v18 = vadd.f32 1e-05, %v1517_v61  ;;  %v1324_v1 = vmul.f32 0.125, %v1070_v58  ;;  %1180 = vadd.xlane.f32.xlu1 %v1179_v12  ;;  %v1043_v61 = vmul.f32 %v5979_v59, %v5979_v59  ;;  %v1391_v25 = vmul.f32 %v6136_v34, %v6136_v34 }
 0x176   :  { %v820_v62 = vpop.xlane.xlu1 %819 }
 0x177   :  { %5265 = vrsqrt.f32 %v1581_v18  ;;  %v1452_v54 = vsub.f32 %v1324_v1, %v1388_v50  ;;  %v6138_v27 = vmul.f32 0.125, %v820_v62  ;;  %927 = vadd.xlane.f32.xlu0 %v926_v37  ;;  %v1185_v23 = vsel %vm811_vm4, %v1043_v61, 0.0 }
 0x178   :  { %v1076_v6 = vpop.xlane.xlu0 %1075  ;;  %v932_v62 = vsel %vm811_vm4, %v5992_v8, 0.0 }
 0x179   :  { %v1516_v56 = vmax.f32 %v1452_v54, 0.0  ;;  %v1390_v58 = vmul.f32 %v6138_v27, %v6138_v27  ;;  %v1326_v12 = vmul.f32 0.125, %v1076_v6  ;;  %930 = vadd.xlane.f32.xlu1 %v929_v43  ;;  %v1044_v54 = vmul.f32 %v5992_v8, %v5992_v8 }
 0x17a   :  { %v1079_v52 = vpop.xlane.xlu1 %1078 }
 0x17b   :  { %v1580_v50 = vadd.f32 1e-05, %v1516_v56  ;;  %v1454_v18 = vsub.f32 %v1326_v12, %v1390_v58  ;;  %v1327_v1 = vmul.f32 0.125, %v1079_v52  ;;  %1183 = vadd.xlane.f32.xlu0 %v1182_v60  ;;  %v935_v52 = vsel %vm811_vm4, %v5988_v3, 0.0  ;;  %v684_v12 = vld [vmem:[%s9044_s2 + $0x8] sm:$0xff] }
 0x17c   :  { %v826_v37 = vpop.xlane.xlu0 %825 }
 0x17d   :  { %5267 = vrsqrt.f32 %v1580_v50  ;;  %v1518_v6 = vmax.f32 %v1454_v18, 0.0  ;;  %v1455_v43 = vsub.f32 %v1327_v1, %v1391_v25  ;;  %v6152_v59 = vmul.f32 0.125, %v826_v37  ;;  %1186 = vadd.xlane.f32.xlu1 %v1185_v23 }
 0x17e   :  { %v829_v51 = vpop.xlane.xlu1 %828  ;;  %v1188_v50 = vsel %vm811_vm4, %v1044_v54, 0.0  ;;  %v1045_v18 = vmul.f32 %v5988_v3, %v5988_v3  ;;  %v938_v3 = vsel %vm811_vm4, %v5999_v19, 0.0 }
 0x17f   :  { %v1582_v56 = vadd.f32 1e-05, %v1518_v6  ;;  %v1519_v60 = vmax.f32 %v1455_v43, 0.0  ;;  %v1392_v61 = vmul.f32 %v6152_v59, %v6152_v59  ;;  %v6158_v58 = vmul.f32 0.125, %v829_v51  ;;  %933 = vadd.xlane.f32.xlu0 %v932_v62 }
 0x180   :  { %v1082_v25 = vpop.xlane.xlu0 %1081  ;;  %v1191_v54 = vsel %vm811_vm4, %v1045_v18, 0.0  ;;  %v941_v18 = vsel %vm811_vm4, %v5997_v16, 0.0 }
 0x181   :  { %v5266_v1 = vpop.eup %5265  ;;  %5269 = vrsqrt.f32 %v1582_v56  ;;  %v1583_v37 = vadd.f32 1e-05, %v1519_v60  ;;  %v1328_v23 = vmul.f32 0.125, %v1082_v25  ;;  %936 = vadd.xlane.f32.xlu1 %v935_v52  ;;  %v1393_v51 = vmul.f32 %v6158_v58, %v6158_v58 }
 0x182   :  { %v1085_v6 = vpop.xlane.xlu1 %1084  ;;  %v6166_v43 = vmul.f32 %v5266_v1, %v684_v12  ;;  %v1046_v56 = vmul.f32 %v5999_v19, %v5999_v19 }
 0x183   :  { %5271 = vrsqrt.f32 %v1583_v37  ;;  %v1456_v62 = vsub.f32 %v1328_v23, %v1392_v61  ;;  %v1329_v8 = vmul.f32 0.125, %v1085_v6  ;;  %1189 = vadd.xlane.f32.xlu0 %v1188_v50  ;;  %v683_v61 = vld [vmem:[%s9044_s2] sm:$0xff] }
 0x184   :  { %v832_v48 = vpop.xlane.xlu0 %831  ;;  %v6177_v52 = vmul.f32 %v6166_v43, %v6116_v44 }
 0x185   :  { %v1520_v60 = vmax.f32 %v1456_v62, 0.0  ;;  %v1457_v12 = vsub.f32 %v1329_v8, %v1393_v51  ;;  %v6179_v25 = vmul.f32 0.125, %v832_v48  ;;  %1192 = vadd.xlane.f32.xlu1 %v1191_v54  ;;  %v1194_v8 = vsel %vm811_vm4, %v1046_v56, 0.0 }
 0x186   :  { %v835_v50 = vpop.xlane.xlu1 %834  ;;  %v1047_v51 = vmul.f32 %v5997_v16, %v5997_v16 }
 0x187   :  { %v5268_v1 = vpop.eup %5267  ;;  %v1584_v37 = vadd.f32 1e-05, %v1520_v60  ;;  %v1521_v23 = vmax.f32 %v1457_v12, 0.0  ;;  %v1394_v44 = vmul.f32 %v6179_v25, %v6179_v25  ;;  %v6188_v6 = vmul.f32 0.125, %v835_v50  ;;  %939 = vadd.xlane.f32.xlu0 %v938_v3  ;;  %v685_v60 = vld [vmem:[%s9044_s2 + $0x10] sm:$0xff] }
 0x188   :  { %v1088_v48 = vpop.xlane.xlu0 %1087  ;;  %v6193_v62 = vmul.f32 %v5268_v1, %v683_v61 }
 0x189   :  { %5273 = vrsqrt.f32 %v1584_v37  ;;  %v1585_v54 = vadd.f32 1e-05, %v1521_v23  ;;  %v1330_v19 = vmul.f32 0.125, %v1088_v48  ;;  %942 = vadd.xlane.f32.xlu1 %v941_v18  ;;  %v1395_v56 = vmul.f32 %v6188_v6, %v6188_v6  ;;  %v686_v18 = vld [vmem:[%s9044_s2 + $0x18] sm:$0xff] }
 0x18a   :  { %v1091_v12 = vpop.xlane.xlu1 %1090  ;;  %v6200_v3 = vmul.f32 %v6193_v62, %v6125_v21  ;;  %v1197_v23 = vsel %vm811_vm4, %v1047_v51, 0.0  ;;  %v944_v48 = vsel %vm811_vm4, %v6010_v35, 0.0  ;;  %v1048_v21 = vmul.f32 %v6010_v35, %v6010_v35 }
 0x18b   :  { %v5270_v50 = vpop.eup %5269  ;;  %5275 = vrsqrt.f32 %v1585_v54  ;;  %v1458_v61 = vsub.f32 %v1330_v19, %v1394_v44  ;;  %v1331_v1 = vmul.f32 0.125, %v1091_v12  ;;  %1195 = vadd.xlane.f32.xlu0 %v1194_v8  ;;  %v947_v12 = vsel %vm811_vm4, %v6006_v30, 0.0 }
 0x18c   :  { %v838_v37 = vpop.xlane.xlu0 %837  ;;  %v6212_v54 = vmul.f32 %v5270_v50, %v685_v60 }
 0x18d   :  { %v5272_v16 = vpop.eup %5271  ;;  %v1522_v46 = vmax.f32 %v1458_v61, 0.0  ;;  %v1459_v19 = vsub.f32 %v1331_v1, %v1395_v56  ;;  %v6214_v44 = vmul.f32 0.125, %v838_v37  ;;  %1198 = vadd.xlane.f32.xlu1 %v1197_v23  ;;  %v1200_v61 = vsel %vm811_vm4, %v1048_v21, 0.0 }
 0x18e   :  { %v841_v8 = vpop.xlane.xlu1 %840  ;;  %v6218_v42 = vmul.f32 %v5272_v16, %v686_v18  ;;  %v6222_v51 = vmul.f32 %v6212_v54, %v6138_v27  ;;  %v1049_v1 = vmul.f32 %v6006_v30, %v6006_v30  ;;  %v687_v18 = vld [vmem:[%s9044_s2 + $0x20] sm:$0xff] }
 0x18f   :  { %v1586_v41 = vadd.f32 1e-05, %v1522_v46  ;;  %v1523_v35 = vmax.f32 %v1459_v19, 0.0  ;;  %v1396_v60 = vmul.f32 %v6214_v44, %v6214_v44  ;;  %v6226_v50 = vmul.f32 0.125, %v841_v8  ;;  %945 = vadd.xlane.f32.xlu0 %v944_v48 }
 0x190   :  { %v1094_v56 = vpop.xlane.xlu0 %1093  ;;  %v6233_v16 = vmul.f32 %v6218_v42, %v6136_v34  ;;  %v1203_v34 = vsel %vm811_vm4, %v1049_v1, 0.0  ;;  %v950_v8 = vsel %vm811_vm4, %v6017_v47, 0.0 }
 0x191   :  { %5277 = vrsqrt.f32 %v1586_v41  ;;  %v1587_v27 = vadd.f32 1e-05, %v1523_v35  ;;  %v1332_v46 = vmul.f32 0.125, %v1094_v56  ;;  %948 = vadd.xlane.f32.xlu1 %v947_v12  ;;  %v1397_v48 = vmul.f32 %v6226_v50, %v6226_v50  ;;  %v688_v41 = vld [vmem:[%s9044_s2 + $0x28] sm:$0xff] }
 0x192   :  { %v1097_v37 = vpop.xlane.xlu1 %1096  ;;  %v1050_v12 = vmul.f32 %v6017_v47, %v6017_v47 }
 0x193   :  { %v5274_v23 = vpop.eup %5273  ;;  %5279 = vrsqrt.f32 %v1587_v27  ;;  %v1460_v21 = vsub.f32 %v1332_v46, %v1396_v60  ;;  %v1333_v19 = vmul.f32 0.125, %v1097_v37  ;;  %1201 = vadd.xlane.f32.xlu0 %v1200_v61  ;;  %v953_v37 = vsel %vm811_vm4, %v6015_v45, 0.0 }
 0x194   :  { %v844_v35 = vpop.xlane.xlu0 %843  ;;  %v6248_v56 = vmul.f32 %v5274_v23, %v687_v18 }
 0x195   :  { %v5276_v27 = vpop.eup %5275  ;;  %v1524_v30 = vmax.f32 %v1460_v21, 0.0  ;;  %v1461_v60 = vsub.f32 %v1333_v19, %v1397_v48  ;;  %v6250_v46 = vmul.f32 0.125, %v844_v35  ;;  %1204 = vadd.xlane.f32.xlu1 %v1203_v34  ;;  %v1206_v21 = vsel %vm811_vm4, %v1050_v12, 0.0  ;;  %v689_v35 = vld [vmem:[%s9044_s2 + $0x30] sm:$0xff] }
 0x196   :  { %v847_v61 = vpop.xlane.xlu1 %846  ;;  %v6254_v38 = vmul.f32 %v5276_v27, %v688_v41  ;;  %v6258_v1 = vmul.f32 %v6248_v56, %v6152_v59  ;;  %v1051_v19 = vmul.f32 %v6015_v45, %v6015_v45 }
 0x197   :  { %v1588_v36 = vadd.f32 1e-05, %v1524_v30  ;;  %v1525_v47 = vmax.f32 %v1461_v60, 0.0  ;;  %v1398_v18 = vmul.f32 %v6250_v46, %v6250_v46  ;;  %v6262_v23 = vmul.f32 0.125, %v847_v61  ;;  %951 = vadd.xlane.f32.xlu0 %v950_v8 }
 0x198   :  { %v1100_v48 = vpop.xlane.xlu0 %1099  ;;  %v6269_v41 = vmul.f32 %v6254_v38, %v6158_v58  ;;  %v1209_v58 = vsel %vm811_vm4, %v1051_v19, 0.0  ;;  %v1052_v61 = vmul.f32 %v6028_v0, %v6028_v0 }
 0x199   :  { %5281 = vrsqrt.f32 %v1588_v36  ;;  %v1589_v59 = vadd.f32 1e-05, %v1525_v47  ;;  %v1334_v30 = vmul.f32 0.125, %v1100_v48  ;;  %954 = vadd.xlane.f32.xlu1 %v953_v37  ;;  %v1399_v12 = vmul.f32 %v6262_v23, %v6262_v23  ;;  %v690_v36 = vld [vmem:[%s9044_s2 + $0x38] sm:$0xff] }
 0x19a   :  { %v1103_v34 = vpop.xlane.xlu1 %1102  ;;  %v956_v37 = vsel %vm811_vm4, %v6028_v0, 0.0 }
 0x19b   :  { %v5278_v8 = vpop.eup %5277  ;;  %5283 = vrsqrt.f32 %v1589_v59  ;;  %v1462_v27 = vsub.f32 %v1334_v30, %v1398_v18  ;;  %v1335_v60 = vmul.f32 0.125, %v1103_v34  ;;  %1207 = vadd.xlane.f32.xlu0 %v1206_v21  ;;  %v959_v34 = vsel %vm811_vm4, %v6024_v57, 0.0 }
 0x19c   :  { %v850_v47 = vpop.xlane.xlu0 %849  ;;  %v6284_v48 = vmul.f32 %v5278_v8, %v689_v35 }
 0x19d   :  { %v5280_v59 = vpop.eup %5279  ;;  %v1526_v45 = vmax.f32 %v1462_v27, 0.0  ;;  %v1463_v18 = vsub.f32 %v1335_v60, %v1399_v12  ;;  %v6286_v30 = vmul.f32 0.125, %v850_v47  ;;  %1210 = vadd.xlane.f32.xlu1 %v1209_v58  ;;  %v1053_v12 = vmul.f32 %v6024_v57, %v6024_v57  ;;  %v691_v47 = vld [vmem:[%s9044_s2 + $0x40] sm:$0xff] }
 0x19e   :  { %v853_v21 = vpop.xlane.xlu1 %852  ;;  %v6290_v32 = vmul.f32 %v5280_v59, %v690_v36  ;;  %v6294_v19 = vmul.f32 %v6284_v48, %v6179_v25  ;;  %v1212_v60 = vsel %vm811_vm4, %v1052_v61, 0.0 }
 0x19f   :  { %v1590_v31 = vadd.f32 1e-05, %v1526_v45  ;;  %v1527_v0 = vmax.f32 %v1463_v18, 0.0  ;;  %v1400_v35 = vmul.f32 %v6286_v30, %v6286_v30  ;;  %v6298_v8 = vmul.f32 0.125, %v853_v21  ;;  %957 = vadd.xlane.f32.xlu0 %v956_v37 }
 0x1a0   :  { %v1106_v27 = vpop.xlane.xlu0 %1105  ;;  %v6305_v36 = vmul.f32 %v6290_v32, %v6188_v6  ;;  %v1215_v6 = vsel %vm811_vm4, %v1053_v12, 0.0  ;;  %v1054_v21 = vmul.f32 %v6035_v15, %v6035_v15 }
 0x1a1   :  { %5285 = vrsqrt.f32 %v1590_v31  ;;  %v1591_v25 = vadd.f32 1e-05, %v1527_v0  ;;  %v1336_v45 = vmul.f32 0.125, %v1106_v27  ;;  %960 = vadd.xlane.f32.xlu1 %v959_v34  ;;  %v1401_v59 = vmul.f32 %v6298_v8, %v6298_v8  ;;  %v692_v31 = vld [vmem:[%s9044_s2 + $0x48] sm:$0xff] }
 0x1a2   :  { %v1109_v58 = vpop.xlane.xlu1 %1108  ;;  %v962_v34 = vsel %vm811_vm4, %v6035_v15, 0.0 }
 0x1a3   :  { %v5282_v37 = vpop.eup %5281  ;;  %5287 = vrsqrt.f32 %v1591_v25  ;;  %v1464_v18 = vsub.f32 %v1336_v45, %v1400_v35  ;;  %v1337_v61 = vmul.f32 0.125, %v1109_v58  ;;  %1213 = vadd.xlane.f32.xlu0 %v1212_v60  ;;  %v965_v58 = vsel %vm811_vm4, %v6033_v13, 0.0 }
 0x1a4   :  { %v6315_v0 = vpop.xlane.xlu0 %855  ;;  %v6322_v27 = vmul.f32 %v5282_v37, %v691_v47  ;;  %v1055_v47 = vmul.f32 %v6033_v13, %v6033_v13 }
 0x1a5   :  { %v5284_v25 = vpop.eup %5283  ;;  %v1528_v35 = vmax.f32 %v1464_v18, 0.0  ;;  %v1465_v45 = vsub.f32 %v1337_v61, %v1401_v59  ;;  %1216 = vadd.xlane.f32.xlu1 %v1215_v6  ;;  %v1218_v59 = vsel %vm811_vm4, %v1054_v21, 0.0  ;;  %v694_v21 = vld [vmem:[%s9044_s2 + $0x58] sm:$0xff] }
 0x1a6   :  { %v6324_v60 = vpop.xlane.xlu1 %858  ;;  %v6328_v57 = vmul.f32 %v5284_v25, %v692_v31  ;;  %v6332_v12 = vmul.f32 %v6322_v27, %v6214_v44  ;;  %v693_v44 = vld [vmem:[%s9044_s2 + $0x50] sm:$0xff] }
 0x1a7   :  { %v1592_v28 = vadd.f32 1e-05, %v1528_v35  ;;  %v1529_v26 = vmax.f32 %v1465_v45, 0.0  ;;  %963 = vadd.xlane.f32.xlu0 %v962_v34 }
 0x1a8   :  { %v6336_v37 = vpop.xlane.xlu0 %1111  ;;  %v6341_v18 = vmul.f32 %v6328_v57, %v6226_v50  ;;  %v1221_v50 = vsel %vm811_vm4, %v1055_v47, 0.0 }
 0x1a9   :  { %5289 = vrsqrt.f32 %v1592_v28  ;;  %v1593_v61 = vadd.f32 1e-05, %v1529_v26  ;;  %966 = vadd.xlane.f32.xlu1 %v965_v58  ;;  %v1056_v26 = vmul.f32 %v6046_v40, %v6046_v40  ;;  %v968_v28 = vsel %vm811_vm4, %v6046_v40, 0.0 }
 0x1aa   :  { %v6346_v31 = vpop.xlane.xlu1 %1114  ;;  %v971_v58 = vsel %vm811_vm4, %v6042_v33, 0.0 }
 0x1ab   :  { %v5286_v6 = vpop.eup %5285  ;;  %5291 = vrsqrt.f32 %v1593_v61  ;;  %1219 = vadd.xlane.f32.xlu0 %v1218_v59  ;;  %v1057_v61 = vmul.f32 %v6042_v33, %v6042_v33 }
 0x1ac   :  { %v6351_v34 = vpop.xlane.xlu0 %861  ;;  %v6358_v25 = vmul.f32 %v5286_v6, %v693_v44  ;;  %v1224_v44 = vsel %vm811_vm4, %v1056_v26, 0.0 }
 0x1ad   :  { %v5288_v35 = vpop.eup %5287  ;;  %1222 = vadd.xlane.f32.xlu1 %v1221_v50  ;;  %v1227_v26 = vsel %vm811_vm4, %v1057_v61, 0.0 }
 0x1ae   :  { %v6360_v45 = vpop.xlane.xlu1 %864  ;;  %v6364_v59 = vmul.f32 %v5288_v35, %v694_v21  ;;  %v6368_v47 = vmul.f32 %v6358_v25, %v6250_v46  ;;  %v695_v21 = vld [vmem:[%s9044_s2 + $0x60] sm:$0xff] }
 0x1af   :  { %969 = vadd.xlane.f32.xlu0 %v968_v28  ;;  %v696_v28 = vld [vmem:[%s9044_s2 + $0x68] sm:$0xff] }
 0x1b0   :  { %v6372_v40 = vpop.xlane.xlu0 %1117  ;;  %v6377_v6 = vmul.f32 %v6364_v59, %v6262_v23  ;;  %v1058_v23 = vmul.f32 %v6053_v63, %v6053_v63 }
 0x1b1   :  { %972 = vadd.xlane.f32.xlu1 %v971_v58  ;;  %v974_v58 = vsel %vm811_vm4, %v6053_v63, 0.0 }
 0x1b2   :  { %v6382_v50 = vpop.xlane.xlu1 %1120 }
 0x1b3   :  { %v5290_v46 = vpop.eup %5289  ;;  %1225 = vadd.xlane.f32.xlu0 %v1224_v44  ;;  %v977_v44 = vsel %vm811_vm4, %v6051_v55, 0.0 }
 0x1b4   :  { %v6387_v35 = vpop.xlane.xlu0 %867  ;;  %v6394_v33 = vmul.f32 %v5290_v46, %v695_v21  ;;  %v1230_v21 = vsel %vm811_vm4, %v1058_v23, 0.0 }
 0x1b5   :  { %v5292_v15 = vpop.eup %5291  ;;  %1228 = vadd.xlane.f32.xlu1 %v1227_v26 }
 0x1b6   :  { %v6396_v13 = vpop.xlane.xlu1 %870  ;;  %v6400_v22 = vmul.f32 %v5292_v15, %v696_v28  ;;  %v6404_v61 = vmul.f32 %v6394_v33, %v6286_v30  ;;  %v1233_v30 = vsel %vm811_vm4, %v1059_v20, 0.0  ;;  %v1060_v28 = vmul.f32 %v6064_v39, %v6064_v39 }
 0x1b7   :  { %975 = vadd.xlane.f32.xlu0 %v974_v58  ;;  %v980_v58 = vsel %vm811_vm4, %v6064_v39, 0.0  ;;  %v1062_v39 = vmul.f32 %v6071_v10, %v6071_v10 }
 0x1b8   :  { %v6408_v63 = vpop.xlane.xlu0 %1123  ;;  %v6413_v46 = vmul.f32 %v6400_v22, %v6298_v8  ;;  %v983_v8 = vsel %vm811_vm4, %v6060_v24, 0.0  ;;  %v1236_v20 = vsel %vm811_vm4, %v1060_v28, 0.0  ;;  %v989_v28 = vsel %vm811_vm4, %v6069_v53, 0.0 }
 0x1b9   :  { %978 = vadd.xlane.f32.xlu1 %v977_v44  ;;  %v1061_v44 = vmul.f32 %v6060_v24, %v6060_v24 }
 0x1ba   :  { %v6415_v26 = vpop.xlane.xlu1 %1126 }
 0x1bb   :  { %1231 = vadd.xlane.f32.xlu0 %v1230_v21 }
 0x1bc   :  { %v6417_v15 = vpop.xlane.xlu0 %873 }
 0x1bd   :  { %1234 = vadd.xlane.f32.xlu1 %v1233_v30  ;;  %v1239_v30 = vsel %vm811_vm4, %v1061_v44, 0.0  ;;  %v1242_v44 = vsel %vm811_vm4, %v1062_v39, 0.0  ;;  %v995_v39 = vsel %vm811_vm4, %v6078_v7, 0.0 }
 0x1be   :  { %v6424_v23 = vpop.xlane.xlu1 %876 }
 0x1bf   :  { %981 = vadd.xlane.f32.xlu0 %v980_v58  ;;  %v986_v58 = vsel %vm811_vm4, %v6071_v10, 0.0  ;;  %v1064_v10 = vmul.f32 %v6082_v29, %v6082_v29 }
 0x1c0   :  { %v6430_v21 = vpop.xlane.xlu0 %1129 }
 0x1c1   :  { %984 = vadd.xlane.f32.xlu1 %v983_v8  ;;  %v1063_v8 = vmul.f32 %v6069_v53, %v6069_v53 }
 0x1c2   :  { %v6433_v55 = vpop.xlane.xlu1 %1132 }
 0x1c3   :  { %1237 = vadd.xlane.f32.xlu0 %v1236_v20 }
 0x1c4   :  { %v6435_v17 = vpop.xlane.xlu0 %879 }
 0x1c5   :  { %1240 = vadd.xlane.f32.xlu1 %v1239_v30  ;;  %v1245_v30 = vsel %vm811_vm4, %v1063_v8, 0.0  ;;  %v1248_v8 = vsel %vm811_vm4, %v1064_v10, 0.0  ;;  %v1001_v10 = vsel %vm811_vm4, %v6087_v49, 0.0 }
 0x1c6   :  { %v6442_v24 = vpop.xlane.xlu1 %882 }
 0x1c7   :  { %987 = vadd.xlane.f32.xlu0 %v986_v58  ;;  %v992_v58 = vsel %vm811_vm4, %v6082_v29, 0.0  ;;  %v1066_v29 = vmul.f32 %v6089_v2, %v6089_v2 }
 0x1c8   :  { %v6448_v20 = vpop.xlane.xlu0 %1135 }
 0x1c9   :  { %990 = vadd.xlane.f32.xlu1 %v989_v28  ;;  %v1065_v28 = vmul.f32 %v6078_v7, %v6078_v7 }
 0x1ca   :  { %v6451_v14 = vpop.xlane.xlu1 %1138 }
 0x1cb   :  { %1243 = vadd.xlane.f32.xlu0 %v1242_v44 }
 0x1cc   :  { %v6453_v11 = vpop.xlane.xlu0 %885 }
 0x1cd   :  { %1246 = vadd.xlane.f32.xlu1 %v1245_v30  ;;  %v1251_v30 = vsel %vm811_vm4, %v1065_v28, 0.0  ;;  %v1254_v28 = vsel %vm811_vm4, %v1066_v29, 0.0 }
 0x1ce   :  { %v6460_v53 = vpop.xlane.xlu1 %888 }
 0x1cf   :  { %993 = vadd.xlane.f32.xlu0 %v992_v58  ;;  %v998_v58 = vsel %vm811_vm4, %v6089_v2, 0.0 }
 0x1d0   :  { %v6466_v44 = vpop.xlane.xlu0 %1141 }
 0x1d1   :  { %9195 = vst [vmem:[#allocation70_spill] sm:$0xff] %v6466_v44  ;;  %996 = vadd.xlane.f32.xlu1 %v995_v39  ;;  %v1067_v39 = vmul.f32 %v6087_v49, %v6087_v49 }
 0x1d2   :  { %v6469_v9 = vpop.xlane.xlu1 %1144 }
 0x1d3   :  { %1249 = vadd.xlane.f32.xlu0 %v1248_v8 }
 0x1d4   :  { %v6471_v5 = vpop.xlane.xlu0 %891 }
 0x1d5   :  { %9196 = vst [vmem:[#allocation71_spill] sm:$0xff] %v6471_v5  ;;  %1252 = vadd.xlane.f32.xlu1 %v1251_v30  ;;  %v1257_v30 = vsel %vm811_vm4, %v1067_v39, 0.0 }
 0x1d6   :  { %v6478_v7 = vpop.xlane.xlu1 %894 }
 0x1d7   :  { %999 = vadd.xlane.f32.xlu0 %v998_v58 }
 0x1d8   :  { %v6484_v8 = vpop.xlane.xlu0 %1147 }
 0x1d9   :  { %9197 = vst [vmem:[#allocation72_spill] sm:$0xff] %v6484_v8  ;;  %1002 = vadd.xlane.f32.xlu1 %v1001_v10 }
 0x1da   :  { %v6487_v4 = vpop.xlane.xlu1 %1150 }
 0x1db   :  { %1255 = vadd.xlane.f32.xlu0 %v1254_v28 }
 0x1dc   :  { %v6489_v5 = vpop.xlane.xlu0 %897 }
 0x1dd   :  { %9198 = vst [vmem:[#allocation73_spill] sm:$0xff] %v6489_v5  ;;  %1258 = vadd.xlane.f32.xlu1 %v1257_v30  ;;  %v748_v30 = vld [vmem:[%s9045_s3 + $0x8] sm:$0xff] }
 0x1de   :  { %v6492_v2 = vpop.xlane.xlu1 %900 }
 0x1e0   :  { %v6494_v44 = vpop.xlane.xlu0 %1153 }
 0x1e1   :  { %9199 = vst [vmem:[#allocation74_spill] sm:$0xff] %v6494_v44 }
 0x1e2   :  { %v6496_v58 = vpop.xlane.xlu1 %1156 }
 0x1e4   :  { %v6498_v49 = vpop.xlane.xlu0 %903 }
 0x1e5   :  { %9200 = vst [vmem:[#allocation75_spill] sm:$0xff] %v6498_v49 }
 0x1e6   :  { %v6500_v8 = vpop.xlane.xlu1 %906 }
 0x1e8   :  { %v6502_v29 = vpop.xlane.xlu0 %1159 }
 0x1e9   :  { %9201 = vst [vmem:[#allocation76_spill] sm:$0xff] %v6502_v29  ;;  %v1837_v29 = vsub.f32 %v748_v30, %v6177_v52 }
 0x1ea   :  { %v6504_v10 = vpop.xlane.xlu1 %1162 }
 0x1ec   :  { %v6506_v28 = vpop.xlane.xlu0 %909 }
 0x1ed   :  { %9202 = vst [vmem:[#allocation77_spill] sm:$0xff] %v6506_v28 }
 0x1ee   :  { %v6508_v5 = vpop.xlane.xlu1 %912  ;;  %1907 = vperm.xlu1 %5263, %v6166_v43   ;;  %v750_v43 = vld [vmem:[%s9045_s3 + $0x18] sm:$0xff] }
 0x1f0   :  { %v6511_v39 = vpop.xlane.xlu0 %1165 }
 0x1f1   :  { %9203 = vst [vmem:[#allocation78_spill] sm:$0xff] %v6511_v39  ;;  %1902 = vperm.xlu0 %5264, %v6193_v62   ;;  %v747_v39 = vld [vmem:[%s9045_s3] sm:$0xff]  ;;  %v1839_v62 = vsub.f32 %v750_v43, %v6233_v16 }
 0x1f2   :  { %v6517_v49 = vpop.xlane.xlu1 %1168  ;;  %1917 = vperm.xlu1 %5263, %v6218_v42   ;;  %v6534_v42 = vmul.f32 0.125, %v6324_v60  ;;  %v1836_v30 = vsub.f32 %v747_v39, %v6200_v3  ;;  %v6554_v39 = vmul.f32 0.125, %v6360_v45 }
 0x1f3   :  { %9204 = vst [vmem:[#allocation79_spill] sm:$0xff] %v6517_v49 }
 0x1f4   :  { %v6521_v44 = vpop.xlane.xlu0 %915  ;;  %v1403_v16 = vmul.f32 %v6534_v42, %v6534_v42 }
 0x1f5   :  { %9205 = vst [vmem:[#allocation80_spill] sm:$0xff] %v6521_v44  ;;  %2291 = vperm.xlu0 %5264, %v1837_v29   ;;  %v752_v29 = vld [vmem:[%s9045_s3 + $0x28] sm:$0xff]  ;;  %v1339_v44 = vmul.f32 0.125, %v6346_v31 }
 0x1f6   :  { %v6529_v28 = vpop.xlane.xlu1 %918  ;;  %1912 = vperm.xlu1 %5263, %v6212_v54   ;;  %v1841_v54 = vsub.f32 %v752_v29, %v6269_v41  ;;  %v754_v41 = vld [vmem:[%s9045_s3 + $0x38] sm:$0xff] }
 0x1f7   :  { %v1467_v43 = vsub.f32 %v1339_v44, %v1403_v16  ;;  %v9116_v44 = vmov 0.0|0.0   ;;  %v1843_v29 = vsub.f32 %v754_v41, %v6305_v36  ;;  %v756_v36 = vld [vmem:[%s9045_s3 + $0x48] sm:$0xff] }
 0x1f8   :  { %v6536_v52 = vpop.xlane.xlu0 %1171  ;;  %5090 = vmatprep.subr.bf16.mxu1 %v9116_v44  ;;  %5138 = vmatprep.subr.bf16.mxu0 %v9116_v44 }
 0x1f9   :  { %2301 = vperm.xlu0 %5264, %v1839_v62   ;;  %v749_v62 = vld [vmem:[%s9045_s3 + $0x10] sm:$0xff] }
 0x1fa   :  { %v6543_v49 = vpop.xlane.xlu1 %1174  ;;  %2286 = vperm.xlu1 %5263, %v1836_v30   ;;  %v1531_v30 = vmax.f32 %v1467_v43, 0.0  ;;  %v1838_v16 = vsub.f32 %v749_v62, %v6222_v51  ;;  %v1343_v51 = vmul.f32 0.125, %v6415_v26 }
 0x1fc   :  { %v6548_v60 = vpop.xlane.xlu0 %921 }
 0x1fd   :  { %9206 = vst [vmem:[#allocation81_spill] sm:$0xff] %v6548_v60  ;;  %2311 = vperm.xlu0 %5264, %v1841_v54  }
 0x1fe   :  { %v6550_v3 = vpop.xlane.xlu1 %924  ;;  %1927 = vperm.xlu1 %5263, %v6254_v38   ;;  %v1341_v38 = vmul.f32 0.125, %v6382_v50  ;;  %v6580_v50 = vmul.f32 0.125, %v6396_v13  ;;  %v1845_v13 = vsub.f32 %v756_v36, %v6341_v18  ;;  %v6610_v18 = vmul.f32 0.125, %v6424_v23  ;;  %v758_v36 = vld [vmem:[%s9045_s3 + $0x58] sm:$0xff] }
 0x1ff   :  { %v6623_v23 = vmul.f32 0.125, %v6351_v34 }
 0x200   :  { %v6556_v31 = vpop.xlane.xlu0 %1177 }
 0x201   :  { %9207 = vst [vmem:[#allocation82_spill] sm:$0xff] %v6556_v31  ;;  %1947 = vperm.xlu0 %5264, %v6328_v57   ;;  %v1405_v57 = vmul.f32 %v6554_v39, %v6554_v39  ;;  %v1595_v31 = vadd.f32 1e-05, %v1531_v30  ;;  %v6593_v30 = vmul.f32 0.125, %v6315_v0  ;;  %v1338_v0 = vmul.f32 0.125, %v6336_v37 }
 0x202   :  { %v6567_v45 = vpop.xlane.xlu1 %1180  ;;  %1922 = vperm.xlu1 %5263, %v6248_v56  }
 0x203   :  { %v1469_v43 = vsub.f32 %v1341_v38, %v1405_v57  ;;  %5293 = vrsqrt.f32 %v1595_v31  ;;  %v1407_v38 = vmul.f32 %v6580_v50, %v6580_v50 }
 0x204   :  { %v6574_v54 = vpop.xlane.xlu0 %927 }
 0x205   :  { %2321 = vperm.xlu0 %5264, %v1843_v29   ;;  %v1533_v41 = vmax.f32 %v1469_v43, 0.0  ;;  %v1471_v31 = vsub.f32 %v1343_v51, %v1407_v38  ;;  %v1409_v38 = vmul.f32 %v6610_v18, %v6610_v18 }
 0x206   :  { %v6577_v60 = vpop.xlane.xlu1 %930  ;;  %2296 = vperm.xlu1 %5263, %v1838_v16  }
 0x207   :  { %v1597_v26 = vadd.f32 1e-05, %v1533_v41  ;;  %v1345_v41 = vmul.f32 0.125, %v6433_v55  ;;  %v753_v55 = vld [vmem:[%s9045_s3 + $0x30] sm:$0xff] }
 0x208   :  { %v6582_v56 = vpop.xlane.xlu0 %1183  ;;  %v1842_v44 = vsub.f32 %v753_v55, %v6294_v19 }
 0x209   :  { %1957 = vperm.xlu0 %5264, %v6364_v59   ;;  %v751_v59 = vld [vmem:[%s9045_s3 + $0x20] sm:$0xff]  ;;  %5295 = vrsqrt.f32 %v1597_v26  ;;  %v1473_v34 = vsub.f32 %v1345_v41, %v1409_v38 }
 0x20a   :  { %v6589_v62 = vpop.xlane.xlu1 %1186  ;;  %1937 = vperm.xlu1 %5263, %v6290_v32   ;;  %v1402_v32 = vmul.f32 %v6593_v30, %v6593_v30  ;;  %v1840_v43 = vsub.f32 %v751_v59, %v6258_v1 }
 0x20b   :  { %v1537_v41 = vmax.f32 %v1473_v34, 0.0 }
 0x20c   :  { %v6598_v29 = vpop.xlane.xlu0 %933  ;;  %v1466_v37 = vsub.f32 %v1338_v0, %v1402_v32  ;;  %v1404_v32 = vmul.f32 %v6623_v23, %v6623_v23  ;;  %v1340_v0 = vmul.f32 0.125, %v6372_v40  ;;  %v1347_v40 = vmul.f32 0.125, %v6451_v14 }
 0x20d   :  { %2331 = vperm.xlu0 %5264, %v1845_v13   ;;  %v1847_v13 = vsub.f32 %v758_v36, %v6377_v6  ;;  %v5294_v1 = vpop.eup %5293  ;;  %v6643_v36 = vmul.f32 0.125, %v6442_v24 }
 0x20e   :  { %v6603_v57 = vpop.xlane.xlu1 %936  ;;  %1932 = vperm.xlu1 %5263, %v6284_v48   ;;  %v1535_v48 = vmax.f32 %v1471_v31, 0.0  ;;  %v1530_v6 = vmax.f32 %v1466_v37, 0.0 }
 0x210   :  { %v6612_v16 = vpop.xlane.xlu0 %1189  ;;  %v1599_v26 = vadd.f32 1e-05, %v1535_v48  ;;  %v760_v48 = vld [vmem:[%s9045_s3 + $0x68] sm:$0xff]  ;;  %v1594_v24 = vadd.f32 1e-05, %v1530_v6 }
 0x211   :  { %1967 = vperm.xlu0 %5264, %v6400_v22   ;;  %v698_v22 = vld [vmem:[%s9044_s2 + $0x78] sm:$0xff]  ;;  %v1849_v38 = vsub.f32 %v760_v48, %v6413_v46  ;;  %v755_v46 = vld [vmem:[%s9045_s3 + $0x40] sm:$0xff] }
 0x212   :  { %v6620_v51 = vpop.xlane.xlu1 %1192  ;;  %2306 = vperm.xlu1 %5263, %v1840_v43   ;;  %v1723_v43 = vmul.f32 %v5294_v1, %v698_v22  ;;  %5297 = vrsqrt.f32 %v1599_v26  ;;  %v1468_v1 = vsub.f32 %v1340_v0, %v1404_v32  ;;  %v1411_v22 = vmul.f32 %v6643_v36, %v6643_v36 }
 0x213   :  { %v5296_v19 = vpop.eup %5295  ;;  %v1342_v26 = vmul.f32 0.125, %v6408_v63  ;;  %5299 = vrsqrt.f32 %v1594_v24 }
 0x214   :  { %v6628_v59 = vpop.xlane.xlu0 %939  ;;  %v1475_v34 = vsub.f32 %v1347_v40, %v1411_v22  ;;  %v1532_v32 = vmax.f32 %v1468_v1, 0.0  ;;  %v1787_v48 = vmul.f32 %v1723_v43, %v6534_v42  ;;  %v1349_v42 = vmul.f32 0.125, %v6469_v9  ;;  %v757_v9 = vld [vmem:[%s9045_s3 + $0x50] sm:$0xff] }
 0x215   :  { %2341 = vperm.xlu0 %5264, %v1847_v13  }
 0x216   :  { %v6636_v31 = vpop.xlane.xlu1 %942  ;;  %1942 = vperm.xlu1 %5263, %v6322_v27   ;;  %v6652_v27 = vmul.f32 0.125, %v6387_v35  ;;  %v700_v35 = vld [vmem:[%s9044_s2 + $0x88] sm:$0xff]  ;;  %v1539_v24 = vmax.f32 %v1475_v34, 0.0 }
 0x217   :  { %v1725_v0 = vmul.f32 %v5296_v19, %v700_v35 }
 0x218   :  { %v6645_v13 = vpop.xlane.xlu0 %1195  ;;  %v1406_v14 = vmul.f32 %v6652_v27, %v6652_v27 }
 0x219   :  { %1977 = vperm.xlu0 %5264, %v1723_v43  }
 0x21a   :  { %v6655_v37 = vpop.xlane.xlu1 %1198  ;;  %2316 = vperm.xlu1 %5263, %v1842_v44   ;;  %v1601_v44 = vadd.f32 1e-05, %v1537_v41  ;;  %v762_v41 = vld [vmem:[%s9045_s3 + $0x78] sm:$0xff]  ;;  %v1470_v40 = vsub.f32 %v1342_v26, %v1406_v14  ;;  %v1344_v26 = vmul.f32 0.125, %v6430_v21  ;;  %v764_v21 = vld [vmem:[%s9045_s3 + $0x88] sm:$0xff] }
 0x21b   :  { %v1851_v1 = vsub.f32 %v762_v41, %v1787_v48  ;;  %v1789_v48 = vmul.f32 %v1725_v0, %v6554_v39 }
 0x21c   :  { %v6660_v55 = vpop.xlane.xlu0 %945  ;;  %5301 = vrsqrt.f32 %v1601_v44  ;;  %v5298_v19 = vpop.eup %5297  ;;  %v1534_v35 = vmax.f32 %v1470_v40, 0.0  ;;  %v1846_v40 = vsub.f32 %v757_v9, %v6368_v47  ;;  %v6723_v47 = vmul.f32 0.125, %v6435_v17  ;;  %v704_v9 = vld [vmem:[%s9044_s2 + $0xa8] sm:$0xff] }
 0x21d   :  { %9208 = vst [vmem:[#allocation83_spill] sm:$0xff] %v6660_v55  ;;  %2351 = vperm.xlu0 %5264, %v1849_v38   ;;  %v6676_v55 = vmul.f32 0.125, %v6460_v53  ;;  %v1844_v38 = vsub.f32 %v755_v46, %v6332_v12  ;;  %v1596_v53 = vadd.f32 1e-05, %v1532_v32  ;;  %v1603_v46 = vadd.f32 1e-05, %v1539_v24  ;;  %v5300_v24 = vpop.eup %5299 }
 0x21e   :  { %v6671_v6 = vpop.xlane.xlu1 %948  ;;  %1952 = vperm.xlu1 %5263, %v6358_v25   ;;  %v6685_v25 = vmul.f32 0.125, %v6417_v15  ;;  %v702_v15 = vld [vmem:[%s9044_s2 + $0x98] sm:$0xff] }
 0x21f   :  { %v1413_v12 = vmul.f32 %v6676_v55, %v6676_v55  ;;  %5303 = vrsqrt.f32 %v1596_v53  ;;  %v1727_v32 = vmul.f32 %v5298_v19, %v702_v15 }
 0x220   :  { %v6678_v63 = vpop.xlane.xlu0 %1201  ;;  %v1408_v14 = vmul.f32 %v6685_v25, %v6685_v25  ;;  %5305 = vrsqrt.f32 %v1603_v46 }
 0x221   :  { %1987 = vperm.xlu0 %5264, %v1725_v0   ;;  %v1477_v44 = vsub.f32 %v1349_v42, %v1413_v12  ;;  %v1598_v42 = vadd.f32 1e-05, %v1534_v35 }
 0x222   :  { %v6688_v43 = vpop.xlane.xlu1 %1204  ;;  %2326 = vperm.xlu1 %5263, %v1844_v38   ;;  %v6708_v38 = vmul.f32 0.125, %v6478_v7  ;;  %v1472_v53 = vsub.f32 %v1344_v26, %v1408_v14  ;;  %v1351_v7 = vmul.f32 0.125, %v6487_v4  ;;  %v759_v4 = vld [vmem:[%s9045_s3 + $0x60] sm:$0xff] }
 0x223   :  { %v1541_v39 = vmax.f32 %v1477_v44, 0.0  ;;  %5307 = vrsqrt.f32 %v1598_v42  ;;  %v1410_v44 = vmul.f32 %v6723_v47, %v6723_v47  ;;  %v1848_v42 = vsub.f32 %v759_v4, %v6404_v61 }
 0x224   :  { %v6692_v22 = vpop.xlane.xlu0 %951  ;;  %v1415_v12 = vmul.f32 %v6708_v38, %v6708_v38  ;;  %v1536_v17 = vmax.f32 %v1472_v53, 0.0  ;;  %v766_v53 = vld [vmem:[%s9045_s3 + $0x98] sm:$0xff] }
 0x225   :  { %2361 = vperm.xlu0 %5264, %v1851_v1   ;;  %v1853_v1 = vsub.f32 %v764_v21, %v1789_v48  ;;  %v1605_v14 = vadd.f32 1e-05, %v1541_v39  ;;  %v1346_v48 = vmul.f32 0.125, %v6448_v20  ;;  %v1791_v21 = vmul.f32 %v1727_v32, %v6580_v50  ;;  %v699_v20 = vld [vmem:[%s9044_s2 + $0x80] sm:$0xff] }
 0x226   :  { %v6703_v34 = vpop.xlane.xlu1 %954  ;;  %1962 = vperm.xlu1 %5263, %v6394_v33   ;;  %v697_v33 = vld [vmem:[%s9044_s2 + $0x70] sm:$0xff]  ;;  %v5302_v19 = vpop.eup %5301  ;;  %v1479_v26 = vsub.f32 %v1351_v7, %v1415_v12  ;;  %v6751_v7 = vmul.f32 0.125, %v6453_v11  ;;  %v1353_v50 = vmul.f32 0.125, %v6496_v58  ;;  %v1600_v61 = vadd.f32 1e-05, %v1536_v17 }
 0x227   :  { %v1722_v35 = vmul.f32 %v5300_v24, %v697_v33  ;;  %v6742_v24 = vmul.f32 0.125, %v6492_v2  ;;  %5309 = vrsqrt.f32 %v1605_v14  ;;  %v706_v14 = vld [vmem:[%s9044_s2 + $0xb8] sm:$0xff] }
 0x228   :  { %v6710_v41 = vpop.xlane.xlu0 %1207  ;;  %v1543_v2 = vmax.f32 %v1479_v26, 0.0  ;;  %v1412_v58 = vmul.f32 %v6751_v7, %v6751_v7  ;;  %5311 = vrsqrt.f32 %v1600_v61  ;;  %v701_v61 = vld [vmem:[%s9044_s2 + $0x90] sm:$0xff] }
 0x229   :  { %1997 = vperm.xlu0 %5264, %v1727_v32   ;;  %v5304_v39 = vpop.eup %5303  ;;  %v1417_v11 = vmul.f32 %v6742_v24, %v6742_v24  ;;  %v1786_v26 = vmul.f32 %v1722_v35, %v6593_v30 }
 0x22a   :  { %v6720_v0 = vpop.xlane.xlu1 %1210  ;;  %2336 = vperm.xlu1 %5263, %v1846_v40   ;;  %v1729_v40 = vmul.f32 %v5302_v19, %v704_v9  ;;  %v1855_v19 = vsub.f32 %v766_v53, %v1791_v21  ;;  %v5306_v12 = vpop.eup %5305  ;;  %v1724_v4 = vmul.f32 %v5304_v39, %v699_v20 }
 0x22b   :  { %v1481_v21 = vsub.f32 %v1353_v50, %v1417_v11  ;;  %v1731_v20 = vmul.f32 %v5306_v12, %v706_v14 }
 0x22c   :  { %v6727_v15 = vpop.xlane.xlu0 %957  ;;  %v1793_v30 = vmul.f32 %v1729_v40, %v6610_v18 }
 0x22d   :  { %2371 = vperm.xlu0 %5264, %v1853_v1   ;;  %v1474_v1 = vsub.f32 %v1346_v48, %v1410_v44  ;;  %v761_v44 = vld [vmem:[%s9045_s3 + $0x70] sm:$0xff]  ;;  %v1607_v48 = vadd.f32 1e-05, %v1543_v2  ;;  %v768_v2 = vld [vmem:[%s9045_s3 + $0xa8] sm:$0xff]  ;;  %v1545_v18 = vmax.f32 %v1481_v21, 0.0 }
 0x22e   :  { %v6735_v46 = vpop.xlane.xlu1 %960  ;;  %1972 = vperm.xlu1 %5263, %v1722_v35   ;;  %v5308_v35 = vpop.eup %5307  ;;  %v1857_v14 = vsub.f32 %v768_v2, %v1793_v30  ;;  %v9214_v30 = vld [vmem:[#allocation72_spill] sm:$0xff] }
 0x22f   :  { %v1538_v39 = vmax.f32 %v1474_v1, 0.0  ;;  %v9212_v1 = vld [vmem:[#allocation71_spill] sm:$0xff]  ;;  %5313 = vrsqrt.f32 %v1607_v48  ;;  %v1788_v48 = vmul.f32 %v1724_v4, %v6623_v23  ;;  %v1609_v2 = vadd.f32 1e-05, %v1545_v18 }
 0x230   :  { %v6744_v33 = vpop.xlane.xlu0 %1213  ;;  %v6788_v12 = vmul.f32 0.125, %v9212_v1  ;;  %v708_v1 = vld [vmem:[%s9044_s2 + $0xc8] sm:$0xff]  ;;  %v1795_v23 = vmul.f32 %v1731_v20, %v6643_v36 }
 0x231   :  { %2007 = vperm.xlu0 %5264, %v1729_v40   ;;  %v1602_v11 = vadd.f32 1e-05, %v1538_v39 }
 0x232   :  { %v6757_v32 = vpop.xlane.xlu1 %1216  ;;  %2346 = vperm.xlu1 %5263, %v1848_v42   ;;  %v9210_v42 = vld [vmem:[#allocation70_spill] sm:$0xff]  ;;  %v1414_v39 = vmul.f32 %v6788_v12, %v6788_v12 }
 0x233   :  { %v1348_v17 = vmul.f32 0.125, %v9210_v42  ;;  %5315 = vrsqrt.f32 %v1602_v11 }
 0x234   :  { %v6761_v9 = vpop.xlane.xlu0 %963  ;;  %5317 = vrsqrt.f32 %v1609_v2 }
 0x235   :  { %9209 = vst [vmem:[#allocation84_spill] sm:$0xff] %v6761_v9  ;;  %2381 = vperm.xlu0 %5264, %v1855_v19   ;;  %v6777_v9 = vmul.f32 0.125, %v6500_v8  ;;  %v1850_v19 = vsub.f32 %v761_v44, %v1786_v26  ;;  %v1476_v50 = vsub.f32 %v1348_v17, %v1412_v58  ;;  %v1355_v8 = vmul.f32 0.125, %v6504_v10  ;;  %v5310_v26 = vpop.eup %5309  ;;  %v763_v10 = vld [vmem:[%s9045_s3 + $0x80] sm:$0xff] }
 0x236   :  { %v6773_v53 = vpop.xlane.xlu1 %966  ;;  %1982 = vperm.xlu1 %5263, %v1724_v4   ;;  %v1726_v44 = vmul.f32 %v5308_v35, %v701_v61  ;;  %v1733_v61 = vmul.f32 %v5310_v26, %v708_v1  ;;  %v6811_v4 = vmul.f32 0.125, %v6508_v5 }
 0x237   :  { %v1419_v58 = vmul.f32 %v6777_v9, %v6777_v9  ;;  %v1540_v21 = vmax.f32 %v1476_v50, 0.0 }
 0x238   :  { %v6779_v42 = vpop.xlane.xlu0 %1219 }
 0x239   :  { %9211 = vst [vmem:[#allocation70_spill] sm:$0xff] %v6779_v42  ;;  %2017 = vperm.xlu0 %5264, %v1731_v20   ;;  %v770_v42 = vld [vmem:[%s9045_s3 + $0xb8] sm:$0xff]  ;;  %v1604_v18 = vadd.f32 1e-05, %v1540_v21  ;;  %v9217_v20 = vld [vmem:[#allocation79_spill] sm:$0xff]  ;;  %v1421_v21 = vmul.f32 %v6811_v4, %v6811_v4 }
 0x23a   :  { %v6791_v40 = vpop.xlane.xlu1 %1222  ;;  %2356 = vperm.xlu1 %5263, %v1850_v19   ;;  %v1350_v19 = vmul.f32 0.125, %v9214_v30  ;;  %v5312_v30 = vpop.eup %5311  ;;  %v1357_v5 = vmul.f32 0.125, %v9217_v20 }
 0x23b   :  { %5319 = vrsqrt.f32 %v1604_v18 }
 0x23c   :  { %v6795_v17 = vpop.xlane.xlu0 %969  ;;  %v1478_v11 = vsub.f32 %v1350_v19, %v1414_v39  ;;  %v1790_v39 = vmul.f32 %v1726_v44, %v6652_v27  ;;  %v765_v19 = vld [vmem:[%s9045_s3 + $0x90] sm:$0xff]  ;;  %v1797_v27 = vmul.f32 %v1733_v61, %v6676_v55 }
 0x23d   :  { %9213 = vst [vmem:[#allocation71_spill] sm:$0xff] %v6795_v17  ;;  %2391 = vperm.xlu0 %5264, %v1857_v14   ;;  %v1483_v17 = vsub.f32 %v1355_v8, %v1419_v58  ;;  %v1852_v14 = vsub.f32 %v763_v10, %v1788_v48  ;;  %v703_v8 = vld [vmem:[%s9044_s2 + $0xa0] sm:$0xff]  ;;  %v1859_v48 = vsub.f32 %v770_v42, %v1795_v23  ;;  %v5314_v10 = vpop.eup %5313 }
 0x23e   :  { %v6807_v35 = vpop.xlane.xlu1 %972  ;;  %1992 = vperm.xlu1 %5263, %v1726_v44   ;;  %v9218_v58 = vld [vmem:[#allocation73_spill] sm:$0xff]  ;;  %v1542_v42 = vmax.f32 %v1478_v11, 0.0  ;;  %v1485_v23 = vsub.f32 %v1357_v5, %v1421_v21  ;;  %v6845_v44 = vmul.f32 0.125, %v6529_v28  ;;  %v1854_v18 = vsub.f32 %v765_v19, %v1790_v39  ;;  %v772_v11 = vld [vmem:[%s9045_s3 + $0xc8] sm:$0xff] }
 0x23f   :  { %9215 = vst [vmem:[#allocation72_spill] sm:$0xff] %v6807_v35  ;;  %v1547_v36 = vmax.f32 %v1483_v17, 0.0  ;;  %v6825_v1 = vmul.f32 0.125, %v9218_v58  ;;  %v1728_v35 = vmul.f32 %v5312_v30, %v703_v8  ;;  %v710_v17 = vld [vmem:[%s9044_s2 + $0xd8] sm:$0xff]  ;;  %v9220_v8 = vld [vmem:[#allocation74_spill] sm:$0xff]  ;;  %v9222_v5 = vld [vmem:[#allocation75_spill] sm:$0xff]  ;;  %v1861_v19 = vsub.f32 %v772_v11, %v1797_v27 }
 0x240   :  { %v6813_v50 = vpop.xlane.xlu0 %1225  ;;  %v1352_v20 = vmul.f32 0.125, %v9220_v8  ;;  %v1735_v58 = vmul.f32 %v5314_v10, %v710_v17  ;;  %v6853_v21 = vmul.f32 0.125, %v9222_v5  ;;  %v705_v10 = vld [vmem:[%s9044_s2 + $0xb0] sm:$0xff]  ;;  %v1549_v55 = vmax.f32 %v1485_v23, 0.0 }
 0x241   :  { %9216 = vst [vmem:[#allocation85_spill] sm:$0xff] %v6813_v50  ;;  %2027 = vperm.xlu0 %5264, %v1733_v61   ;;  %v1611_v2 = vadd.f32 1e-05, %v1547_v36  ;;  %v1416_v30 = vmul.f32 %v6825_v1, %v6825_v1  ;;  %v5316_v36 = vpop.eup %5315  ;;  %v1359_v28 = vmul.f32 0.125, %v6543_v49  ;;  %v1606_v17 = vadd.f32 1e-05, %v1542_v42 }
 0x242   :  { %v6822_v26 = vpop.xlane.xlu1 %1228  ;;  %2366 = vperm.xlu1 %5263, %v1852_v14   ;;  %v5318_v8 = vpop.eup %5317  ;;  %v1423_v5 = vmul.f32 %v6845_v44, %v6845_v44  ;;  %v1792_v23 = vmul.f32 %v1728_v35, %v6685_v25  ;;  %v1418_v49 = vmul.f32 %v6853_v21, %v6853_v21  ;;  %v1799_v25 = vmul.f32 %v1735_v58, %v6708_v38  ;;  %v707_v38 = vld [vmem:[%s9044_s2 + $0xc0] sm:$0xff] }
 0x243   :  { %5321 = vrsqrt.f32 %v1611_v2  ;;  %v1480_v39 = vsub.f32 %v1352_v20, %v1416_v30  ;;  %v712_v2 = vld [vmem:[%s9044_s2 + $0xe8] sm:$0xff]  ;;  %v767_v30 = vld [vmem:[%s9045_s3 + $0xa0] sm:$0xff]  ;;  %v1613_v20 = vadd.f32 1e-05, %v1549_v55  ;;  %v774_v55 = vld [vmem:[%s9045_s3 + $0xd8] sm:$0xff] }
 0x244   :  { %v6829_v50 = vpop.xlane.xlu0 %975  ;;  %v1487_v27 = vsub.f32 %v1359_v28, %v1423_v5  ;;  %5323 = vrsqrt.f32 %v1606_v17  ;;  %v9227_v5 = vld [vmem:[#allocation77_spill] sm:$0xff] }
 0x245   :  { %9219 = vst [vmem:[#allocation79_spill] sm:$0xff] %v6829_v50  ;;  %2401 = vperm.xlu0 %5264, %v1859_v48   ;;  %v1730_v50 = vmul.f32 %v5316_v36, %v705_v10  ;;  %v1544_v36 = vmax.f32 %v1480_v39, 0.0  ;;  %v1737_v10 = vmul.f32 %v5318_v8, %v712_v2  ;;  %5325 = vrsqrt.f32 %v1613_v20 }
 0x246   :  { %v6838_v14 = vpop.xlane.xlu1 %978  ;;  %2002 = vperm.xlu1 %5263, %v1728_v35   ;;  %v5320_v35 = vpop.eup %5319  ;;  %v1863_v8 = vsub.f32 %v774_v55, %v1799_v25  ;;  %v769_v25 = vld [vmem:[%s9045_s3 + $0xb0] sm:$0xff] }
 0x247   :  { %v1608_v39 = vadd.f32 1e-05, %v1544_v36  ;;  %v1794_v20 = vmul.f32 %v1730_v50, %v6723_v47  ;;  %v1801_v47 = vmul.f32 %v1737_v10, %v6742_v24 }
 0x248   :  { %v6847_v48 = vpop.xlane.xlu0 %1231 }
 0x249   :  { %9221 = vst [vmem:[#allocation73_spill] sm:$0xff] %v6847_v48  ;;  %2037 = vperm.xlu0 %5264, %v1735_v58   ;;  %v1551_v58 = vmax.f32 %v1487_v27, 0.0  ;;  %5327 = vrsqrt.f32 %v1608_v39  ;;  %v709_v39 = vld [vmem:[%s9044_s2 + $0xd0] sm:$0xff] }
 0x24a   :  { %v6859_v61 = vpop.xlane.xlu1 %1234  ;;  %2376 = vperm.xlu1 %5263, %v1854_v18   ;;  %v9224_v18 = vld [vmem:[#allocation76_spill] sm:$0xff] }
 0x24b   :  { %v1354_v42 = vmul.f32 0.125, %v9224_v18  ;;  %v1615_v55 = vadd.f32 1e-05, %v1551_v58 }
 0x24c   :  { %v6863_v48 = vpop.xlane.xlu0 %981 }
 0x24d   :  { %9223 = vst [vmem:[#allocation74_spill] sm:$0xff] %v6863_v48  ;;  %2411 = vperm.xlu0 %5264, %v1861_v19   ;;  %v6879_v48 = vmul.f32 0.125, %v6550_v3  ;;  %v1856_v19 = vsub.f32 %v767_v30, %v1792_v23  ;;  %v1482_v28 = vsub.f32 %v1354_v42, %v1418_v49  ;;  %v1361_v3 = vmul.f32 0.125, %v6567_v45  ;;  %v5322_v2 = vpop.eup %5321  ;;  %v714_v30 = vld [vmem:[%s9044_s2 + $0xf8] sm:$0xff] }
 0x24e   :  { %v6875_v11 = vpop.xlane.xlu1 %984  ;;  %2012 = vperm.xlu1 %5263, %v1730_v50   ;;  %v1732_v42 = vmul.f32 %v5320_v35, %v707_v38  ;;  %v1739_v38 = vmul.f32 %v5322_v2, %v714_v30  ;;  %v6913_v50 = vmul.f32 0.125, %v6577_v60  ;;  %v9231_v2 = vld [vmem:[#allocation80_spill] sm:$0xff]  ;;  %5329 = vrsqrt.f32 %v1615_v55 }
 0x24f   :  { %9225 = vst [vmem:[#allocation75_spill] sm:$0xff] %v6875_v11  ;;  %v6887_v11 = vmul.f32 0.125, %v9227_v5  ;;  %v1425_v23 = vmul.f32 %v6879_v48, %v6879_v48  ;;  %v1546_v27 = vmax.f32 %v1482_v28, 0.0  ;;  %v6924_v24 = vmul.f32 0.125, %v9231_v2 }
 0x250   :  { %v6881_v18 = vpop.xlane.xlu0 %1237  ;;  %v1796_v55 = vmul.f32 %v1732_v42, %v6751_v7 }
 0x251   :  { %9226 = vst [vmem:[#allocation76_spill] sm:$0xff] %v6881_v18  ;;  %2047 = vperm.xlu0 %5264, %v1737_v10   ;;  %v1420_v45 = vmul.f32 %v6887_v11, %v6887_v11  ;;  %v1489_v5 = vsub.f32 %v1361_v3, %v1425_v23  ;;  %v1610_v58 = vadd.f32 1e-05, %v1546_v27  ;;  %v1363_v10 = vmul.f32 0.125, %v6589_v62  ;;  %v771_v62 = vld [vmem:[%s9045_s3 + $0xc0] sm:$0xff] }
 0x252   :  { %v6893_v17 = vpop.xlane.xlu1 %1240  ;;  %2386 = vperm.xlu1 %5263, %v1856_v19   ;;  %v9229_v19 = vld [vmem:[#allocation78_spill] sm:$0xff]  ;;  %v1427_v27 = vmul.f32 %v6913_v50, %v6913_v50  ;;  %v6990_v18 = vmul.f32 0.125, %v6636_v31 }
 0x253   :  { %v1356_v36 = vmul.f32 0.125, %v9229_v19  ;;  %v1858_v19 = vsub.f32 %v769_v25, %v1794_v20  ;;  %v1553_v60 = vmax.f32 %v1489_v5, 0.0  ;;  %v716_v25 = vld [vmem:[%s9044_s2 + $0x108] sm:$0xff]  ;;  %5331 = vrsqrt.f32 %v1610_v58 }
 0x254   :  { %v6897_v49 = vpop.xlane.xlu0 %987 }
 0x255   :  { %9228 = vst [vmem:[#allocation77_spill] sm:$0xff] %v6897_v49  ;;  %2421 = vperm.xlu0 %5264, %v1863_v8   ;;  %v776_v8 = vld [vmem:[%s9045_s3 + $0xe8] sm:$0xff]  ;;  %v5324_v49 = vpop.eup %5323  ;;  %v1484_v3 = vsub.f32 %v1356_v36, %v1420_v45 }
 0x256   :  { %v6909_v35 = vpop.xlane.xlu1 %990  ;;  %2022 = vperm.xlu1 %5263, %v1732_v42   ;;  %v1865_v30 = vsub.f32 %v776_v8, %v1801_v47  ;;  %v5326_v20 = vpop.eup %5325  ;;  %v1734_v36 = vmul.f32 %v5324_v49, %v709_v39  ;;  %v1422_v47 = vmul.f32 %v6924_v24, %v6924_v24  ;;  %v1491_v8 = vsub.f32 %v1363_v10, %v1427_v27  ;;  %v9233_v39 = vld [vmem:[#allocation81_spill] sm:$0xff] }
 0x257   :  { %v1548_v5 = vmax.f32 %v1484_v3, 0.0  ;;  %v1358_v49 = vmul.f32 0.125, %v6536_v52  ;;  %v1741_v7 = vmul.f32 %v5326_v20, %v716_v25  ;;  %v1803_v42 = vmul.f32 %v1739_v38, %v6777_v9  ;;  %v5328_v10 = vpop.eup %5327  ;;  %v711_v52 = vld [vmem:[%s9044_s2 + $0xe0] sm:$0xff] }
 0x258   :  { %v6915_v28 = vpop.xlane.xlu0 %1243  ;;  %v6950_v3 = vmul.f32 0.125, %v6603_v57  ;;  %v6961_v9 = vmul.f32 0.125, %v6574_v54  ;;  %v1555_v57 = vmax.f32 %v1491_v8, 0.0  ;;  %v718_v54 = vld [vmem:[%s9044_s2 + $0x118] sm:$0xff] }
 0x259   :  { %9230 = vst [vmem:[#allocation78_spill] sm:$0xff] %v6915_v28  ;;  %2057 = vperm.xlu0 %5264, %v1739_v38   ;;  %v1612_v27 = vadd.f32 1e-05, %v1548_v5  ;;  %v1365_v38 = vmul.f32 0.125, %v6620_v51  ;;  %v1486_v25 = vsub.f32 %v1358_v49, %v1422_v47  ;;  %v9235_v5 = vld [vmem:[#allocation82_spill] sm:$0xff]  ;;  %v1736_v28 = vmul.f32 %v5328_v10, %v711_v52  ;;  %v773_v47 = vld [vmem:[%s9045_s3 + $0xd0] sm:$0xff] }
 0x25a   :  { %v6927_v23 = vpop.xlane.xlu1 %1246  ;;  %2396 = vperm.xlu1 %5263, %v1858_v19   ;;  %v1617_v19 = vadd.f32 1e-05, %v1553_v60  ;;  %v778_v60 = vld [vmem:[%s9045_s3 + $0xf8] sm:$0xff]  ;;  %v1798_v51 = vmul.f32 %v1734_v36, %v6788_v12  ;;  %v1426_v8 = vmul.f32 %v6961_v9, %v6961_v9  ;;  %v1362_v49 = vmul.f32 0.125, %v6582_v56 }
 0x25b   :  { %v1550_v52 = vmax.f32 %v1486_v25, 0.0 }
 0x25c   :  { %v6931_v45 = vpop.xlane.xlu0 %993  ;;  %5333 = vrsqrt.f32 %v1617_v19  ;;  %v1429_v19 = vmul.f32 %v6950_v3, %v6950_v3  ;;  %v1862_v56 = vsub.f32 %v773_v47, %v1798_v51  ;;  %v7009_v47 = vmul.f32 0.125, %v6628_v59 }
 0x25d   :  { %9232 = vst [vmem:[#allocation80_spill] sm:$0xff] %v6931_v45  ;;  %2431 = vperm.xlu0 %5264, %v1865_v30   ;;  %v6946_v45 = vmul.f32 0.125, %v9233_v39  ;;  %v1860_v30 = vsub.f32 %v771_v62, %v1796_v55  ;;  %v1360_v62 = vmul.f32 0.125, %v9235_v5  ;;  %v1867_v39 = vsub.f32 %v778_v60, %v1803_v42 }
 0x25e   :  { %v6942_v2 = vpop.xlane.xlu1 %996  ;;  %2032 = vperm.xlu1 %5263, %v1734_v36   ;;  %5335 = vrsqrt.f32 %v1612_v27  ;;  %v1619_v42 = vadd.f32 1e-05, %v1555_v57  ;;  %v1805_v27 = vmul.f32 %v1741_v7, %v6811_v4  ;;  %v780_v57 = vld [vmem:[%s9045_s3 + $0x108] sm:$0xff]  ;;  %v1490_v4 = vsub.f32 %v1362_v49, %v1426_v8 }
 0x25f   :  { %v1424_v55 = vmul.f32 %v6946_v45, %v6946_v45  ;;  %v1614_v25 = vadd.f32 1e-05, %v1550_v52  ;;  %v720_v49 = vld [vmem:[%s9044_s2 + $0x128] sm:$0xff] }
 0x260   :  { %v6952_v58 = vpop.xlane.xlu0 %1249  ;;  %5337 = vrsqrt.f32 %v1619_v42  ;;  %v1554_v42 = vmax.f32 %v1490_v4, 0.0 }
 0x261   :  { %9234 = vst [vmem:[#allocation81_spill] sm:$0xff] %v6952_v58  ;;  %2067 = vperm.xlu0 %5264, %v1741_v7   ;;  %v5330_v58 = vpop.eup %5329  ;;  %v1488_v12 = vsub.f32 %v1360_v62, %v1424_v55  ;;  %v1869_v62 = vsub.f32 %v780_v57, %v1805_v27  ;;  %5339 = vrsqrt.f32 %v1614_v25 }
 0x262   :  { %v6964_v20 = vpop.xlane.xlu1 %1252  ;;  %2406 = vperm.xlu1 %5263, %v1860_v30   ;;  %v1493_v30 = vsub.f32 %v1365_v38, %v1429_v19  ;;  %v1743_v36 = vmul.f32 %v5330_v58, %v718_v54  ;;  %v5332_v5 = vpop.eup %5331  ;;  %v713_v38 = vld [vmem:[%s9044_s2 + $0xf0] sm:$0xff]  ;;  %v1800_v58 = vmul.f32 %v1736_v28, %v6825_v1  ;;  %v775_v54 = vld [vmem:[%s9045_s3 + $0xe0] sm:$0xff] }
 0x263   :  { %v1552_v55 = vmax.f32 %v1488_v12, 0.0  ;;  %v1738_v19 = vmul.f32 %v5332_v5, %v713_v38  ;;  %v1430_v38 = vmul.f32 %v7009_v47, %v7009_v47 }
 0x264   :  { %v6981_v60 = vpop.xlane.xlu0 %999  ;;  %v1557_v7 = vmax.f32 %v1493_v30, 0.0  ;;  %v1864_v27 = vsub.f32 %v775_v54, %v1800_v58  ;;  %v782_v58 = vld [vmem:[%s9045_s3 + $0x118] sm:$0xff] }
 0x265   :  { %2441 = vperm.xlu0 %5264, %v1867_v39   ;;  %v6987_v39 = vmul.f32 0.125, %v6598_v29  ;;  %v1367_v29 = vmul.f32 0.125, %v6655_v37  ;;  %v1431_v37 = vmul.f32 %v6990_v18, %v6990_v18  ;;  %v1616_v59 = vadd.f32 1e-05, %v1552_v55 }
 0x266   :  { %2042 = vperm.xlu1 %5263, %v1736_v28   ;;  %v6983_v10 = vpop.xlane.xlu1 %1002  ;;  %v5334_v51 = vpop.eup %5333  ;;  %v1364_v28 = vmul.f32 0.125, %v6612_v16  ;;  %v1621_v30 = vadd.f32 1e-05, %v1557_v7  ;;  %v715_v7 = vld [vmem:[%s9044_s2 + $0x100] sm:$0xff]  ;;  %v1802_v55 = vmul.f32 %v1738_v19, %v6853_v21 }
 0x267   :  { %v1428_v1 = vmul.f32 %v6987_v39, %v6987_v39  ;;  %v1495_v52 = vsub.f32 %v1367_v29, %v1431_v37  ;;  %v1745_v5 = vmul.f32 %v5334_v51, %v720_v49  ;;  %v1369_v29 = vmul.f32 0.125, %v6688_v43  ;;  %v722_v49 = vld [vmem:[%s9044_s2 + $0x138] sm:$0xff]  ;;  %v9237_v43 = vld [vmem:[#allocation6_spill] sm:$0xff] }
 0x268   :  { %v7013_v8 = vpop.xlane.xlu0 %1255  ;;  %v5336_v16 = vpop.eup %5335  ;;  %5341 = vrsqrt.f32 %v1621_v30  ;;  %v777_v30 = vld [vmem:[%s9045_s3 + $0xf0] sm:$0xff] }
 0x269   :  { %2077 = vperm.xlu0 %5264, %v1743_v36   ;;  %9236 = vst [vmem:[#allocation82_spill] sm:$0xff] %v7013_v8  ;;  %v1492_v57 = vsub.f32 %v1364_v28, %v1428_v1  ;;  %v1366_v8 = vmul.f32 0.125, %v6645_v13  ;;  %v1740_v25 = vmul.f32 %v5336_v16, %v715_v7  ;;  %5343 = vrsqrt.f32 %v1616_v59 }
 0x26a   :  { %2416 = vperm.xlu1 %5263, %v1862_v56   ;;  %v7000_v31 = vpop.xlane.xlu1 %1258  ;;  %v1807_v56 = vmul.f32 %v1743_v36, %v6845_v44  ;;  %v1618_v44 = vadd.f32 1e-05, %v1554_v42  ;;  %v1559_v36 = vmax.f32 %v1495_v52, 0.0  ;;  %v5338_v54 = vpop.eup %5337  ;;  %v7050_v16 = vmul.f32 0.125, %v6703_v34  ;;  %v717_v34 = vld [vmem:[%s9044_s2 + $0x110] sm:$0xff] }
 0x26b   :  { %v1556_v51 = vmax.f32 %v1492_v57, 0.0  ;;  %v1494_v1 = vsub.f32 %v1366_v8, %v1430_v38  ;;  %v1866_v7 = vsub.f32 %v777_v30, %v1802_v55  ;;  %v1368_v55 = vmul.f32 0.125, %v6678_v63 }
 0x26c   :  { %5345 = vrsqrt.f32 %v1618_v44  ;;  %v1623_v21 = vadd.f32 1e-05, %v1559_v36  ;;  %v784_v44 = vld [vmem:[%s9045_s3 + $0x128] sm:$0xff]  ;;  %v5340_v36 = vpop.eup %5339 }
 0x26d   :  { %2451 = vperm.xlu0 %5264, %v1869_v62   ;;  %v7023_v62 = vmul.f32 0.125, %v6671_v6  ;;  %v1871_v6 = vsub.f32 %v782_v58, %v1807_v56  ;;  %v1747_v56 = vmul.f32 %v5338_v54, %v722_v49  ;;  %v1620_v57 = vadd.f32 1e-05, %v1556_v51 }
 0x26e   :  { %2052 = vperm.xlu1 %5263, %v1738_v19   ;;  %v1908_v12 = vpop.permute.xlu1 %1907  ;;  %v9238_v19 = vld [vmem:[#allocation83_spill] sm:$0xff]  ;;  %v1558_v38 = vmax.f32 %v1494_v1, 0.0  ;;  %5347 = vrsqrt.f32 %v1623_v21  ;;  %v779_v21 = vld [vmem:[%s9045_s3 + $0x100] sm:$0xff] }
 0x26f   :  { %v1433_v28 = vmul.f32 %v7023_v62, %v7023_v62  ;;  %v2221_v42 = vmul.f32 %v9237_v43, %v1908_v12  ;;  %v7045_v52 = vmul.f32 0.125, %v9238_v19  ;;  %v1809_v12 = vmul.f32 %v1745_v5, %v6879_v48 }
 0x270   :  { %v1903_v4 = vpop.permute.xlu0 %1902  ;;  %v1804_v48 = vmul.f32 %v1740_v25, %v6887_v11  ;;  %5349 = vrsqrt.f32 %v1620_v57  ;;  %v1622_v43 = vadd.f32 1e-05, %v1558_v38  ;;  %v1742_v11 = vmul.f32 %v5340_v36, %v717_v34  ;;  %v719_v38 = vld [vmem:[%s9044_s2 + $0x120] sm:$0xff] }
 0x271   :  { %2087 = vperm.xlu0 %5264, %v1745_v5   ;;  %v1497_v8 = vsub.f32 %v1369_v29, %v1433_v28  ;;  %v1371_v29 = vmul.f32 0.125, %v6720_v0  ;;  %v1432_v5 = vmul.f32 %v7045_v52, %v7045_v52  ;;  %v1435_v0 = vmul.f32 %v7050_v16, %v7050_v16 }
 0x272   :  { %2426 = vperm.xlu1 %5263, %v1864_v27   ;;  %v7032_v13 = vpop.permute.xlu1 %1917  ;;  %v5342_v49 = vpop.eup %5341  ;;  %5351 = vrsqrt.f32 %v1622_v43  ;;  %v9241_v43 = vmov 0.0|0.0  }
 0x273   :  { %v1561_v54 = vmax.f32 %v1497_v8, 0.0  ;;  %v1499_v63 = vsub.f32 %v1371_v29, %v1435_v0  ;;  %v5344_v19 = vpop.eup %5343  ;;  %v1496_v8 = vsub.f32 %v1368_v55, %v1432_v5  ;;  %v1811_v29 = vmul.f32 %v1747_v56, %v6913_v50  ;;  %v9240_v0 = vld [vmem:[#allocation8_spill] sm:$0xff] }
 0x274   :  { %v2292_v37 = vpop.permute.xlu0 %2291  ;;  %v1868_v5 = vsub.f32 %v779_v21, %v1804_v48  ;;  %v1806_v50 = vmul.f32 %v1742_v11, %v6924_v24  ;;  %v7096_v48 = vmul.f32 0.125, %v6692_v22  ;;  %v9242_v21 = vld [vmem:[#allocation9_spill] sm:$0xff] }
 0x275   :  { %2461 = vperm.xlu0 %5264, %v1871_v6   ;;  %v2605_v59 = vadd.f32 %v2292_v37, %v2221_v42  ;;  %v9239_v6 = vld [vmem:[#allocation7_spill] sm:$0xff]  ;;  %v1873_v37 = vsub.f32 %v784_v44, %v1809_v12  ;;  %v1625_v12 = vadd.f32 1e-05, %v1561_v54  ;;  %v786_v54 = vld [vmem:[%s9045_s3 + $0x138] sm:$0xff] }
 0x276   :  { %2062 = vperm.xlu1 %5263, %v1740_v25   ;;  %v7047_v27 = vpop.permute.xlu1 %1912  ;;  %v2220_v28 = vmul.f32 %v1903_v4, %v9239_v6  ;;  %v724_v25 = vld [vmem:[%s9044_s2 + $0x148] sm:$0xff]  ;;  %v5346_v6 = vpop.eup %5345 }
 0x277   :  { %v2733_v4 = vmul.f32 0.25, %v2605_v59  ;;  %vm2669_vm5 = vcmp.ge.f32.partialorder %v2605_v59, 0.0  ;;  %5353 = vrsqrt.f32 %v1625_v12 }
 0x278   :  { %v2302_v58 = vpop.permute.xlu0 %2301 }
 0x279   :  { %2097 = vperm.xlu0 %5264, %v1747_v56   ;;  %v2797_v36 = vsel %vm2669_vm5, %v2605_v59, %v2733_v4  ;;  %v1744_v59 = vmul.f32 %v5344_v19, %v719_v38  ;;  %v1560_v56 = vmax.f32 %v1496_v8, 0.0  ;;  %v1373_v4 = vmul.f32 0.125, %v6757_v32  ;;  %v726_v32 = vld [vmem:[%s9044_s2 + $0x158] sm:$0xff] }
 0x27a   :  { %2436 = vperm.xlu1 %5263, %v1866_v7   ;;  %v2287_v51 = vpop.permute.xlu1 %2286  ;;  %v1749_v7 = vmul.f32 %v5342_v49, %v724_v25  ;;  %v1875_v49 = vsub.f32 %v786_v54, %v1811_v29  ;;  %v2222_v19 = vmul.f32 %v7047_v27, %v9242_v21  ;;  %v1370_v27 = vmul.f32 0.125, %v6710_v41 }
 0x27b   :  { %v2604_v1 = vadd.f32 %v2287_v51, %v2220_v28  ;;  %v7082_v28 = vmul.f32 0.125, %v6735_v46  ;;  %v1563_v51 = vmax.f32 %v1499_v63, 0.0  ;;  %v721_v46 = vld [vmem:[%s9044_s2 + $0x130] sm:$0xff]  ;;  %v7115_v8 = vmul.f32 %v1744_v59, %v6946_v45 }
 0x27c   :  { %v7067_v42 = vpop.permute.xlu0 %2311  ;;  %v1746_v63 = vmul.f32 %v5346_v6, %v721_v46  ;;  %v1624_v38 = vadd.f32 1e-05, %v1560_v56  ;;  %v723_v6 = vld [vmem:[%s9044_s2 + $0x140] sm:$0xff]  ;;  %v1375_v46 = vmul.f32 0.125, %v6791_v40  ;;  %v1372_v21 = vmul.f32 0.125, %v6744_v33  ;;  %v9244_v33 = vld [vmem:[#allocation84_spill] sm:$0xff] }
 0x27d   :  { %v2732_v30 = vmul.f32 0.25, %v2604_v1  ;;  %2471 = vperm.xlu0 %5264, %v1873_v37   ;;  %vm2668_vm6 = vcmp.ge.f32.partialorder %v2604_v1, 0.0  ;;  %v1437_v25 = vmul.f32 %v7082_v28, %v7082_v28 }
 0x27e   :  { %2072 = vperm.xlu1 %5263, %v1742_v11   ;;  %v7075_v57 = vpop.permute.xlu1 %1927  ;;  %v5348_v11 = vpop.eup %5347 }
 0x27f   :  { %v2796_v44 = vsel %vm2668_vm6, %v2604_v1, %v2732_v30  ;;  %v2223_v1 = vmul.f32 %v9240_v0, %v7032_v13  ;;  %v781_v13 = vld [vmem:[%s9045_s3 + $0x110] sm:$0xff]  ;;  %v1627_v30 = vadd.f32 1e-05, %v1563_v51  ;;  %v5350_v12 = vpop.eup %5349  ;;  %v1751_v45 = vmul.f32 %v5348_v11, %v726_v32  ;;  %v788_v51 = vld [vmem:[%s9045_s3 + $0x148] sm:$0xff] }
 0x280   :  { %v7084_v34 = vpop.permute.xlu0 %1947  ;;  %v5091_v55 = vpack.c.bf16 %v2797_v36, %v2796_v44  ;;  %v1434_v44 = vmul.f32 %v7096_v48, %v7096_v48  ;;  %v1501_v36 = vsub.f32 %v1373_v4, %v1437_v25  ;;  %v7128_v0 = vmul.f32 0.125, %v6727_v15  ;;  %v2861_v15 = vld [vmem:[%s9046_s4 + $0x8] sm:$0xff] }
 0x281   :  { %2107 = vperm.xlu0 %5264, %v1749_v7   ;;  %v2607_v24 = vadd.f32 %v2302_v58, %v2223_v1  ;;  %v1870_v58 = vsub.f32 %v781_v13, %v1806_v50  ;;  %v7131_v1 = vmul.f32 0.125, %v6773_v53  ;;  %5355 = vrsqrt.f32 %v1627_v30  ;;  %v5352_v50 = vpop.eup %5351  ;;  %3052 = vmatprep.mubr.f32.mxu1 %v2861_v15 }
 0x282   :  { %2446 = vperm.xlu1 %5263, %v1868_v5   ;;  %v7099_v37 = vpop.permute.xlu1 %1922  ;;  %5092 = vmatpush1.bf16.msra.mxu1 %v5091_v55  ;;  %v1813_v5 = vmul.f32 %v1749_v7, %v6950_v3  ;;  %v7136_v7 = vmul.f32 %v1746_v63, %v6961_v9  ;;  %5357 = vrsqrt.f32 %v1624_v38  ;;  %v1565_v53 = vmax.f32 %v1501_v36, 0.0  ;;  %v725_v9 = vld [vmem:[%s9044_s2 + $0x150] sm:$0xff]  ;;  %v5354_v30 = vpop.eup %5353 }
 0x283   :  { %5093 = vmatprep.subr.bf16.mxu1 %v9241_v43  ;;  %v2735_v55 = vmul.f32 0.25, %v2607_v24  ;;  %vm2671_vm7 = vcmp.ge.f32.partialorder %v2607_v24, 0.0  ;;  %v1498_v13 = vsub.f32 %v1370_v27, %v1434_v44  ;;  %v1436_v40 = vmul.f32 %v7128_v0, %v7128_v0  ;;  %v7167_v38 = vld [vmem:[%s9045_s3 + $0x130] sm:$0xff] }
 0x284   :  { %v7107_v22 = vpop.permute.xlu0 %2321  ;;  %v1877_v4 = vsub.f32 %v788_v51, %v1813_v5  ;;  %v7170_v44 = vmul.f32 0.125, %v9244_v33  ;;  %v1815_v36 = vmul.f32 %v1751_v45, %v6990_v18  ;;  %v1629_v5 = vadd.f32 1e-05, %v1565_v53 }
 0x285   :  { %2481 = vperm.xlu0 %5264, %v1875_v49   ;;  %v9243_v49 = vld [vmem:[#allocation10_spill] sm:$0xff]  ;;  %v2799_v32 = vsel %vm2671_vm7, %v2607_v24, %v2735_v55  ;;  %v790_v55 = vld [vmem:[%s9045_s3 + $0x158] sm:$0xff]  ;;  %v1874_v18 = vsub.f32 %v7167_v38, %v7136_v7  ;;  %v1500_v15 = vsub.f32 %v1372_v21, %v1436_v40 }
 0x286   :  { %2082 = vperm.xlu1 %5263, %v1744_v59   ;;  %v2297_v29 = vpop.permute.xlu1 %2296  ;;  %v7138_v59 = vmul.f32 %v5350_v12, %v723_v6  ;;  %v2225_v11 = vmul.f32 %v9243_v49, %v7075_v57  ;;  %v728_v57 = vld [vmem:[%s9044_s2 + $0x168] sm:$0xff]  ;;  %v783_v24 = vld [vmem:[%s9045_s3 + $0x120] sm:$0xff]  ;;  %5359 = vrsqrt.f32 %v1629_v5  ;;  %v7223_v5 = vld [vmem:[%s9045_s3 + $0x150] sm:$0xff] }
 0x287   :  { %v2606_v54 = vadd.f32 %v2297_v29, %v2222_v19  ;;  %v1439_v19 = vmul.f32 %v7131_v1, %v7131_v1  ;;  %v7173_v29 = vmul.f32 %v5352_v50, %v725_v9  ;;  %v1753_v51 = vmul.f32 %v5354_v30, %v728_v57  ;;  %v9245_v50 = vld [vmem:[#allocation72_spill] sm:$0xff] }
 0x288   :  { %v7133_v3 = vpop.permute.xlu0 %1957  ;;  %v1879_v9 = vsub.f32 %v790_v55, %v1815_v36  ;;  %v7203_v30 = vmul.f32 0.125, %v6838_v14  ;;  %v1379_v14 = vmul.f32 0.125, %v6859_v61  ;;  %v7218_v36 = vld [vmem:[%s9045_s3 + $0x140] sm:$0xff] }
 0x289   :  { %vm2670_vm8 = vcmp.ge.f32.partialorder %v2606_v54, 0.0  ;;  %v2734_v41 = vmul.f32 0.25, %v2606_v54  ;;  %2117 = vperm.xlu0 %5264, %v1751_v45   ;;  %v1503_v6 = vsub.f32 %v1375_v46, %v1439_v19  ;;  %v1562_v45 = vmax.f32 %v1498_v13, 0.0  ;;  %v9247_v13 = vld [vmem:[#allocation70_spill] sm:$0xff] }
 0x28a   :  { %2456 = vperm.xlu1 %5263, %v1870_v58   ;;  %v1938_v56 = vpop.permute.xlu1 %1937  ;;  %v7190_v46 = vmul.f32 %v7138_v59, %v6987_v39  ;;  %v7198_v7 = vmul.f32 %v7173_v29, %v7009_v47  ;;  %v1374_v49 = vmul.f32 0.125, %v9247_v13  ;;  %v730_v47 = vld [vmem:[%s9044_s2 + $0x178] sm:$0xff]  ;;  %v792_v13 = vld [vmem:[%s9045_s3 + $0x168] sm:$0xff] }
 0x28b   :  { %v2798_v25 = vsel %vm2670_vm8, %v2606_v54, %v2734_v41  ;;  %v2609_v54 = vadd.f32 %v7067_v42, %v2225_v11  ;;  %v1872_v41 = vsub.f32 %v783_v24, %v7115_v8  ;;  %v1438_v42 = vmul.f32 %v7170_v44, %v7170_v44  ;;  %v9246_v8 = vld [vmem:[#allocation11_spill] sm:$0xff] }
 0x28c   :  { %v7156_v58 = vpop.permute.xlu0 %2331  ;;  %v5094_v12 = vpack.c.bf16 %v2799_v32, %v2798_v25  ;;  %v1567_v11 = vmax.f32 %v1503_v6, 0.0  ;;  %v1377_v25 = vmul.f32 0.125, %v6822_v26  ;;  %v5356_v32 = vpop.eup %5355  ;;  %v1626_v57 = vadd.f32 1e-05, %v1562_v45 }
 0x28d   :  { %2491 = vperm.xlu0 %5264, %v1877_v4   ;;  %v2224_v4 = vmul.f32 %v7099_v37, %v9246_v8  ;;  %v2737_v40 = vmul.f32 0.25, %v2609_v54  ;;  %v9248_v37 = vld [vmem:[#allocation12_spill] sm:$0xff]  ;;  %v1564_v24 = vmax.f32 %v1500_v15, 0.0  ;;  %vm2673_vm9 = vcmp.ge.f32.partialorder %v2609_v54, 0.0 }
 0x28e   :  { %2092 = vperm.xlu1 %5263, %v1746_v63   ;;  %v1933_v27 = vpop.permute.xlu1 %1932  ;;  %5095 = vmatpush1.bf16.msra.mxu1 %v5094_v12  ;;  %v7184_v63 = vmul.f32 0.125, %v9245_v50  ;;  %v2227_v21 = vmul.f32 %v9248_v37, %v1938_v56  ;;  %v5358_v12 = vpop.eup %5357  ;;  %v1817_v56 = vmul.f32 %v1753_v51, %v7023_v62  ;;  %v1502_v6 = vsub.f32 %v1374_v49, %v1438_v42  ;;  %v727_v62 = vld [vmem:[%s9044_s2 + $0x160] sm:$0xff] }
 0x28f   :  { %5096 = vmatprep.subr.bf16.mxu1 %v9241_v43  ;;  %v1631_v55 = vadd.f32 1e-05, %v1567_v11  ;;  %v1755_v45 = vmul.f32 %v5356_v32, %v730_v47  ;;  %v2801_v8 = vsel %vm2673_vm9, %v2609_v54, %v2737_v40  ;;  %v1876_v49 = vsub.f32 %v7218_v36, %v7190_v46 }
 0x290   :  { %v7186_v53 = vpop.permute.xlu0 %1967  ;;  %v1441_v26 = vmul.f32 %v7184_v63, %v7184_v63  ;;  %v2611_v15 = vadd.f32 %v7107_v22, %v2227_v21  ;;  %v1878_v11 = vsub.f32 %v7223_v5, %v7198_v7  ;;  %5361 = vrsqrt.f32 %v1626_v57  ;;  %v5360_v57 = vpop.eup %5359  ;;  %v736_v7 = vld [vmem:[%s9044_s2 + $0x1a8] sm:$0xff] }
 0x291   :  { %2127 = vperm.xlu0 %5264, %v1753_v51   ;;  %v1443_v51 = vmul.f32 %v7203_v30, %v7203_v30  ;;  %v1628_v32 = vadd.f32 1e-05, %v1564_v24  ;;  %5363 = vrsqrt.f32 %v1631_v55  ;;  %v1381_v37 = vmul.f32 0.125, %v6893_v17  ;;  %v9259_v5 = vld [vmem:[#allocation74_spill] sm:$0xff] }
 0x292   :  { %2466 = vperm.xlu1 %5263, %v1872_v41   ;;  %v2307_v39 = vpop.permute.xlu1 %2306  ;;  %v1505_v41 = vsub.f32 %v1377_v25, %v1441_v26  ;;  %v9250_v25 = vld [vmem:[#allocation13_spill] sm:$0xff]  ;;  %v2739_v46 = vmul.f32 0.25, %v2611_v15  ;;  %v1881_v26 = vsub.f32 %v792_v13, %v1817_v56  ;;  %v7256_v24 = vmul.f32 0.125, %v6909_v35  ;;  %v9252_v56 = vld [vmem:[#allocation14_spill] sm:$0xff] }
 0x293   :  { %v2608_v19 = vadd.f32 %v2307_v39, %v2224_v4  ;;  %v9249_v4 = vld [vmem:[#allocation75_spill] sm:$0xff]  ;;  %v1507_v22 = vsub.f32 %v1379_v14, %v1443_v51  ;;  %v2226_v54 = vmul.f32 %v1933_v27, %v9250_v25  ;;  %v7246_v39 = vmul.f32 %v5358_v12, %v727_v62 }
 0x294   :  { %v7211_v38 = vpop.permute.xlu0 %2341  ;;  %v7234_v42 = vmul.f32 0.125, %v9249_v4  ;;  %v1569_v40 = vmax.f32 %v1505_v41, 0.0  ;;  %v9251_v14 = vld [vmem:[#allocation71_spill] sm:$0xff]  ;;  %vm2675_vm11 = vcmp.ge.f32.partialorder %v2611_v15, 0.0  ;;  %v2229_v36 = vmul.f32 %v9252_v56, %v7084_v34 }
 0x295   :  { %vm2672_vm10 = vcmp.ge.f32.partialorder %v2608_v19, 0.0  ;;  %v2736_v33 = vmul.f32 0.25, %v2608_v19  ;;  %2501 = vperm.xlu0 %5264, %v1879_v9   ;;  %v7251_v27 = vmul.f32 0.125, %v9251_v14  ;;  %v1383_v62 = vmul.f32 0.125, %v6927_v23 }
 0x296   :  { %2102 = vperm.xlu1 %5263, %v7138_v59   ;;  %v1943_v61 = vpop.permute.xlu1 %1942  ;;  %v1445_v12 = vmul.f32 %v7234_v42, %v7234_v42  ;;  %v1633_v55 = vadd.f32 1e-05, %v1569_v40  ;;  %v1819_v51 = vmul.f32 %v1755_v45, %v7050_v16  ;;  %5365 = vrsqrt.f32 %v1628_v32 }
 0x297   :  { %v2800_v50 = vsel %vm2672_vm10, %v2608_v19, %v2736_v33  ;;  %v1566_v19 = vmax.f32 %v1502_v6, 0.0  ;;  %v1571_v33 = vmax.f32 %v1507_v22, 0.0  ;;  %v1447_v34 = vmul.f32 %v7256_v24, %v7256_v24 }
 0x298   :  { %v7236_v9 = vpop.permute.xlu0 %1977  ;;  %v5097_v59 = vpack.c.bf16 %v2801_v8, %v2800_v50  ;;  %v1509_v41 = vsub.f32 %v1381_v37, %v1445_v12  ;;  %v2613_v50 = vadd.f32 %v7156_v58, %v2229_v36  ;;  %v7272_v13 = vmul.f32 0.125, %v6942_v2 }
 0x299   :  { %2137 = vperm.xlu0 %5264, %v1755_v45   ;;  %v1630_v16 = vadd.f32 1e-05, %v1566_v19  ;;  %v7281_v58 = vmul.f32 %v7251_v27, %v7251_v27  ;;  %v1635_v45 = vadd.f32 1e-05, %v1571_v33  ;;  %5367 = vrsqrt.f32 %v1633_v55 }
 0x29a   :  { %2476 = vperm.xlu1 %5263, %v1874_v18   ;;  %v2317_v21 = vpop.permute.xlu1 %2316  ;;  %5098 = vmatpush1.bf16.msra.mxu1 %v5097_v59  ;;  %v732_v18 = vld [vmem:[%s9044_s2 + $0x188] sm:$0xff]  ;;  %v2803_v59 = vsel %vm2675_vm11, %v2611_v15, %v2739_v46  ;;  %v1511_v2 = vsub.f32 %v1383_v62, %v1447_v34  ;;  %v1385_v32 = vmul.f32 0.125, %v6964_v20  ;;  %v5362_v37 = vpop.eup %5361  ;;  %v2741_v19 = vmul.f32 0.25, %v2613_v50  ;;  %v729_v62 = vld [vmem:[%s9044_s2 + $0x170] sm:$0xff] }
 0x29b   :  { %v2610_v47 = vadd.f32 %v2317_v21, %v2226_v54  ;;  %5099 = vmatprep.subr.bf16.mxu1 %v9241_v43  ;;  %v1757_v8 = vmul.f32 %v5360_v57, %v732_v18  ;;  %v9253_v15 = vld [vmem:[#allocation15_spill] sm:$0xff]  ;;  %v1573_v54 = vmax.f32 %v1509_v41, 0.0  ;;  %v9254_v21 = vld [vmem:[#allocation85_spill] sm:$0xff]  ;;  %v5364_v57 = vpop.eup %5363  ;;  %v7290_v14 = vmul.f32 0.125, %v6983_v10  ;;  %v9255_v18 = vld [vmem:[#allocation16_spill] sm:$0xff] }
 0x29c   :  { %v7258_v17 = vpop.permute.xlu0 %2351  ;;  %v2228_v25 = vmul.f32 %v1943_v61, %v9253_v15  ;;  %v1376_v46 = vmul.f32 0.125, %v9254_v21  ;;  %v1449_v61 = vmul.f32 %v7272_v13, %v7272_v13  ;;  %vm2677_vm13 = vcmp.ge.f32.partialorder %v2613_v50, 0.0 }
 0x29d   :  { %vm2674_vm12 = vcmp.ge.f32.partialorder %v2610_v47, 0.0  ;;  %v2738_v6 = vmul.f32 0.25, %v2610_v47  ;;  %2511 = vperm.xlu0 %5264, %v1881_v26   ;;  %v1821_v12 = vmul.f32 %v1757_v8, %v7082_v28  ;;  %5369 = vrsqrt.f32 %v1635_v45  ;;  %v9257_v45 = vld [vmem:[#allocation17_spill] sm:$0xff] }
 0x29e   :  { %2112 = vperm.xlu1 %5263, %v7173_v29   ;;  %v1953_v35 = vpop.permute.xlu1 %1952  ;;  %v794_v29 = vld [vmem:[%s9045_s3 + $0x178] sm:$0xff]  ;;  %v2231_v33 = vmul.f32 %v9255_v18, %v7133_v3  ;;  %v1637_v36 = vadd.f32 1e-05, %v1573_v54  ;;  %v1513_v10 = vsub.f32 %v1385_v32, %v1449_v61  ;;  %v1387_v55 = vmul.f32 0.125, %v7000_v31 }
 0x29f   :  { %v2802_v4 = vsel %vm2674_vm12, %v2610_v47, %v2738_v6  ;;  %v1883_v26 = vsub.f32 %v794_v29, %v1819_v51  ;;  %v1575_v6 = vmax.f32 %v1511_v2, 0.0  ;;  %v1451_v31 = vmul.f32 %v7290_v14, %v7290_v14 }
 0x2a0   :  { %v7274_v22 = vpop.permute.xlu0 %1987  ;;  %v5100_v23 = vpack.c.bf16 %v2803_v59, %v2802_v4  ;;  %v2615_v28 = vadd.f32 %v7211_v38, %v2231_v33  ;;  %v1504_v4 = vsub.f32 %v1376_v46, %v7281_v58  ;;  %v9256_v59 = vld [vmem:[#allocation79_spill] sm:$0xff]  ;;  %v2230_v15 = vmul.f32 %v1953_v35, %v9257_v45 }
 0x2a1   :  { %2147 = vperm.xlu0 %5264, %v1757_v8   ;;  %v2805_v8 = vsel %vm2677_vm13, %v2613_v50, %v2741_v19  ;;  %v7311_v34 = vmul.f32 0.125, %v9256_v59  ;;  %v796_v38 = vld [vmem:[%s9045_s3 + $0x188] sm:$0xff]  ;;  %v1754_v50 = vmul.f32 %v5362_v37, %v729_v62  ;;  %v1816_v58 = vmul.f32 %v7246_v39, %v7045_v52  ;;  %v9258_v19 = vld [vmem:[#allocation73_spill] sm:$0xff] }
 0x2a2   :  { %2486 = vperm.xlu1 %5263, %v1876_v49   ;;  %v2327_v40 = vpop.permute.xlu1 %2326  ;;  %5101 = vmatpush1.bf16.msra.mxu1 %v5100_v23  ;;  %v734_v49 = vld [vmem:[%s9044_s2 + $0x198] sm:$0xff]  ;;  %5371 = vrsqrt.f32 %v1637_v36  ;;  %v1639_v54 = vadd.f32 1e-05, %v1575_v6  ;;  %v1577_v2 = vmax.f32 %v1513_v10, 0.0  ;;  %v1515_v32 = vsub.f32 %v1387_v55, %v1451_v31 }
 0x2a3   :  { %v2612_v47 = vadd.f32 %v2327_v40, %v2228_v25  ;;  %5102 = vmatprep.subr.bf16.mxu1 %v9241_v43  ;;  %v7306_v51 = vmul.f32 %v5364_v57, %v734_v49  ;;  %v7324_v25 = vpop.eup %5365  ;;  %5373 = vrsqrt.f32 %v1630_v16  ;;  %v2743_v35 = vmul.f32 0.25, %v2615_v28  ;;  %v9260_v16 = vld [vmem:[#allocation18_spill] sm:$0xff]  ;;  %v738_v59 = vld [vmem:[%s9044_s2 + $0x1b8] sm:$0xff] }
 0x2a4   :  { %v7292_v20 = vpop.permute.xlu0 %2361  ;;  %v1885_v46 = vsub.f32 %v796_v38, %v1821_v12  ;;  %v5368_v37 = vpop.eup %5367  ;;  %v1568_v52 = vmax.f32 %v1504_v4, 0.0  ;;  %vm2679_vm15 = vcmp.ge.f32.partialorder %v2615_v28, 0.0  ;;  %v2233_v57 = vmul.f32 %v9260_v16, %v7186_v53  ;;  %v791_v49 = vld [vmem:[%s9045_s3 + $0x160] sm:$0xff]  ;;  %v9262_v38 = vld [vmem:[#allocation19_spill] sm:$0xff] }
 0x2a5   :  { %vm2676_vm14 = vcmp.ge.f32.partialorder %v2612_v47, 0.0  ;;  %v2740_v56 = vmul.f32 0.25, %v2612_v47  ;;  %2521 = vperm.xlu0 %5264, %v1883_v26   ;;  %5375 = vrsqrt.f32 %v1639_v54  ;;  %v1641_v12 = vadd.f32 1e-05, %v1577_v2 }
 0x2a6   :  { %2122 = vperm.xlu1 %5263, %v7246_v39   ;;  %v1963_v41 = vpop.permute.xlu1 %1962  ;;  %v1442_v39 = vmul.f32 %v7311_v34, %v7311_v34  ;;  %v1579_v18 = vmax.f32 %v1515_v32, 0.0  ;;  %v2617_v36 = vadd.f32 %v7258_v17, %v2233_v57  ;;  %v7347_v6 = vmul.f32 %v5368_v37, %v736_v7  ;;  %v9264_v7 = vld [vmem:[#allocation20_spill] sm:$0xff] }
 0x2a7   :  { %v2804_v3 = vsel %vm2676_vm14, %v2612_v47, %v2740_v56  ;;  %v1378_v47 = vmul.f32 0.125, %v9258_v19  ;;  %v5370_v56 = vpop.eup %5369  ;;  %v2807_v53 = vsel %vm2679_vm15, %v2615_v28, %v2743_v35  ;;  %v1632_v55 = vadd.f32 1e-05, %v1568_v52  ;;  %v731_v28 = vld [vmem:[%s9044_s2 + $0x180] sm:$0xff] }
 0x2a8   :  { %v7315_v23 = vpop.permute.xlu0 %1997  ;;  %v5103_v29 = vpack.c.bf16 %v2805_v8, %v2804_v3  ;;  %v1880_v8 = vsub.f32 %v791_v49, %v1816_v58  ;;  %v2232_v45 = vmul.f32 %v1963_v41, %v9262_v38  ;;  %5377 = vrsqrt.f32 %v1641_v12 }
 0x2a9   :  { %2157 = vperm.xlu0 %5264, %v7306_v51   ;;  %v1506_v62 = vsub.f32 %v1378_v47, %v1442_v39  ;;  %v1643_v54 = vadd.f32 1e-05, %v1579_v18  ;;  %v2745_v32 = vmul.f32 0.25, %v2617_v36  ;;  %v7366_v35 = vmul.f32 %v5370_v56, %v738_v59  ;;  %v740_v39 = vld [vmem:[%s9044_s2 + $0x1c8] sm:$0xff]  ;;  %v742_v59 = vld [vmem:[%s9044_s2 + $0x1d8] sm:$0xff] }
 0x2aa   :  { %2496 = vperm.xlu1 %5263, %v1878_v11   ;;  %v2337_v40 = vpop.permute.xlu1 %2336  ;;  %5104 = vmatpush1.bf16.msra.mxu1 %v5103_v29  ;;  %v7339_v11 = vmul.f32 0.125, %v9259_v5  ;;  %v9261_v29 = vld [vmem:[#allocation76_spill] sm:$0xff]  ;;  %v1818_v41 = vmul.f32 %v1754_v50, %v7096_v48  ;;  %5379 = vrsqrt.f32 %v1632_v55  ;;  %vm2681_vm1 = vcmp.ge.f32.partialorder %v2617_v36, 0.0 }
 0x2ab   :  { %v2614_v21 = vadd.f32 %v2337_v40, %v2230_v15  ;;  %5105 = vmatprep.subr.bf16.mxu1 %v9241_v43  ;;  %v1380_v17 = vmul.f32 0.125, %v9261_v29  ;;  %v9263_v15 = vld [vmem:[#allocation77_spill] sm:$0xff]  ;;  %v1756_v52 = vmul.f32 %v7324_v25, %v731_v28  ;;  %v2235_v5 = vmul.f32 %v9264_v7, %v7236_v9  ;;  %v793_v48 = vld [vmem:[%s9045_s3 + $0x170] sm:$0xff]  ;;  %v9265_v25 = vld [vmem:[#allocation78_spill] sm:$0xff] }
 0x2ac   :  { %v7333_v26 = vpop.permute.xlu0 %2371  ;;  %v1444_v31 = vmul.f32 %v7339_v11, %v7339_v11  ;;  %v7364_v58 = vmul.f32 0.125, %v9263_v15  ;;  %v1382_v57 = vmul.f32 0.125, %v9265_v25  ;;  %5381 = vrsqrt.f32 %v1643_v54  ;;  %v9267_v29 = vld [vmem:[#allocation21_spill] sm:$0xff] }
 0x2ad   :  { %vm2678_vm0 = vcmp.ge.f32.partialorder %v2614_v21, 0.0  ;;  %v2742_v61 = vmul.f32 0.25, %v2614_v21  ;;  %2531 = vperm.xlu0 %5264, %v1885_v46   ;;  %v1570_v46 = vmax.f32 %v1506_v62, 0.0  ;;  %v2619_v9 = vadd.f32 %v7292_v20, %v2235_v5  ;;  %v733_v20 = vld [vmem:[%s9044_s2 + $0x190] sm:$0xff] }
 0x2ae   :  { %2132 = vperm.xlu1 %5263, %v1754_v50   ;;  %v1973_v33 = vpop.permute.xlu1 %1972  ;;  %v1508_v47 = vsub.f32 %v1380_v17, %v1444_v31  ;;  %v1446_v50 = vmul.f32 %v7364_v58, %v7364_v58  ;;  %v7406_v15 = vmul.f32 0.125, %v6981_v60  ;;  %v744_v60 = vld [vmem:[%s9044_s2 + $0x1e8] sm:$0xff] }
 0x2af   :  { %v2806_v10 = vsel %vm2678_vm0, %v2614_v21, %v2742_v61  ;;  %v5372_v21 = vpop.eup %5371  ;;  %v9266_v61 = vld [vmem:[#allocation80_spill] sm:$0xff]  ;;  %v1634_v55 = vadd.f32 1e-05, %v1570_v46  ;;  %v2234_v17 = vmul.f32 %v1973_v33, %v9267_v29  ;;  %vm2683_vm3 = vcmp.ge.f32.partialorder %v2619_v9, 0.0 }
 0x2b0   :  { %v7350_v3 = vpop.permute.xlu0 %2007  ;;  %v5106_v4 = vpack.c.bf16 %v2807_v53, %v2806_v10  ;;  %v5374_v19 = vpop.eup %5373  ;;  %v7386_v49 = vmul.f32 0.125, %v9266_v61  ;;  %v7389_v18 = vmul.f32 %v5372_v21, %v740_v39  ;;  %v2809_v10 = vsel %vm2681_vm1, %v2617_v36, %v2745_v32 }
 0x2b1   :  { %2167 = vperm.xlu0 %5264, %v7347_v6   ;;  %v5376_v53 = vpop.eup %5375  ;;  %v1572_v31 = vmax.f32 %v1508_v47, 0.0  ;;  %v1510_v36 = vsub.f32 %v1382_v57, %v1446_v50  ;;  %5383 = vrsqrt.f32 %v1634_v55  ;;  %v1758_v21 = vmul.f32 %v5374_v19, %v733_v20  ;;  %v9269_v47 = vld [vmem:[#allocation22_spill] sm:$0xff] }
 0x2b2   :  { %2506 = vperm.xlu1 %5263, %v1880_v8   ;;  %v2347_v2 = vpop.permute.xlu1 %2346  ;;  %5107 = vmatpush1.bf16.msra.mxu1 %v5106_v4  ;;  %v1882_v8 = vsub.f32 %v793_v48, %v1818_v41  ;;  %v1448_v38 = vmul.f32 %v7386_v49, %v7386_v49  ;;  %v7408_v32 = vmul.f32 %v5376_v53, %v742_v59  ;;  %v9270_v57 = vld [vmem:[#allocation82_spill] sm:$0xff]  ;;  %v746_v59 = vld [vmem:[%s9044_s2 + $0x1f8] sm:$0xff] }
 0x2b3   :  { %v2616_v40 = vadd.f32 %v2347_v2, %v2232_v45  ;;  %5108 = vmatprep.subr.bf16.mxu1 %v9241_v43  ;;  %v9268_v45 = vld [vmem:[#allocation81_spill] sm:$0xff]  ;;  %v2747_v2 = vmul.f32 0.25, %v2619_v9  ;;  %v1820_v46 = vmul.f32 %v1756_v52, %v7128_v0  ;;  %v1636_v39 = vadd.f32 1e-05, %v1572_v31  ;;  %v9271_v31 = vld [vmem:[#allocation23_spill] sm:$0xff] }
 0x2b4   :  { %v7370_v37 = vpop.permute.xlu0 %2381  ;;  %v1384_v28 = vmul.f32 0.125, %v9268_v45  ;;  %v2237_v7 = vmul.f32 %v9269_v47, %v7274_v22  ;;  %v1574_v19 = vmax.f32 %v1510_v36, 0.0  ;;  %v1450_v25 = vmul.f32 %v7406_v15, %v7406_v15 }
 0x2b5   :  { %vm2680_vm2 = vcmp.ge.f32.partialorder %v2616_v40, 0.0  ;;  %v2744_v16 = vmul.f32 0.25, %v2616_v40  ;;  %2177 = vperm.xlu0 %5264, %v7366_v35   ;;  %v1386_v0 = vmul.f32 0.125, %v9270_v57  ;;  %5385 = vrsqrt.f32 %v1636_v39 }
 0x2b6   :  { %2142 = vperm.xlu1 %5263, %v1756_v52   ;;  %v1983_v12 = vpop.permute.xlu1 %1982  ;;  %v1512_v50 = vsub.f32 %v1384_v28, %v1448_v38  ;;  %v2621_v22 = vadd.f32 %v7333_v26, %v2237_v7  ;;  %v735_v26 = vld [vmem:[%s9044_s2 + $0x1a0] sm:$0xff]  ;;  %v1823_v36 = vmul.f32 %v7306_v51, %v7131_v1  ;;  %v9272_v1 = vld [vmem:[#allocation24_spill] sm:$0xff] }
 0x2b7   :  { %v2808_v56 = vsel %vm2680_vm2, %v2616_v40, %v2744_v16  ;;  %v5378_v40 = vpop.eup %5377  ;;  %v795_v16 = vld [vmem:[%s9045_s3 + $0x180] sm:$0xff]  ;;  %v2236_v29 = vmul.f32 %v1983_v12, %v9271_v31  ;;  %v1514_v38 = vsub.f32 %v1386_v0, %v1450_v25  ;;  %v798_v12 = vld [vmem:[%s9045_s3 + $0x198] sm:$0xff]  ;;  %v2239_v51 = vmul.f32 %v9272_v1, %v7315_v23  ;;  %v804_v1 = vld [vmem:[%s9045_s3 + $0x1c8] sm:$0xff] }
 0x2b8   :  { %v7392_v62 = vpop.permute.xlu0 %2017  ;;  %v5109_v4 = vpack.c.bf16 %v2809_v10, %v2808_v56  ;;  %v5380_v48 = vpop.eup %5379  ;;  %v7427_v61 = vmul.f32 %v5378_v40, %v744_v60  ;;  %v2811_v10 = vsel %vm2683_vm3, %v2619_v9, %v2747_v2  ;;  %v1576_v9 = vmax.f32 %v1512_v50, 0.0  ;;  %v9273_v0 = vld [vmem:[#allocation25_spill] sm:$0xff] }
 0x2b9   :  { %2187 = vperm.xlu0 %5264, %v7389_v18   ;;  %v5382_v53 = vpop.eup %5381  ;;  %v2749_v45 = vmul.f32 0.25, %v2621_v22  ;;  %vm2685_vm6 = vcmp.ge.f32.partialorder %v2621_v22, 0.0  ;;  %v1822_v40 = vmul.f32 %v1758_v21, %v7170_v44  ;;  %v1825_v44 = vmul.f32 %v7347_v6, %v7184_v63  ;;  %v737_v63 = vld [vmem:[%s9044_s2 + $0x1b0] sm:$0xff] }
 0x2ba   :  { %2516 = vperm.xlu1 %5263, %v1882_v8   ;;  %v2357_v54 = vpop.permute.xlu1 %2356  ;;  %5110 = vmatpush1.bf16.msra.mxu1 %v5109_v4  ;;  %v1884_v8 = vsub.f32 %v795_v16, %v1820_v46  ;;  %v797_v46 = vld [vmem:[%s9045_s3 + $0x190] sm:$0xff]  ;;  %v1640_v47 = vadd.f32 1e-05, %v1576_v9  ;;  %v2623_v23 = vadd.f32 %v7370_v37, %v2239_v51 }
 0x2bb   :  { %v2618_v33 = vadd.f32 %v2357_v54, %v2234_v17  ;;  %5111 = vmatprep.subr.bf16.mxu1 %v9241_v43  ;;  %v1638_v17 = vadd.f32 1e-05, %v1574_v19  ;;  %v7442_v54 = vmul.f32 %v5382_v53, %v746_v59  ;;  %v5384_v39 = vpop.eup %5383  ;;  %v800_v19 = vld [vmem:[%s9045_s3 + $0x1a8] sm:$0xff]  ;;  %v1886_v25 = vsub.f32 %v797_v46, %v1822_v40 }
 0x2bc   :  { %v7411_v41 = vpop.permute.xlu0 %2391  ;;  %v1889_v37 = vsub.f32 %v800_v19, %v1825_v44  ;;  %v2751_v53 = vmul.f32 0.25, %v2623_v23  ;;  %vm2687_vm8 = vcmp.ge.f32.partialorder %v2623_v23, 0.0  ;;  %v7481_v31 = vmul.f32 %v5384_v39, %v737_v63  ;;  %v9275_v51 = vld [vmem:[#allocation27_spill] sm:$0xff] }
 0x2bd   :  { %vm2682_vm5 = vcmp.ge.f32.partialorder %v2618_v33, 0.0  ;;  %v2746_v5 = vmul.f32 0.25, %v2618_v33  ;;  %2197 = vperm.xlu0 %5264, %v7408_v32   ;;  %5387 = vrsqrt.f32 %v1638_v17 }
 0x2be   :  { %2152 = vperm.xlu1 %5263, %v1758_v21   ;;  %v1993_v52 = vpop.permute.xlu1 %1992  ;;  %v1578_v21 = vmax.f32 %v1514_v38, 0.0  ;;  %5389 = vrsqrt.f32 %v1640_v47 }
 0x2bf   :  { %v2810_v56 = vsel %vm2682_vm5, %v2618_v33, %v2746_v5  ;;  %v7450_v33 = vmul.f32 %v5380_v48, %v735_v26  ;;  %v1887_v5 = vsub.f32 %v798_v12, %v1823_v36  ;;  %v2813_v48 = vsel %vm2685_vm6, %v2621_v22, %v2749_v45 }
 0x2c0   :  { %v7430_v55 = vpop.permute.xlu0 %2027  ;;  %v5112_v4 = vpack.c.bf16 %v2811_v10, %v2810_v56  ;;  %v2238_v56 = vmul.f32 %v1993_v52, %v9273_v0  ;;  %v1827_v22 = vmul.f32 %v7366_v35, %v7203_v30  ;;  %v1642_v10 = vadd.f32 1e-05, %v1578_v21  ;;  %v802_v52 = vld [vmem:[%s9045_s3 + $0x1b8] sm:$0xff]  ;;  %v739_v35 = vld [vmem:[%s9044_s2 + $0x1c0] sm:$0xff] }
 0x2c1   :  { %2207 = vperm.xlu0 %5264, %v7427_v61   ;;  %v2815_v45 = vsel %vm2687_vm8, %v2623_v23, %v2751_v53  ;;  %v9276_v23 = vld [vmem:[#allocation28_spill] sm:$0xff] }
 0x2c2   :  { %2526 = vperm.xlu1 %5263, %v1884_v8   ;;  %v2367_v20 = vpop.permute.xlu1 %2366  ;;  %5113 = vmatpush1.bf16.msra.mxu1 %v5112_v4  ;;  %v5386_v4 = vpop.eup %5385  ;;  %v1891_v9 = vsub.f32 %v802_v52, %v1827_v22  ;;  %5391 = vrsqrt.f32 %v1642_v10  ;;  %v9277_v10 = vld [vmem:[#allocation29_spill] sm:$0xff] }
 0x2c3   :  { %v2620_v28 = vadd.f32 %v2367_v20, %v2236_v29  ;;  %5114 = vmatprep.subr.bf16.mxu1 %v9241_v43  ;;  %v9274_v29 = vld [vmem:[#allocation26_spill] sm:$0xff]  ;;  %v1829_v20 = vmul.f32 %v7389_v18, %v7234_v42  ;;  %v7494_v12 = vmul.f32 %v5386_v4, %v739_v35  ;;  %v741_v42 = vld [vmem:[%s9044_s2 + $0x1d0] sm:$0xff]  ;;  %v1835_v4 = vmul.f32 %v7442_v54, %v7290_v14 }
 0x2c4   :  { %v7448_v2 = vpop.permute.xlu0 %2401  ;;  %v2241_v26 = vmul.f32 %v9274_v29, %v7350_v3  ;;  %v1824_v35 = vmul.f32 %v7450_v33, %v7251_v27  ;;  %v799_v14 = vld [vmem:[%s9045_s3 + $0x1a0] sm:$0xff] }
 0x2c5   :  { %vm2684_vm7 = vcmp.ge.f32.partialorder %v2620_v28, 0.0  ;;  %v2748_v60 = vmul.f32 0.25, %v2620_v28  ;;  %2217 = vperm.xlu0 %5264, %v7442_v54   ;;  %v1893_v47 = vsub.f32 %v804_v1, %v1829_v20  ;;  %v9279_v1 = vld [vmem:[#allocation31_spill] sm:$0xff] }
 0x2c6   :  { %2162 = vperm.xlu1 %5263, %v7450_v33   ;;  %v2003_v7 = vpop.permute.xlu1 %2002  ;;  %v2625_v36 = vadd.f32 %v7411_v41, %v2241_v26  ;;  %v1831_v41 = vmul.f32 %v7408_v32, %v7256_v24  ;;  %v743_v32 = vld [vmem:[%s9044_s2 + $0x1e0] sm:$0xff]  ;;  %v1888_v27 = vsub.f32 %v799_v14, %v1824_v35 }
 0x2c7   :  { %v2812_v16 = vsel %vm2684_vm7, %v2620_v28, %v2748_v60  ;;  %v5388_v3 = vpop.eup %5387  ;;  %v2240_v60 = vmul.f32 %v2003_v7, %v9275_v51 }
 0x2c8   :  { %v7467_v50 = vpop.permute.xlu0 %2037  ;;  %v5115_v57 = vpack.c.bf16 %v2813_v48, %v2812_v16  ;;  %v2753_v46 = vmul.f32 0.25, %v2625_v36  ;;  %vm2689_vm10 = vcmp.ge.f32.partialorder %v2625_v36, 0.0  ;;  %v7512_v44 = vmul.f32 %v5388_v3, %v741_v42  ;;  %v5390_v21 = vpop.eup %5389 }
 0x2c9   :  { %2541 = vperm.xlu0 %5264, %v1887_v5   ;;  %v806_v5 = vld [vmem:[%s9045_s3 + $0x1d8] sm:$0xff]  ;;  %v2243_v16 = vmul.f32 %v9276_v23, %v7392_v62  ;;  %v7525_v62 = vmul.f32 %v5390_v21, %v743_v32  ;;  %v803_v21 = vld [vmem:[%s9045_s3 + $0x1c0] sm:$0xff] }
 0x2ca   :  { %2536 = vperm.xlu1 %5263, %v1886_v25   ;;  %v2377_v6 = vpop.permute.xlu1 %2376  ;;  %5116 = vmatpush1.bf16.msra.mxu1 %v5115_v57  ;;  %v1895_v19 = vsub.f32 %v806_v5, %v1831_v41  ;;  %v2817_v0 = vsel %vm2689_vm10, %v2625_v36, %v2753_v46  ;;  %v1828_v46 = vmul.f32 %v7494_v12, %v7339_v11 }
 0x2cb   :  { %v2622_v8 = vadd.f32 %v2377_v6, %v2238_v56  ;;  %5117 = vmatprep.subr.bf16.mxu1 %v9241_v43  ;;  %v2627_v25 = vadd.f32 %v7448_v2, %v2243_v16  ;;  %v1833_v56 = vmul.f32 %v7427_v61, %v7272_v13  ;;  %v745_v2 = vld [vmem:[%s9044_s2 + $0x1f0] sm:$0xff] }
 0x2cc   :  { %v7479_v59 = vpop.permute.xlu0 %2411  ;;  %v5392_v22 = vpop.eup %5391  ;;  %v4528_v16 = vld [vmem:[%s9049_s7 + $0x10] sm:$0xff] }
 0x2cd   :  { %vm2686_vm9 = vcmp.ge.f32.partialorder %v2622_v8, 0.0  ;;  %v2750_v30 = vmul.f32 0.25, %v2622_v8  ;;  %2551 = vperm.xlu0 %5264, %v1889_v37   ;;  %v808_v37 = vld [vmem:[%s9045_s3 + $0x1e8] sm:$0xff]  ;;  %v2755_v61 = vmul.f32 0.25, %v2627_v25  ;;  %vm2691_vm12 = vcmp.ge.f32.partialorder %v2627_v25, 0.0 }
 0x2ce   :  { %2172 = vperm.xlu1 %5263, %v7481_v31   ;;  %v2013_v17 = vpop.permute.xlu1 %2012  ;;  %v1897_v52 = vsub.f32 %v808_v37, %v1833_v56  ;;  %v7540_v26 = vmul.f32 %v5392_v22, %v745_v2  ;;  %v1832_v22 = vmul.f32 %v7525_v62, %v7386_v49 }
 0x2cf   :  { %v2814_v38 = vsel %vm2686_vm9, %v2622_v8, %v2750_v30  ;;  %v2242_v53 = vmul.f32 %v2013_v17, %v9277_v10  ;;  %v810_v30 = vld [vmem:[%s9045_s3 + $0x1f8] sm:$0xff]  ;;  %v9278_v17 = vld [vmem:[#allocation30_spill] sm:$0xff]  ;;  %v2819_v3 = vsel %vm2691_vm12, %v2627_v25, %v2755_v61 }
 0x2d0   :  { %v7492_v28 = vpop.permute.xlu0 %2047  ;;  %v5118_v40 = vpack.c.bf16 %v2815_v45, %v2814_v38  ;;  %v1899_v38 = vsub.f32 %v810_v30, %v1835_v4  ;;  %v9281_v25 = vld [vmem:[#allocation33_spill] sm:$0xff]  ;;  %v9282_v10 = vld [vmem:[#allocation34_spill] sm:$0xff]  ;;  %v1834_v35 = vmul.f32 %v7540_v26, %v7406_v15 }
 0x2d1   :  { %2561 = vperm.xlu0 %5264, %v1891_v9   ;;  %v2245_v9 = vmul.f32 %v9278_v17, %v7430_v55  ;;  %v1826_v55 = vmul.f32 %v7481_v31, %v7311_v34  ;;  %v9283_v17 = vld [vmem:[#allocation35_spill] sm:$0xff] }
 0x2d2   :  { %2182 = vperm.xlu1 %5263, %v7494_v12   ;;  %v2387_v18 = vpop.permute.xlu1 %2386  ;;  %5119 = vmatpush1.bf16.msra.mxu1 %v5118_v40 }
 0x2d3   :  { %v2624_v39 = vadd.f32 %v2387_v18, %v2240_v60  ;;  %5120 = vmatprep.subr.bf16.mxu1 %v9241_v43  ;;  %v2629_v36 = vadd.f32 %v7479_v59, %v2245_v9  ;;  %v801_v60 = vld [vmem:[%s9045_s3 + $0x1b0] sm:$0xff]  ;;  %v4526_v59 = vld [vmem:[%s9049_s7] sm:$0xff] }
 0x2d4   :  { %v7510_v7 = vpop.permute.xlu0 %2421  ;;  %v1890_v31 = vsub.f32 %v801_v60, %v1826_v55 }
 0x2d5   :  { %vm2688_vm11 = vcmp.ge.f32.partialorder %v2624_v39, 0.0  ;;  %v2752_v24 = vmul.f32 0.25, %v2624_v39  ;;  %2571 = vperm.xlu0 %5264, %v1893_v47   ;;  %v2757_v18 = vmul.f32 0.25, %v2629_v36  ;;  %vm2693_vm14 = vcmp.ge.f32.partialorder %v2629_v36, 0.0 }
 0x2d6   :  { %2192 = vperm.xlu1 %5263, %v7512_v44   ;;  %v2023_v48 = vpop.permute.xlu1 %2022 }
 0x2d7   :  { %v2816_v57 = vsel %vm2688_vm11, %v2624_v39, %v2752_v24  ;;  %v2244_v51 = vmul.f32 %v2023_v48, %v9279_v1  ;;  %v9280_v39 = vld [vmem:[#allocation32_spill] sm:$0xff]  ;;  %v2821_v11 = vsel %vm2693_vm14, %v2629_v36, %v2757_v18  ;;  %v4527_v1 = vld [vmem:[%s9049_s7 + $0x8] sm:$0xff] }
 0x2d8   :  { %v7523_v63 = vpop.permute.xlu0 %2057  ;;  %v5121_v6 = vpack.c.bf16 %v2817_v0, %v2816_v57  ;;  %v2247_v47 = vmul.f32 %v9280_v39, %v7467_v50  ;;  %v1892_v50 = vsub.f32 %v803_v21, %v1828_v46  ;;  %v805_v0 = vld [vmem:[%s9045_s3 + $0x1d0] sm:$0xff]  ;;  %v4529_v39 = vld [vmem:[%s9049_s7 + $0x18] sm:$0xff] }
 0x2d9   :  { %2581 = vperm.xlu0 %5264, %v1895_v19   ;;  %v1830_v19 = vmul.f32 %v7512_v44, %v7364_v58 }
 0x2da   :  { %2202 = vperm.xlu1 %5263, %v7525_v62   ;;  %v2397_v13 = vpop.permute.xlu1 %2396  ;;  %5122 = vmatpush1.bf16.msra.mxu1 %v5121_v6  ;;  %v2631_v24 = vadd.f32 %v7510_v7, %v2247_v47  ;;  %v4530_v7 = vld [vmem:[%s9049_s7 + $0x20] sm:$0xff] }
 0x2db   :  { %v2626_v8 = vadd.f32 %v2397_v13, %v2242_v53  ;;  %5123 = vmatprep.subr.bf16.mxu1 %v9241_v43  ;;  %v1894_v44 = vsub.f32 %v805_v0, %v1830_v19  ;;  %v2249_v53 = vmul.f32 %v9282_v10, %v7492_v28  ;;  %v807_v13 = vld [vmem:[%s9045_s3 + $0x1e0] sm:$0xff] }
 0x2dc   :  { %v7538_v29 = vpop.permute.xlu0 %2431  ;;  %v2759_v6 = vmul.f32 0.25, %v2631_v24  ;;  %vm2695_vm0 = vcmp.ge.f32.partialorder %v2631_v24, 0.0  ;;  %v1896_v28 = vsub.f32 %v807_v13, %v1832_v22  ;;  %v2865_v22 = vld [vmem:[%s9046_s4 + $0x28] sm:$0xff] }
 0x2dd   :  { %vm2690_vm13 = vcmp.ge.f32.partialorder %v2626_v8, 0.0  ;;  %v2754_v20 = vmul.f32 0.25, %v2626_v8  ;;  %2591 = vperm.xlu0 %5264, %v1897_v52   ;;  %v2633_v52 = vadd.f32 %v7538_v29, %v2249_v53  ;;  %v4534_v29 = vld [vmem:[%s9049_s7 + $0x40] sm:$0xff]  ;;  %v9288_v53 = vld [vmem:[#allocation40_spill] sm:$0xff] }
 0x2de   :  { %v2033_v54 = vpop.permute.xlu1 %2032  ;;  %2212 = vperm.xlu1 %5263, %v7540_v26   ;;  %v2823_v49 = vsel %vm2695_vm0, %v2631_v24, %v2759_v6  ;;  %v4540_v24 = vld [vmem:[%s9049_s7 + $0x70] sm:$0xff]  ;;  %v2860_v6 = vld [vmem:[%s9046_s4] sm:$0xff] }
 0x2df   :  { %v2818_v45 = vsel %vm2690_vm13, %v2626_v8, %v2754_v20  ;;  %v2246_v57 = vmul.f32 %v2033_v54, %v9281_v25  ;;  %v4532_v8 = vld [vmem:[%s9049_s7 + $0x30] sm:$0xff]  ;;  %v2761_v54 = vmul.f32 0.25, %v2633_v52  ;;  %vm2697_vm2 = vcmp.ge.f32.partialorder %v2633_v52, 0.0 }
 0x2e0   :  { %v7554_v40 = vpop.permute.xlu0 %2067  ;;  %v5124_v33 = vpack.c.bf16 %v2819_v3, %v2818_v45  ;;  %v809_v20 = vld [vmem:[%s9045_s3 + $0x1f0] sm:$0xff] }
 0x2e1   :  { %2601 = vperm.xlu0 %5264, %v1899_v38   ;;  %v1898_v26 = vsub.f32 %v809_v20, %v1834_v35  ;;  %v9284_v38 = vld [vmem:[#allocation36_spill] sm:$0xff]  ;;  %v2825_v60 = vsel %vm2697_vm2, %v2633_v52, %v2761_v54  ;;  %v2864_v52 = vld [vmem:[%s9046_s4 + $0x20] sm:$0xff]  ;;  %v2869_v20 = vld [vmem:[%s9046_s4 + $0x48] sm:$0xff] }
 0x2e2   :  { %v2407_v42 = vpop.permute.xlu1 %2406  ;;  %2546 = vperm.xlu1 %5263, %v1888_v27   ;;  %5125 = vmatpush1.bf16.msra.mxu1 %v5124_v33  ;;  %v2251_v45 = vmul.f32 %v9284_v38, %v7523_v63  ;;  %v4536_v33 = vld [vmem:[%s9049_s7 + $0x50] sm:$0xff]  ;;  %v2868_v54 = vld [vmem:[%s9046_s4 + $0x40] sm:$0xff]  ;;  %v2873_v38 = vld [vmem:[%s9046_s4 + $0x68] sm:$0xff] }
 0x2e3   :  { %v2628_v41 = vadd.f32 %v2407_v42, %v2244_v51  ;;  %5126 = vmatprep.subr.bf16.mxu1 %v9241_v43 }
 0x2e4   :  { %v7566_v34 = vpop.permute.xlu0 %2441 }
 0x2e5   :  { %vm2692_vm15 = vcmp.ge.f32.partialorder %v2628_v41, 0.0  ;;  %v2756_v5 = vmul.f32 0.25, %v2628_v41  ;;  %4560 = vperm.xlu0 %5264, %v4526_v59   ;;  %v2635_v55 = vadd.f32 %v7566_v34, %v2251_v45  ;;  %v9285_v59 = vld [vmem:[#allocation37_spill] sm:$0xff] }
 0x2e6   :  { %v2043_v23 = vpop.permute.xlu1 %2042  ;;  %2556 = vperm.xlu1 %5263, %v1890_v31   ;;  %v4538_v31 = vld [vmem:[%s9049_s7 + $0x60] sm:$0xff] }
 0x2e7   :  { %v2820_v32 = vsel %vm2692_vm15, %v2628_v41, %v2756_v5  ;;  %v2248_v9 = vmul.f32 %v2043_v23, %v9283_v17  ;;  %v2763_v34 = vmul.f32 0.25, %v2635_v55  ;;  %vm2699_vm5 = vcmp.ge.f32.partialorder %v2635_v55, 0.0  ;;  %v9286_v5 = vld [vmem:[#allocation38_spill] sm:$0xff]  ;;  %v9289_v17 = vld [vmem:[#allocation41_spill] sm:$0xff] }
 0x2e8   :  { %v7579_v12 = vpop.permute.xlu0 %2077  ;;  %v5127_v48 = vpack.c.bf16 %v2821_v11, %v2820_v32  ;;  %v2253_v21 = vmul.f32 %v9286_v5, %v7554_v40  ;;  %v2863_v32 = vld [vmem:[%s9046_s4 + $0x18] sm:$0xff]  ;;  %v2876_v5 = vld [vmem:[%s9046_s4 + $0x80] sm:$0xff] }
 0x2e9   :  { %4570 = vperm.xlu0 %5264, %v4528_v16   ;;  %3277 = vmatprep.mubr.f32.mxu0 %v2863_v32 }
 0x2ea   :  { %v2417_v56 = vpop.permute.xlu1 %2416  ;;  %2566 = vperm.xlu1 %5263, %v1892_v50   ;;  %5128 = vmatpush1.bf16.msra.mxu1 %v5127_v48  ;;  %v4531_v50 = vld [vmem:[%s9049_s7 + $0x28] sm:$0xff]  ;;  %v2827_v48 = vsel %vm2699_vm5, %v2635_v55, %v2763_v34 }
 0x2eb   :  { %v2630_v37 = vadd.f32 %v2417_v56, %v2246_v57  ;;  %5129 = vmatprep.subr.bf16.mxu1 %v9241_v43  ;;  %v9287_v57 = vld [vmem:[#allocation39_spill] sm:$0xff] }
 0x2ec   :  { %v7591_v58 = vpop.permute.xlu0 %2451 }
 0x2ed   :  { %vm2694_vm1 = vcmp.ge.f32.partialorder %v2630_v37, 0.0  ;;  %v2758_v2 = vmul.f32 0.25, %v2630_v37  ;;  %4580 = vperm.xlu0 %5264, %v4530_v7   ;;  %v2637_v11 = vadd.f32 %v7591_v58, %v2253_v21  ;;  %v4542_v7 = vld [vmem:[%s9049_s7 + $0x80] sm:$0xff] }
 0x2ee   :  { %v2053_v61 = vpop.permute.xlu1 %2052  ;;  %2576 = vperm.xlu1 %5263, %v1894_v44   ;;  %v4533_v44 = vld [vmem:[%s9049_s7 + $0x38] sm:$0xff] }
 0x2ef   :  { %v2822_v4 = vsel %vm2694_vm1, %v2630_v37, %v2758_v2  ;;  %v2250_v18 = vmul.f32 %v2053_v61, %v9285_v59  ;;  %v2765_v37 = vmul.f32 0.25, %v2637_v11  ;;  %vm2701_vm7 = vcmp.ge.f32.partialorder %v2637_v11, 0.0 }
 0x2f0   :  { %v7604_v62 = vpop.permute.xlu0 %2087  ;;  %v5130_v30 = vpack.c.bf16 %v2823_v49, %v2822_v4  ;;  %v2255_v2 = vmul.f32 %v9288_v53, %v7579_v12  ;;  %v4535_v12 = vld [vmem:[%s9049_s7 + $0x48] sm:$0xff] }
 0x2f1   :  { %4590 = vperm.xlu0 %5264, %v4532_v8   ;;  %v4544_v8 = vld [vmem:[%s9049_s7 + $0x90] sm:$0xff]  ;;  %v2829_v4 = vsel %vm2701_vm7, %v2637_v11, %v2765_v37 }
 0x2f2   :  { %v2427_v14 = vpop.permute.xlu1 %2426  ;;  %2586 = vperm.xlu1 %5263, %v1896_v28   ;;  %5131 = vmatpush1.bf16.msra.mxu1 %v5130_v30  ;;  %v9292_v11 = vld [vmem:[#allocation44_spill] sm:$0xff] }
 0x2f3   :  { %v2632_v36 = vadd.f32 %v2427_v14, %v2248_v9  ;;  %5132 = vmatprep.subr.bf16.mxu1 %v9241_v43 }
 0x2f4   :  { %v7616_v15 = vpop.permute.xlu0 %2461 }
 0x2f5   :  { %vm2696_vm3 = vcmp.ge.f32.partialorder %v2632_v36, 0.0  ;;  %v2760_v3 = vmul.f32 0.25, %v2632_v36  ;;  %4600 = vperm.xlu0 %5264, %v4534_v29   ;;  %v2639_v49 = vadd.f32 %v7616_v15, %v2255_v2  ;;  %v4546_v29 = vld [vmem:[%s9049_s7 + $0xa0] sm:$0xff] }
 0x2f6   :  { %v2063_v27 = vpop.permute.xlu1 %2062  ;;  %2596 = vperm.xlu1 %5263, %v1898_v26   ;;  %v4537_v26 = vld [vmem:[%s9049_s7 + $0x58] sm:$0xff]  ;;  %v2884_v2 = vld [vmem:[%s9046_s4 + $0xc0] sm:$0xff] }
 0x2f7   :  { %v2824_v51 = vsel %vm2696_vm3, %v2632_v36, %v2760_v3  ;;  %v2252_v0 = vmul.f32 %v2063_v27, %v9287_v57  ;;  %v2767_v36 = vmul.f32 0.25, %v2639_v49  ;;  %vm2703_vm9 = vcmp.ge.f32.partialorder %v2639_v49, 0.0  ;;  %v9290_v3 = vld [vmem:[#allocation42_spill] sm:$0xff] }
 0x2f8   :  { %v7627_v42 = vpop.permute.xlu0 %2097  ;;  %v5133_v63 = vpack.c.bf16 %v2825_v60, %v2824_v51  ;;  %v2257_v27 = vmul.f32 %v9290_v3, %v7604_v62  ;;  %v2872_v51 = vld [vmem:[%s9046_s4 + $0x60] sm:$0xff]  ;;  %v4539_v62 = vld [vmem:[%s9049_s7 + $0x68] sm:$0xff] }
 0x2f9   :  { %4610 = vperm.xlu0 %5264, %v4536_v33   ;;  %v2831_v60 = vsel %vm2703_vm9, %v2639_v49, %v2767_v36  ;;  %v2880_v57 = vld [vmem:[%s9046_s4 + $0xa0] sm:$0xff]  ;;  %v9295_v36 = vld [vmem:[#allocation47_spill] sm:$0xff] }
 0x2fa   :  { %v2437_v41 = vpop.permute.xlu1 %2436  ;;  %4565 = vperm.xlu1 %5263, %v4527_v1   ;;  %5134 = vmatpush1.bf16.msra.mxu1 %v5133_v63  ;;  %v4547_v1 = vld [vmem:[%s9049_s7 + $0xa8] sm:$0xff] }
 0x2fb   :  { %v2634_v46 = vadd.f32 %v2437_v41, %v2250_v18  ;;  %5135 = vmatprep.subr.bf16.mxu1 %v9241_v43  ;;  %v9294_v49 = vld [vmem:[#allocation46_spill] sm:$0xff] }
 0x2fc   :  { %v7637_v47 = vpop.permute.xlu0 %2471 }
 0x2fd   :  { %vm2698_vm6 = vcmp.ge.f32.partialorder %v2634_v46, 0.0  ;;  %v2762_v23 = vmul.f32 0.25, %v2634_v46  ;;  %4620 = vperm.xlu0 %5264, %v4538_v31   ;;  %v2641_v63 = vadd.f32 %v7637_v47, %v2257_v27  ;;  %v9291_v31 = vld [vmem:[#allocation43_spill] sm:$0xff] }
 0x2fe   :  { %v2073_v16 = vpop.permute.xlu1 %2072  ;;  %4575 = vperm.xlu1 %5263, %v4529_v39   ;;  %v4548_v47 = vld [vmem:[%s9049_s7 + $0xb0] sm:$0xff]  ;;  %v2897_v27 = vld [vmem:[%s9046_s4 + $0x128] sm:$0xff] }
 0x2ff   :  { %v2826_v40 = vsel %vm2698_vm6, %v2634_v46, %v2762_v23  ;;  %v2254_v9 = vmul.f32 %v2073_v16, %v9289_v17  ;;  %v2877_v46 = vld [vmem:[%s9046_s4 + $0x88] sm:$0xff]  ;;  %v2769_v21 = vmul.f32 0.25, %v2641_v63  ;;  %v4541_v16 = vld [vmem:[%s9049_s7 + $0x78] sm:$0xff]  ;;  %vm2705_vm11 = vcmp.ge.f32.partialorder %v2641_v63, 0.0  ;;  %v2888_v17 = vld [vmem:[%s9046_s4 + $0xe0] sm:$0xff] }
 0x300   :  { %v7651_v19 = vpop.permute.xlu0 %2107  ;;  %v5136_v25 = vpack.c.bf16 %v2827_v48, %v2826_v40 }
 0x301   :  { %4630 = vperm.xlu0 %5264, %v4540_v24   ;;  %v2881_v24 = vld [vmem:[%s9046_s4 + $0xa8] sm:$0xff] }
 0x302   :  { %v2447_v56 = vpop.permute.xlu1 %2446  ;;  %4585 = vperm.xlu1 %5263, %v4531_v50   ;;  %5137 = vmatpush1.bf16.msra.mxu1 %v5136_v25  ;;  %v2259_v50 = vmul.f32 %v9292_v11, %v7627_v42  ;;  %v4549_v25 = vld [vmem:[%s9049_s7 + $0xb8] sm:$0xff]  ;;  %v4543_v42 = vld [vmem:[%s9049_s7 + $0x88] sm:$0xff] }
 0x303   :  { %v2636_v58 = vadd.f32 %v2447_v56, %v2252_v0  ;;  %5186 = vmatprep.subr.bf16.mxu1 %v9241_v43  ;;  %v2833_v0 = vsel %vm2705_vm11, %v2641_v63, %v2769_v21  ;;  %v2896_v63 = vld [vmem:[%s9046_s4 + $0x120] sm:$0xff] }
 0x304   :  { %v7667_v10 = vpop.permute.xlu0 %2481 }
 0x305   :  { %vm2700_vm8 = vcmp.ge.f32.partialorder %v2636_v58, 0.0  ;;  %v2764_v13 = vmul.f32 0.25, %v2636_v58  ;;  %4640 = vperm.xlu0 %5264, %v4542_v7   ;;  %3053 = vmatmul.mubr.f32.vlgmr.msra.gmra.mrb[0].mxu1 %v2860_v6  ;;  %v2643_v56 = vadd.f32 %v7667_v10, %v2259_v50  ;;  %v4550_v10 = vld [vmem:[%s9049_s7 + $0xc0] sm:$0xff] }
 0x306   :  { %v2083_v61 = vpop.permute.xlu1 %2082  ;;  %4595 = vperm.xlu1 %5263, %v4533_v44   ;;  %3057 = vmatprep.mubr.f32.mxu1 %v2865_v22  ;;  %v2885_v22 = vld [vmem:[%s9046_s4 + $0xc8] sm:$0xff] }
 0x307   :  { %v2828_v28 = vsel %vm2700_vm8, %v2636_v58, %v2764_v13  ;;  %v2256_v34 = vmul.f32 %v2083_v61, %v9291_v31  ;;  %v9293_v58 = vld [vmem:[#allocation45_spill] sm:$0xff]  ;;  %v2771_v13 = vmul.f32 0.25, %v2643_v56  ;;  %vm2707_vm13 = vcmp.ge.f32.partialorder %v2643_v56, 0.0 }
 0x308   :  { %v5139_v30 = vpack.c.bf16 %v2829_v4, %v2828_v28  ;;  %v7681_v35 = vpop.permute.xlu0 %2117  ;;  %v2261_v28 = vmul.f32 %v9294_v49, %v7651_v19 }
 0x309   :  { %4650 = vperm.xlu0 %5264, %v4544_v8   ;;  %3058 = vmatmul.mubr.f32.gmra.mrb[2].mxu1 %v2864_v52  ;;  %v4545_v8 = vld [vmem:[%s9049_s7 + $0x98] sm:$0xff]  ;;  %v2889_v52 = vld [vmem:[%s9046_s4 + $0xe8] sm:$0xff] }
 0x30a   :  { %v2457_v14 = vpop.permute.xlu1 %2456  ;;  %4605 = vperm.xlu1 %5263, %v4535_v12   ;;  %5140 = vmatpush1.bf16.msra.mxu0 %v5139_v30 }
 0x30b   :  { %v2638_v15 = vadd.f32 %v2457_v14, %v2254_v9  ;;  %5202 = vmatpush1.bf16.msra.mxu1 %v5139_v30  ;;  %5141 = vmatprep.subr.bf16.mxu0 %v9241_v43  ;;  %v2835_v9 = vsel %vm2707_vm13, %v2643_v56, %v2771_v13  ;;  %v9300_v13 = vld [vmem:[#allocation52_spill] sm:$0xff] }
 0x30c   :  { %v7700_v45 = vpop.permute.xlu0 %2491  ;;  %5187 = vmatprep.subr.bf16.mxu1 %v9241_v43  ;;  %3062 = vmatprep.mubr.f32.mxu1 %v2869_v20 }
 0x30d   :  { %vm2702_vm10 = vcmp.ge.f32.partialorder %v2638_v15, 0.0  ;;  %v2766_v33 = vmul.f32 0.25, %v2638_v15  ;;  %4660 = vperm.xlu0 %5264, %v4546_v29   ;;  %3063 = vmatmul.mubr.f32.gmra.mrb[4].mxu1 %v2868_v54  ;;  %v2645_v20 = vadd.f32 %v7700_v45, %v2261_v28 }
 0x30e   :  { %v2093_v55 = vpop.permute.xlu1 %2092  ;;  %4615 = vperm.xlu1 %5263, %v4537_v26   ;;  %3067 = vmatprep.mubr.f32.mxu1 %v2873_v38  ;;  %v2892_v38 = vld [vmem:[%s9046_s4 + $0x100] sm:$0xff] }
 0x30f   :  { %v2830_v59 = vsel %vm2702_vm10, %v2638_v15, %v2766_v33  ;;  %v2258_v44 = vmul.f32 %v2093_v55, %v9293_v58  ;;  %v2893_v15 = vld [vmem:[%s9046_s4 + $0x108] sm:$0xff]  ;;  %v2773_v3 = vmul.f32 0.25, %v2645_v20  ;;  %vm2709_vm15 = vcmp.ge.f32.partialorder %v2645_v20, 0.0  ;;  %v9296_v55 = vld [vmem:[#allocation48_spill] sm:$0xff] }
 0x310   :  { %v5142_v18 = vpack.c.bf16 %v2831_v60, %v2830_v59  ;;  %v7715_v41 = vpop.permute.xlu0 %2127 }
 0x311   :  { %4665 = vperm.xlu0 %5264, %v4547_v1   ;;  %3068 = vmatmul.mubr.f32.gmra.mrb[6].mxu1 %v2872_v51  ;;  %v2263_v1 = vmul.f32 %v9296_v55, %v7681_v35  ;;  %v2837_v59 = vsel %vm2709_vm15, %v2645_v20, %v2773_v3  ;;  %v2901_v35 = vld [vmem:[%s9046_s4 + $0x148] sm:$0xff] }
 0x312   :  { %v2467_v39 = vpop.permute.xlu1 %2466  ;;  %4625 = vperm.xlu1 %5263, %v4539_v62   ;;  %5143 = vmatpush1.bf16.msra.mxu0 %v5142_v18 }
 0x313   :  { %v2640_v23 = vadd.f32 %v2467_v39, %v2256_v34  ;;  %5203 = vmatpush1.bf16.msra.mxu1 %v5142_v18  ;;  %5144 = vmatprep.subr.bf16.mxu0 %v9241_v43 }
 0x314   :  { %v7734_v32 = vpop.permute.xlu0 %2501  ;;  %5188 = vmatprep.subr.bf16.mxu1 %v9241_v43  ;;  %3072 = vmatprep.mubr.f32.mxu1 %v2877_v46  ;;  %v9297_v46 = vld [vmem:[#allocation49_spill] sm:$0xff] }
 0x315   :  { %vm2704_vm12 = vcmp.ge.f32.partialorder %v2640_v23, 0.0  ;;  %v2768_v40 = vmul.f32 0.25, %v2640_v23  ;;  %4670 = vperm.xlu0 %5264, %v4548_v47   ;;  %3073 = vmatmul.mubr.f32.gmra.mrb[8].mxu1 %v2876_v5  ;;  %v2647_v62 = vadd.f32 %v7734_v32, %v2263_v1  ;;  %v2900_v5 = vld [vmem:[%s9046_s4 + $0x140] sm:$0xff] }
 0x316   :  { %v2103_v48 = vpop.permute.xlu1 %2102  ;;  %4635 = vperm.xlu1 %5263, %v4541_v16   ;;  %3077 = vmatprep.mubr.f32.mxu1 %v2881_v24  ;;  %v2905_v16 = vld [vmem:[%s9046_s4 + $0x168] sm:$0xff] }
 0x317   :  { %v2832_v7 = vsel %vm2704_vm12, %v2640_v23, %v2768_v40  ;;  %v2260_v19 = vmul.f32 %v2103_v48, %v9295_v36  ;;  %v2775_v21 = vmul.f32 0.25, %v2647_v62  ;;  %vm2711_vm1 = vcmp.ge.f32.partialorder %v2647_v62, 0.0  ;;  %v9298_v32 = vld [vmem:[#allocation50_spill] sm:$0xff] }
 0x318   :  { %v5145_v6 = vpack.c.bf16 %v2833_v0, %v2832_v7  ;;  %v7749_v37 = vpop.permute.xlu0 %2137  ;;  %v2265_v11 = vmul.f32 %v9298_v32, %v7715_v41  ;;  %v2904_v48 = vld [vmem:[%s9046_s4 + $0x160] sm:$0xff]  ;;  %v2909_v41 = vld [vmem:[%s9046_s4 + $0x188] sm:$0xff] }
 0x319   :  { %4675 = vperm.xlu0 %5264, %v4549_v25   ;;  %3078 = vmatmul.mubr.f32.gmra.mrb[10].mxu1 %v2880_v57  ;;  %v2839_v25 = vsel %vm2711_vm1, %v2647_v62, %v2775_v21 }
 0x31a   :  { %v2477_v53 = vpop.permute.xlu1 %2476  ;;  %4645 = vperm.xlu1 %5263, %v4543_v42   ;;  %5146 = vmatpush1.bf16.msra.mxu0 %v5145_v6  ;;  %v9299_v42 = vld [vmem:[#allocation51_spill] sm:$0xff] }
 0x31b   :  { %v2642_v61 = vadd.f32 %v2477_v53, %v2258_v44  ;;  %5204 = vmatpush1.bf16.msra.mxu1 %v5145_v6  ;;  %5147 = vmatprep.subr.bf16.mxu0 %v9241_v43  ;;  %v2908_v44 = vld [vmem:[%s9046_s4 + $0x180] sm:$0xff] }
 0x31c   :  { %v7768_v4 = vpop.permute.xlu0 %2511  ;;  %5189 = vmatprep.subr.bf16.mxu1 %v9241_v43  ;;  %3082 = vmatprep.mubr.f32.mxu1 %v2885_v22 }
 0x31d   :  { %vm2706_vm14 = vcmp.ge.f32.partialorder %v2642_v61, 0.0  ;;  %v2770_v12 = vmul.f32 0.25, %v2642_v61  ;;  %4680 = vperm.xlu0 %5264, %v4550_v10   ;;  %3083 = vmatmul.mubr.f32.gmra.mrb[12].mxu1 %v2884_v2  ;;  %v2649_v57 = vadd.f32 %v7768_v4, %v2265_v11  ;;  %v2913_v10 = vld [vmem:[%s9046_s4 + $0x1a8] sm:$0xff]  ;;  %v2912_v4 = vld [vmem:[%s9046_s4 + $0x1a0] sm:$0xff] }
 0x31e   :  { %v2113_v30 = vpop.permute.xlu1 %2112  ;;  %4655 = vperm.xlu1 %5263, %v4545_v8   ;;  %3087 = vmatprep.mubr.f32.mxu1 %v2889_v52 }
 0x31f   :  { %v2834_v14 = vsel %vm2706_vm14, %v2642_v61, %v2770_v12  ;;  %v2262_v39 = vmul.f32 %v2113_v30, %v9297_v46  ;;  %v2777_v22 = vmul.f32 0.25, %v2649_v57  ;;  %vm2713_vm3 = vcmp.ge.f32.partialorder %v2649_v57, 0.0 }
 0x320   :  { %v5148_v29 = vpack.c.bf16 %v2835_v9, %v2834_v14  ;;  %v7777_v54 = vpop.permute.xlu0 %2147  ;;  %v2267_v61 = vmul.f32 %v9300_v13, %v7749_v37  ;;  %v9301_v9 = vld [vmem:[#allocation53_spill] sm:$0xff]  ;;  %v2917_v37 = vld [vmem:[%s9046_s4 + $0x1c8] sm:$0xff] }
 0x321   :  { %3088 = vmatmul.mubr.f32.gmra.mrb[14].mxu1 %v2888_v17  ;;  %v2841_v49 = vsel %vm2713_vm3, %v2649_v57, %v2777_v22  ;;  %v2936_v22 = vld [vmem:[%s9046_s4 + $0x260] sm:$0xff] }
 0x322   :  { %v2487_v26 = vpop.permute.xlu1 %2486  ;;  %5149 = vmatpush1.bf16.msra.mxu0 %v5148_v29  ;;  %5205 = vmatpush1.bf16.msra.mxu1 %v5148_v29  ;;  %v2916_v29 = vld [vmem:[%s9046_s4 + $0x1c0] sm:$0xff] }
 0x323   :  { %v2644_v45 = vadd.f32 %v2487_v26, %v2260_v19  ;;  %5150 = vmatprep.subr.bf16.mxu0 %v9241_v43  ;;  %5190 = vmatprep.subr.bf16.mxu1 %v9241_v43 }
 0x324   :  { %v7791_v33 = vpop.permute.xlu0 %2521  ;;  %3092 = vmatprep.mubr.f32.mxu1 %v2893_v15  ;;  %v2921_v15 = vld [vmem:[%s9046_s4 + $0x1e8] sm:$0xff] }
 0x325   :  { %vm2708_vm0 = vcmp.ge.f32.partialorder %v2644_v45, 0.0  ;;  %v2772_v51 = vmul.f32 0.25, %v2644_v45  ;;  %3093 = vmatmul.mubr.f32.gmra.mrb[16].mxu1 %v2892_v38  ;;  %v2651_v28 = vadd.f32 %v7791_v33, %v2267_v61  ;;  %v9302_v38 = vld [vmem:[#allocation54_spill] sm:$0xff] }
 0x326   :  { %v2123_v60 = vpop.permute.xlu1 %2122  ;;  %3097 = vmatprep.mubr.f32.mxu1 %v2897_v27  ;;  %v2269_v3 = vmul.f32 %v9302_v38, %v7777_v54  ;;  %v2920_v33 = vld [vmem:[%s9046_s4 + $0x1e0] sm:$0xff]  ;;  %v2925_v54 = vld [vmem:[%s9046_s4 + $0x208] sm:$0xff] }
 0x327   :  { %v2836_v18 = vsel %vm2708_vm0, %v2644_v45, %v2772_v51  ;;  %v2264_v6 = vmul.f32 %v2123_v60, %v9299_v42  ;;  %v2779_v36 = vmul.f32 0.25, %v2651_v28  ;;  %vm2715_vm6 = vcmp.ge.f32.partialorder %v2651_v28, 0.0  ;;  %v2932_v42 = vld [vmem:[%s9046_s4 + $0x240] sm:$0xff]  ;;  %v2941_v61 = vld [vmem:[%s9046_s4 + $0x288] sm:$0xff] }
 0x328   :  { %v5151_v31 = vpack.c.bf16 %v2837_v59, %v2836_v18  ;;  %v7799_v34 = vpop.permute.xlu0 %2157  ;;  %v9303_v59 = vld [vmem:[#allocation55_spill] sm:$0xff]  ;;  %v2952_v38 = vld [vmem:[%s9046_s4 + $0x2e0] sm:$0xff] }
 0x329   :  { %3098 = vmatmul.mubr.f32.gmra.mrb[18].mxu1 %v2896_v63  ;;  %v2843_v55 = vsel %vm2715_vm6, %v2651_v28, %v2779_v36 }
 0x32a   :  { %v2497_v47 = vpop.permute.xlu1 %2496  ;;  %5152 = vmatpush1.bf16.msra.mxu0 %v5151_v31  ;;  %5206 = vmatpush1.bf16.msra.mxu1 %v5151_v31  ;;  %v2924_v31 = vld [vmem:[%s9046_s4 + $0x200] sm:$0xff] }
 0x32b   :  { %v2646_v23 = vadd.f32 %v2497_v47, %v2262_v39  ;;  %5153 = vmatprep.subr.bf16.mxu0 %v9241_v43  ;;  %5191 = vmatprep.subr.bf16.mxu1 %v9241_v43 }
 0x32c   :  { %v7813_v24 = vpop.permute.xlu0 %2531  ;;  %3102 = vmatprep.mubr.f32.mxu1 %v2901_v35  ;;  %v2929_v35 = vld [vmem:[%s9046_s4 + $0x228] sm:$0xff] }
 0x32d   :  { %vm2710_vm2 = vcmp.ge.f32.partialorder %v2646_v23, 0.0  ;;  %v2774_v50 = vmul.f32 0.25, %v2646_v23  ;;  %3103 = vmatmul.mubr.f32.gmra.mrb[20].mxu1 %v2900_v5  ;;  %v2653_v1 = vadd.f32 %v7813_v24, %v2269_v3 }
 0x32e   :  { %v2133_v40 = vpop.permute.xlu1 %2132  ;;  %3107 = vmatprep.mubr.f32.mxu1 %v2905_v16  ;;  %v9304_v16 = vld [vmem:[#allocation56_spill] sm:$0xff] }
 0x32f   :  { %v2838_v0 = vsel %vm2710_vm2, %v2646_v23, %v2774_v50  ;;  %v2266_v20 = vmul.f32 %v2133_v40, %v9301_v9  ;;  %v2781_v46 = vmul.f32 0.25, %v2653_v1  ;;  %vm2717_vm8 = vcmp.ge.f32.partialorder %v2653_v1, 0.0  ;;  %v2928_v23 = vld [vmem:[%s9046_s4 + $0x220] sm:$0xff] }
 0x330   :  { %v5154_v56 = vpack.c.bf16 %v2839_v25, %v2838_v0  ;;  %v7821_v7 = vpop.permute.xlu0 %2167  ;;  %v2271_v24 = vmul.f32 %v9304_v16, %v7799_v34  ;;  %v2933_v0 = vld [vmem:[%s9046_s4 + $0x248] sm:$0xff] }
 0x331   :  { %3108 = vmatmul.mubr.f32.gmra.mrb[22].mxu1 %v2904_v48  ;;  %v2845_v32 = vsel %vm2717_vm8, %v2653_v1, %v2781_v46  ;;  %v9305_v48 = vld [vmem:[#allocation57_spill] sm:$0xff] }
 0x332   :  { %v2507_v58 = vpop.permute.xlu1 %2506  ;;  %5155 = vmatpush1.bf16.msra.mxu0 %v5154_v56  ;;  %5207 = vmatpush1.bf16.msra.mxu1 %v5154_v56  ;;  %v9310_v46 = vld [vmem:[#allocation61_spill] sm:$0xff] }
 0x333   :  { %v2648_v53 = vadd.f32 %v2507_v58, %v2264_v6  ;;  %5156 = vmatprep.subr.bf16.mxu0 %v9241_v43  ;;  %5192 = vmatprep.subr.bf16.mxu1 %v9241_v43 }
 0x334   :  { %v7835_v2 = vpop.permute.xlu0 %2177  ;;  %3112 = vmatprep.mubr.f32.mxu1 %v2909_v41  ;;  %v2937_v41 = vld [vmem:[%s9046_s4 + $0x268] sm:$0xff] }
 0x335   :  { %vm2712_vm5 = vcmp.ge.f32.partialorder %v2648_v53, 0.0  ;;  %v2776_v8 = vmul.f32 0.25, %v2648_v53  ;;  %3113 = vmatmul.mubr.f32.gmra.mrb[24].mxu1 %v2908_v44 }
 0x336   :  { %v2143_v52 = vpop.permute.xlu1 %2142  ;;  %3117 = vmatprep.mubr.f32.mxu1 %v2913_v10 }
 0x337   :  { %v2840_v12 = vsel %vm2712_vm5, %v2648_v53, %v2776_v8  ;;  %v2268_v62 = vmul.f32 %v2143_v52, %v9303_v59 }
 0x338   :  { %v5157_v30 = vpack.c.bf16 %v2841_v49, %v2840_v12  ;;  %v7843_v17 = vpop.permute.xlu0 %2187  ;;  %v2945_v49 = vld [vmem:[%s9046_s4 + $0x2a8] sm:$0xff]  ;;  %v2944_v12 = vld [vmem:[%s9046_s4 + $0x2a0] sm:$0xff] }
 0x339   :  { %3118 = vmatmul.mubr.f32.gmra.mrb[26].mxu1 %v2912_v4  ;;  %v2940_v4 = vld [vmem:[%s9046_s4 + $0x280] sm:$0xff] }
 0x33a   :  { %v2517_v14 = vpop.permute.xlu1 %2516  ;;  %5158 = vmatpush1.bf16.msra.mxu0 %v5157_v30  ;;  %5208 = vmatpush1.bf16.msra.mxu1 %v5157_v30  ;;  %v2949_v30 = vld [vmem:[%s9046_s4 + $0x2c8] sm:$0xff] }
 0x33b   :  { %v2650_v19 = vadd.f32 %v2517_v14, %v2266_v20  ;;  %5159 = vmatprep.subr.bf16.mxu0 %v9241_v43  ;;  %5193 = vmatprep.subr.bf16.mxu1 %v9241_v43  ;;  %v2953_v14 = vld [vmem:[%s9046_s4 + $0x2e8] sm:$0xff] }
 0x33c   :  { %v7857_v26 = vpop.permute.xlu0 %2197  ;;  %3122 = vmatprep.mubr.f32.mxu1 %v2917_v37  ;;  %v2948_v37 = vld [vmem:[%s9046_s4 + $0x2c0] sm:$0xff] }
 0x33d   :  { %vm2714_vm7 = vcmp.ge.f32.partialorder %v2650_v19, 0.0  ;;  %v2778_v45 = vmul.f32 0.25, %v2650_v19  ;;  %3123 = vmatmul.mubr.f32.gmra.mrb[28].mxu1 %v2916_v29  ;;  %v9306_v29 = vld [vmem:[#allocation58_spill] sm:$0xff] }
 0x33e   :  { %v2153_v27 = vpop.permute.xlu1 %2152  ;;  %3127 = vmatprep.mubr.f32.mxu1 %v2921_v15  ;;  %v2273_v36 = vmul.f32 %v9306_v29, %v7821_v7  ;;  %v9315_v29 = vld [vmem:[#allocation68_spill] sm:$0xff] }
 0x33f   :  { %v2842_v51 = vsel %vm2714_vm7, %v2650_v19, %v2778_v45  ;;  %v2270_v25 = vmul.f32 %v2153_v27, %v9305_v48  ;;  %v2957_v45 = vld [vmem:[%s9046_s4 + $0x308] sm:$0xff]  ;;  %v9307_v27 = vld [vmem:[#allocation60_spill] sm:$0xff] }
 0x340   :  { %v5160_v60 = vpack.c.bf16 %v2843_v55, %v2842_v51  ;;  %v7865_v63 = vpop.permute.xlu0 %2207  ;;  %v9308_v55 = vld [vmem:[#allocation59_spill] sm:$0xff]  ;;  %v2956_v51 = vld [vmem:[%s9046_s4 + $0x300] sm:$0xff] }
 0x341   :  { %3128 = vmatmul.mubr.f32.gmra.mrb[30].mxu1 %v2920_v33  ;;  %v2275_v33 = vmul.f32 %v9307_v27, %v7835_v2  ;;  %v9312_v48 = vld [vmem:[#allocation63_spill] sm:$0xff] }
 0x342   :  { %v2527_v18 = vpop.permute.xlu1 %2526  ;;  %5161 = vmatpush1.bf16.msra.mxu0 %v5160_v60  ;;  %5209 = vmatpush1.bf16.msra.mxu1 %v5160_v60 }
 0x343   :  { %v2652_v39 = vadd.f32 %v2527_v18, %v2268_v62  ;;  %5162 = vmatprep.subr.bf16.mxu0 %v9241_v43  ;;  %5194 = vmatprep.subr.bf16.mxu1 %v9241_v43  ;;  %v9309_v18 = vld [vmem:[#allocation62_spill] sm:$0xff] }
 0x344   :  { %v7879_v47 = vpop.permute.xlu0 %2217  ;;  %3132 = vmatprep.mubr.f32.mxu1 %v2925_v54  ;;  %v2961_v54 = vld [vmem:[%s9046_s4 + $0x328] sm:$0xff]  ;;  %v2277_v2 = vmul.f32 %v9309_v18, %v7843_v17  ;;  %v9311_v17 = vld [vmem:[#allocation64_spill] sm:$0xff] }
 0x345   :  { %vm2716_vm9 = vcmp.ge.f32.partialorder %v2652_v39, 0.0  ;;  %v2780_v5 = vmul.f32 0.25, %v2652_v39  ;;  %3133 = vmatmul.mubr.f32.gmra.mrb[32].mxu1 %v2924_v31 }
 0x346   :  { %v7881_v21 = vpop.permute.xlu1 %2162  ;;  %3137 = vmatprep.mubr.f32.mxu1 %v2929_v35 }
 0x347   :  { %v2844_v11 = vsel %vm2716_vm9, %v2652_v39, %v2780_v5  ;;  %v2272_v7 = vmul.f32 %v7881_v21, %v9308_v55  ;;  %v2972_v55 = vld [vmem:[%s9046_s4 + $0x380] sm:$0xff] }
 0x348   :  { %v5163_v50 = vpack.c.bf16 %v2845_v32, %v2844_v11  ;;  %v2542_v40 = vpop.permute.xlu0 %2541 }
 0x349   :  { %v2655_v57 = vadd.f32 %v2542_v40, %v2271_v24  ;;  %3138 = vmatmul.mubr.f32.gmra.mrb[34].mxu1 %v2928_v23  ;;  %v2960_v23 = vld [vmem:[%s9046_s4 + $0x320] sm:$0xff] }
 0x34a   :  { %v2537_v56 = vpop.permute.xlu1 %2536  ;;  %5164 = vmatpush1.bf16.msra.mxu0 %v5163_v50  ;;  %5210 = vmatpush1.bf16.msra.mxu1 %v5163_v50  ;;  %v2279_v50 = vmul.f32 %v9311_v17, %v7857_v26  ;;  %v2964_v26 = vld [vmem:[%s9046_s4 + $0x340] sm:$0xff]  ;;  %v2862_v17 = vld [vmem:[%s9046_s4 + $0x10] sm:$0xff] }
 0x34b   :  { %v2783_v34 = vmul.f32 0.25, %v2655_v57  ;;  %v2654_v6 = vadd.f32 %v2537_v56, %v2270_v25  ;;  %5165 = vmatprep.subr.bf16.mxu0 %v9241_v43  ;;  %5195 = vmatprep.subr.bf16.mxu1 %v9241_v43  ;;  %vm2719_vm10 = vcmp.ge.f32.partialorder %v2655_v57, 0.0 }
 0x34c   :  { %3142 = vmatprep.mubr.f32.mxu1 %v2933_v0  ;;  %v2552_v8 = vpop.permute.xlu0 %2551  ;;  %v2965_v0 = vld [vmem:[%s9046_s4 + $0x348] sm:$0xff] }
 0x34d   :  { %vm2718_vm11 = vcmp.ge.f32.partialorder %v2654_v6, 0.0  ;;  %v2782_v58 = vmul.f32 0.25, %v2654_v6  ;;  %3143 = vmatmul.mubr.f32.gmra.mrb[36].mxu1 %v2932_v42  ;;  %v2847_v53 = vsel %vm2719_vm10, %v2655_v57, %v2783_v34  ;;  %v2657_v3 = vadd.f32 %v2552_v8, %v2273_v36 }
 0x34e   :  { %v2173_v44 = vpop.permute.xlu1 %2172  ;;  %3147 = vmatprep.mubr.f32.mxu1 %v2937_v41  ;;  %v2283_v36 = vmul.f32 %v9315_v29, %v7879_v47  ;;  %v2894_v29 = vld [vmem:[%s9046_s4 + $0x110] sm:$0xff] }
 0x34f   :  { %v2846_v10 = vsel %vm2718_vm11, %v2654_v6, %v2782_v58  ;;  %v2785_v60 = vmul.f32 0.25, %v2657_v3  ;;  %vm2721_vm12 = vcmp.ge.f32.partialorder %v2657_v3, 0.0  ;;  %v2274_v39 = vmul.f32 %v2173_v44, %v9310_v46 }
 0x350   :  { %v5166_v13 = vpack.c.bf16 %v2847_v53, %v2846_v10  ;;  %v2562_v9 = vpop.permute.xlu0 %2561  ;;  %v9313_v53 = vld [vmem:[#allocation66_spill] sm:$0xff] }
 0x351   :  { %3148 = vmatmul.mubr.f32.gmra.mrb[38].mxu1 %v2936_v22  ;;  %v2659_v59 = vadd.f32 %v2562_v9, %v2275_v33  ;;  %v2849_v16 = vsel %vm2721_vm12, %v2657_v3, %v2785_v60  ;;  %v2281_v10 = vmul.f32 %v9313_v53, %v7865_v63  ;;  %v9317_v60 = vld [vmem:[#allocation69_spill] sm:$0xff]  ;;  %v2966_v53 = vld [vmem:[%s9046_s4 + $0x350] sm:$0xff] }
 0x352   :  { %v2183_v52 = vpop.permute.xlu1 %2182  ;;  %5167 = vmatpush1.bf16.msra.mxu0 %v5166_v13  ;;  %5211 = vmatpush1.bf16.msra.mxu1 %v5166_v13  ;;  %v9314_v13 = vld [vmem:[#allocation65_spill] sm:$0xff] }
 0x353   :  { %5168 = vmatprep.subr.bf16.mxu0 %v9241_v43  ;;  %5196 = vmatprep.subr.bf16.mxu1 %v9241_v43  ;;  %v2787_v24 = vmul.f32 0.25, %v2659_v59  ;;  %vm2723_vm14 = vcmp.ge.f32.partialorder %v2659_v59, 0.0  ;;  %v2276_v25 = vmul.f32 %v2183_v52, %v9312_v48  ;;  %v2969_v52 = vld [vmem:[%s9046_s4 + $0x368] sm:$0xff]  ;;  %v2866_v48 = vld [vmem:[%s9046_s4 + $0x30] sm:$0xff] }
 0x354   :  { %3152 = vmatprep.mubr.f32.mxu1 %v2941_v61  ;;  %v2572_v19 = vpop.permute.xlu0 %2571 }
 0x355   :  { %3153 = vmatmul.mubr.f32.gmra.mrb[40].mxu1 %v2940_v4  ;;  %v2661_v5 = vadd.f32 %v2572_v19, %v2277_v2  ;;  %v2851_v41 = vsel %vm2723_vm14, %v2659_v59, %v2787_v24  ;;  %v9316_v19 = vld [vmem:[#allocation67_spill] sm:$0xff]  ;;  %v2976_v2 = vld [vmem:[%s9046_s4 + $0x3a0] sm:$0xff] }
 0x356   :  { %v7914_v28 = vpop.permute.xlu1 %2192  ;;  %3157 = vmatprep.mubr.f32.mxu1 %v2945_v49 }
 0x357   :  { %v2789_v56 = vmul.f32 0.25, %v2661_v5  ;;  %vm2725_vm0 = vcmp.ge.f32.partialorder %v2661_v5, 0.0  ;;  %v2278_v61 = vmul.f32 %v7914_v28, %v9314_v13  ;;  %v2971_v13 = vld [vmem:[%s9046_s4 + $0x378] sm:$0xff] }
 0x358   :  { %v2582_v31 = vpop.permute.xlu0 %2581 }
 0x359   :  { %3158 = vmatmul.mubr.f32.gmra.mrb[42].mxu1 %v2944_v12  ;;  %v2663_v42 = vadd.f32 %v2582_v31, %v2279_v50  ;;  %v2853_v4 = vsel %vm2725_vm0, %v2661_v5, %v2789_v56  ;;  %v2984_v50 = vld [vmem:[%s9046_s4 + $0x3e0] sm:$0xff]  ;;  %v2870_v56 = vld [vmem:[%s9046_s4 + $0x50] sm:$0xff] }
 0x35a   :  { %v7922_v20 = vpop.permute.xlu1 %2202  ;;  %3162 = vmatprep.mubr.f32.mxu1 %v2949_v30  ;;  %v2968_v30 = vld [vmem:[%s9046_s4 + $0x360] sm:$0xff] }
 0x35b   :  { %v2791_v49 = vmul.f32 0.25, %v2663_v42  ;;  %vm2727_vm2 = vcmp.ge.f32.partialorder %v2663_v42, 0.0 }
 0x35c   :  { %v2592_v34 = vpop.permute.xlu0 %2591 }
 0x35d   :  { %3163 = vmatmul.mubr.f32.gmra.mrb[44].mxu1 %v2948_v37  ;;  %v2665_v63 = vadd.f32 %v2592_v34, %v2281_v10  ;;  %v2855_v27 = vsel %vm2727_vm2, %v2663_v42, %v2791_v49  ;;  %v2958_v42 = vld [vmem:[%s9046_s4 + $0x310] sm:$0xff]  ;;  %v2875_v34 = vld [vmem:[%s9046_s4 + $0x78] sm:$0xff] }
 0x35e   :  { %v7932_v15 = vpop.permute.xlu1 %2212  ;;  %3167 = vmatprep.mubr.f32.mxu1 %v2953_v14  ;;  %v2883_v10 = vld [vmem:[%s9046_s4 + $0xb8] sm:$0xff]  ;;  %v2886_v49 = vld [vmem:[%s9046_s4 + $0xd0] sm:$0xff] }
 0x35f   :  { %vm2729_vm5 = vcmp.ge.f32.partialorder %v2665_v63, 0.0  ;;  %v2282_v59 = vmul.f32 %v7932_v15, %v9317_v60  ;;  %v2919_v60 = vld [vmem:[%s9046_s4 + $0x1d8] sm:$0xff] }
 0x360   :  { %v2602_v37 = vpop.permute.xlu0 %2601 }
 0x361   :  { %3168 = vmatmul.mubr.f32.gmra.mrb[46].mxu1 %v2952_v38  ;;  %v2280_v38 = vmul.f32 %v7922_v20, %v9316_v19  ;;  %v2667_v47 = vadd.f32 %v2602_v37, %v2283_v36  ;;  %v2895_v37 = vld [vmem:[%s9046_s4 + $0x118] sm:$0xff]  ;;  %v2982_v36 = vld [vmem:[%s9046_s4 + $0x3d0] sm:$0xff] }
 0x362   :  { %v2547_v1 = vpop.permute.xlu1 %2546  ;;  %3172 = vmatprep.mubr.f32.mxu1 %v2957_v45  ;;  %v2973_v45 = vld [vmem:[%s9046_s4 + $0x388] sm:$0xff]  ;;  %v2899_v19 = vld [vmem:[%s9046_s4 + $0x138] sm:$0xff] }
 0x363   :  { %v2656_v62 = vadd.f32 %v2547_v1, %v2272_v7  ;;  %v2793_v7 = vmul.f32 0.25, %v2665_v63  ;;  %v2795_v46 = vmul.f32 0.25, %v2667_v47  ;;  %vm2731_vm7 = vcmp.ge.f32.partialorder %v2667_v47, 0.0 }
 0x365   :  { %vm2720_vm13 = vcmp.ge.f32.partialorder %v2656_v62, 0.0  ;;  %v2784_v35 = vmul.f32 0.25, %v2656_v62  ;;  %3173 = vmatmul.mubr.f32.gmra.mrb[48].mxu1 %v2956_v51  ;;  %v2857_v31 = vsel %vm2729_vm5, %v2665_v63, %v2793_v7  ;;  %v2979_v63 = vld [vmem:[%s9046_s4 + $0x3b8] sm:$0xff]  ;;  %v2906_v7 = vld [vmem:[%s9046_s4 + $0x170] sm:$0xff] }
 0x366   :  { %v2557_v21 = vpop.permute.xlu1 %2556  ;;  %3177 = vmatprep.mubr.f32.mxu1 %v2961_v54  ;;  %v2977_v54 = vld [vmem:[%s9046_s4 + $0x3a8] sm:$0xff] }
 0x367   :  { %v2848_v32 = vsel %vm2720_vm13, %v2656_v62, %v2784_v35  ;;  %v2658_v11 = vadd.f32 %v2557_v21, %v2274_v39  ;;  %v2981_v21 = vld [vmem:[%s9046_s4 + $0x3c8] sm:$0xff] }
 0x368   :  { %v5169_v40 = vpack.c.bf16 %v2849_v16, %v2848_v32  ;;  %v2859_v16 = vsel %vm2731_vm7, %v2667_v47, %v2795_v46  ;;  %v2911_v47 = vld [vmem:[%s9046_s4 + $0x198] sm:$0xff]  ;;  %v2930_v46 = vld [vmem:[%s9046_s4 + $0x230] sm:$0xff] }
 0x369   :  { %vm2722_vm15 = vcmp.ge.f32.partialorder %v2658_v11, 0.0  ;;  %v2786_v57 = vmul.f32 0.25, %v2658_v11  ;;  %3178 = vmatmul.mubr.f32.gmra.mrb[50].mxu1 %v2960_v23  ;;  %v2980_v23 = vld [vmem:[%s9046_s4 + $0x3c0] sm:$0xff] }
 0x36a   :  { %v2567_v6 = vpop.permute.xlu1 %2566  ;;  %5170 = vmatpush1.bf16.msra.mxu0 %v5169_v40  ;;  %5212 = vmatpush1.bf16.msra.mxu1 %v5169_v40  ;;  %v2955_v40 = vld [vmem:[%s9046_s4 + $0x2f8] sm:$0xff] }
 0x36b   :  { %v2850_v58 = vsel %vm2722_vm15, %v2658_v11, %v2786_v57  ;;  %v2660_v44 = vadd.f32 %v2567_v6, %v2276_v25  ;;  %5171 = vmatprep.subr.bf16.mxu0 %v9241_v43  ;;  %5197 = vmatprep.subr.bf16.mxu1 %v9241_v43  ;;  %v2985_v11 = vld [vmem:[%s9046_s4 + $0x3e8] sm:$0xff]  ;;  %v2954_v25 = vld [vmem:[%s9046_s4 + $0x2f0] sm:$0xff]  ;;  %v2871_v57 = vld [vmem:[%s9046_s4 + $0x58] sm:$0xff] }
 0x36c   :  { %v5172_v22 = vpack.c.bf16 %v2851_v41, %v2850_v58  ;;  %3182 = vmatprep.mubr.f32.mxu1 %v2965_v0  ;;  %v2959_v0 = vld [vmem:[%s9046_s4 + $0x318] sm:$0xff]  ;;  %v2962_v41 = vld [vmem:[%s9046_s4 + $0x330] sm:$0xff] }
 0x36d   :  { %vm2724_vm1 = vcmp.ge.f32.partialorder %v2660_v44, 0.0  ;;  %v2788_v8 = vmul.f32 0.25, %v2660_v44  ;;  %3183 = vmatmul.mubr.f32.gmra.mrb[52].mxu1 %v2964_v26  ;;  %v2963_v6 = vld [vmem:[%s9046_s4 + $0x338] sm:$0xff]  ;;  %v2874_v26 = vld [vmem:[%s9046_s4 + $0x70] sm:$0xff] }
 0x36e   :  { %v2577_v12 = vpop.permute.xlu1 %2576  ;;  %5173 = vmatpush1.bf16.msra.mxu0 %v5172_v22  ;;  %5213 = vmatpush1.bf16.msra.mxu1 %v5172_v22  ;;  %v2879_v58 = vld [vmem:[%s9046_s4 + $0x98] sm:$0xff]  ;;  %v2878_v22 = vld [vmem:[%s9046_s4 + $0x90] sm:$0xff] }
 0x36f   :  { %v2852_v9 = vsel %vm2724_vm1, %v2660_v44, %v2788_v8  ;;  %v2662_v28 = vadd.f32 %v2577_v12, %v2278_v61  ;;  %5174 = vmatprep.subr.bf16.mxu0 %v9241_v43  ;;  %5198 = vmatprep.subr.bf16.mxu1 %v9241_v43  ;;  %v2967_v44 = vld [vmem:[%s9046_s4 + $0x358] sm:$0xff]  ;;  %v2882_v61 = vld [vmem:[%s9046_s4 + $0xb0] sm:$0xff] }
 0x370   :  { %v5175_v14 = vpack.c.bf16 %v2853_v4, %v2852_v9  ;;  %3187 = vmatprep.mubr.f32.mxu1 %v2969_v52  ;;  %v2970_v8 = vld [vmem:[%s9046_s4 + $0x370] sm:$0xff]  ;;  %v2887_v52 = vld [vmem:[%s9046_s4 + $0xd8] sm:$0xff] }
 0x371   :  { %vm2726_vm3 = vcmp.ge.f32.partialorder %v2662_v28, 0.0  ;;  %v2790_v3 = vmul.f32 0.25, %v2662_v28  ;;  %3188 = vmatmul.mubr.f32.gmra.mrb[54].mxu1 %v2968_v30  ;;  %v2975_v4 = vld [vmem:[%s9046_s4 + $0x398] sm:$0xff]  ;;  %v2974_v12 = vld [vmem:[%s9046_s4 + $0x390] sm:$0xff] }
 0x372   :  { %v2587_v33 = vpop.permute.xlu1 %2586  ;;  %5176 = vmatpush1.bf16.msra.mxu0 %v5175_v14  ;;  %5214 = vmatpush1.bf16.msra.mxu1 %v5175_v14  ;;  %v2891_v30 = vld [vmem:[%s9046_s4 + $0xf8] sm:$0xff]  ;;  %v2890_v9 = vld [vmem:[%s9046_s4 + $0xf0] sm:$0xff] }
 0x373   :  { %v2854_v1 = vsel %vm2726_vm3, %v2662_v28, %v2790_v3  ;;  %v2664_v51 = vadd.f32 %v2587_v33, %v2280_v38  ;;  %5177 = vmatprep.subr.bf16.mxu0 %v9241_v43  ;;  %5199 = vmatprep.subr.bf16.mxu1 %v9241_v43  ;;  %v2978_v28 = vld [vmem:[%s9046_s4 + $0x3b0] sm:$0xff]  ;;  %v2983_v14 = vld [vmem:[%s9046_s4 + $0x3d8] sm:$0xff] }
 0x374   :  { %v5178_v20 = vpack.c.bf16 %v2855_v27, %v2854_v1  ;;  %3192 = vmatprep.mubr.f32.mxu1 %v2973_v45  ;;  %v2987_v38 = vld [vmem:[%s9046_s4 + $0x3f8] sm:$0xff]  ;;  %v2898_v3 = vld [vmem:[%s9046_s4 + $0x130] sm:$0xff] }
 0x375   :  { %vm2728_vm6 = vcmp.ge.f32.partialorder %v2664_v51, 0.0  ;;  %v2792_v62 = vmul.f32 0.25, %v2664_v51  ;;  %3193 = vmatmul.mubr.f32.gmra.mrb[56].mxu1 %v2972_v55  ;;  %v2986_v45 = vld [vmem:[%s9046_s4 + $0x3f0] sm:$0xff]  ;;  %v2903_v27 = vld [vmem:[%s9046_s4 + $0x158] sm:$0xff] }
 0x376   :  { %v2597_v18 = vpop.permute.xlu1 %2596  ;;  %5179 = vmatpush1.bf16.msra.mxu0 %v5178_v20  ;;  %5215 = vmatpush1.bf16.msra.mxu1 %v5178_v20  ;;  %v2902_v33 = vld [vmem:[%s9046_s4 + $0x150] sm:$0xff]  ;;  %v2907_v55 = vld [vmem:[%s9046_s4 + $0x178] sm:$0xff] }
 0x377   :  { %v2856_v39 = vsel %vm2728_vm6, %v2664_v51, %v2792_v62  ;;  %v2666_v35 = vadd.f32 %v2597_v18, %v2282_v59  ;;  %5180 = vmatprep.subr.bf16.mxu0 %v9241_v43  ;;  %5200 = vmatprep.subr.bf16.mxu1 %v9241_v43  ;;  %v2910_v1 = vld [vmem:[%s9046_s4 + $0x190] sm:$0xff]  ;;  %v2915_v51 = vld [vmem:[%s9046_s4 + $0x1b8] sm:$0xff] }
 0x378   :  { %v5181_v15 = vpack.c.bf16 %v2857_v31, %v2856_v39  ;;  %3197 = vmatprep.mubr.f32.mxu1 %v2977_v54  ;;  %v2914_v20 = vld [vmem:[%s9046_s4 + $0x1b0] sm:$0xff]  ;;  %v2923_v62 = vld [vmem:[%s9046_s4 + $0x1f8] sm:$0xff] }
 0x379   :  { %vm2730_vm8 = vcmp.ge.f32.partialorder %v2666_v35, 0.0  ;;  %v2794_v5 = vmul.f32 0.25, %v2666_v35  ;;  %3198 = vmatmul.mubr.f32.gmra.mrb[58].mxu1 %v2976_v2  ;;  %v2918_v59 = vld [vmem:[%s9046_s4 + $0x1d0] sm:$0xff]  ;;  %v2927_v18 = vld [vmem:[%s9046_s4 + $0x218] sm:$0xff] }
 0x37a   :  { %5182 = vmatpush1.bf16.msra.mxu0 %v5181_v15  ;;  %5216 = vmatpush1.bf16.msra.mxu1 %v5181_v15  ;;  %v2922_v54 = vld [vmem:[%s9046_s4 + $0x1f0] sm:$0xff]  ;;  %v2931_v31 = vld [vmem:[%s9046_s4 + $0x238] sm:$0xff] }
 0x37b   :  { %v2858_v24 = vsel %vm2730_vm8, %v2666_v35, %v2794_v5  ;;  %5183 = vmatprep.subr.bf16.mxu0 %v9241_v43  ;;  %5201 = vmatprep.subr.bf16.mxu1 %v9241_v43  ;;  %v2867_v43 = vld [vmem:[%s9046_s4 + $0x38] sm:$0xff]  ;;  %v2926_v2 = vld [vmem:[%s9046_s4 + $0x210] sm:$0xff] }
 0x37c   :  { %v5184_v32 = vpack.c.bf16 %v2859_v16, %v2858_v24  ;;  %3202 = vmatprep.mubr.f32.mxu1 %v2981_v21  ;;  %v2935_v39 = vld [vmem:[%s9046_s4 + $0x258] sm:$0xff]  ;;  %v2934_v35 = vld [vmem:[%s9046_s4 + $0x250] sm:$0xff] }
 0x37d   :  { %3203 = vmatmul.mubr.f32.gmra.mrb[60].mxu1 %v2980_v23  ;;  %v2939_v15 = vld [vmem:[%s9046_s4 + $0x278] sm:$0xff]  ;;  %v2938_v5 = vld [vmem:[%s9046_s4 + $0x270] sm:$0xff] }
 0x37e   :  { %5185 = vmatpush1.bf16.msra.mxu0 %v5184_v32  ;;  %5217 = vmatpush1.bf16.msra.mxu1 %v5184_v32  ;;  %v2943_v21 = vld [vmem:[%s9046_s4 + $0x298] sm:$0xff]  ;;  %v2942_v23 = vld [vmem:[%s9046_s4 + $0x290] sm:$0xff] }
 0x37f   :  { %3207 = vmatprep.mubr.f32.mxu1 %v2985_v11  ;;  %v2947_v16 = vld [vmem:[%s9046_s4 + $0x2b8] sm:$0xff]  ;;  %v2946_v24 = vld [vmem:[%s9046_s4 + $0x2b0] sm:$0xff] }
 0x380   :  { %v2951_v32 = vld [vmem:[%s9046_s4 + $0x2d8] sm:$0xff]  ;;  %v2950_v11 = vld [vmem:[%s9046_s4 + $0x2d0] sm:$0xff] }
 0x381   :  { %3278 = vmatmul.mubr.f32.vlgmr.msra.gmra.mrb[64].mxu0 %v2862_v17  ;;  %3208 = vmatmul.mubr.f32.gmra.mrb[62].mxu1 %v2984_v50 }
 0x382   :  { %3282 = vmatprep.mubr.f32.mxu0 %v2867_v43  ;;  %3392 = vmatprep.mubr.f32.mxu1 %v2955_v40 }
 0x385   :  { %3283 = vmatmul.mubr.f32.gmra.mrb[66].mxu0 %v2866_v48  ;;  %3393 = vmatmul.mubr.f32.vlgmr.msra.gmra.mrb[46].mxu1 %v2954_v25 }
 0x386   :  { %3287 = vmatprep.mubr.f32.mxu0 %v2871_v57  ;;  %3397 = vmatprep.mubr.f32.mxu1 %v2959_v0 }
 0x389   :  { %3288 = vmatmul.mubr.f32.gmra.mrb[68].mxu0 %v2870_v56  ;;  %3398 = vmatmul.mubr.f32.gmra.mrb[48].mxu1 %v2958_v42 }
 0x38a   :  { %3292 = vmatprep.mubr.f32.mxu0 %v2875_v34  ;;  %3402 = vmatprep.mubr.f32.mxu1 %v2963_v6 }
 0x38d   :  { %3293 = vmatmul.mubr.f32.gmra.mrb[70].mxu0 %v2874_v26  ;;  %3403 = vmatmul.mubr.f32.gmra.mrb[50].mxu1 %v2962_v41 }
 0x38e   :  { %3297 = vmatprep.mubr.f32.mxu0 %v2879_v58  ;;  %3407 = vmatprep.mubr.f32.mxu1 %v2967_v44 }
 0x391   :  { %3298 = vmatmul.mubr.f32.gmra.mrb[72].mxu0 %v2878_v22  ;;  %3408 = vmatmul.mubr.f32.gmra.mrb[52].mxu1 %v2966_v53 }
 0x392   :  { %3302 = vmatprep.mubr.f32.mxu0 %v2883_v10  ;;  %3412 = vmatprep.mubr.f32.mxu1 %v2971_v13 }
 0x395   :  { %3303 = vmatmul.mubr.f32.gmra.mrb[74].mxu0 %v2882_v61  ;;  %3413 = vmatmul.mubr.f32.gmra.mrb[54].mxu1 %v2970_v8 }
 0x396   :  { %3307 = vmatprep.mubr.f32.mxu0 %v2887_v52  ;;  %3417 = vmatprep.mubr.f32.mxu1 %v2975_v4 }
 0x399   :  { %3308 = vmatmul.mubr.f32.gmra.mrb[76].mxu0 %v2886_v49  ;;  %3418 = vmatmul.mubr.f32.gmra.mrb[56].mxu1 %v2974_v12 }
 0x39a   :  { %3312 = vmatprep.mubr.f32.mxu0 %v2891_v30  ;;  %3422 = vmatprep.mubr.f32.mxu1 %v2979_v63 }
 0x39d   :  { %3313 = vmatmul.mubr.f32.gmra.mrb[78].mxu0 %v2890_v9  ;;  %3423 = vmatmul.mubr.f32.gmra.mrb[58].mxu1 %v2978_v28 }
 0x39e   :  { %3317 = vmatprep.mubr.f32.mxu0 %v2895_v37  ;;  %3427 = vmatprep.mubr.f32.mxu1 %v2983_v14 }
 0x3a1   :  { %3318 = vmatmul.mubr.f32.gmra.mrb[80].mxu0 %v2894_v29  ;;  %3428 = vmatmul.mubr.f32.gmra.mrb[60].mxu1 %v2982_v36 }
 0x3a2   :  { %3322 = vmatprep.mubr.f32.mxu0 %v2899_v19  ;;  %3432 = vmatprep.mubr.f32.mxu1 %v2987_v38 }
 0x3a5   :  { %3323 = vmatmul.mubr.f32.gmra.mrb[82].mxu0 %v2898_v3  ;;  %3433 = vmatmul.mubr.f32.gmra.mrb[62].mxu1 %v2986_v45 }
 0x3a6   :  { %3327 = vmatprep.mubr.f32.mxu0 %v2903_v27 }
 0x3a9   :  { %3328 = vmatmul.mubr.f32.gmra.mrb[84].mxu0 %v2902_v33 }
 0x3aa   :  { %3332 = vmatprep.mubr.f32.mxu0 %v2907_v55 }
 0x3ad   :  { %3333 = vmatmul.mubr.f32.gmra.mrb[86].mxu0 %v2906_v7 }
 0x3ae   :  { %3337 = vmatprep.mubr.f32.mxu0 %v2911_v47 }
 0x3b1   :  { %3338 = vmatmul.mubr.f32.gmra.mrb[88].mxu0 %v2910_v1 }
 0x3b2   :  { %3342 = vmatprep.mubr.f32.mxu0 %v2915_v51 }
 0x3b5   :  { %3343 = vmatmul.mubr.f32.gmra.mrb[90].mxu0 %v2914_v20 }
 0x3b6   :  { %3347 = vmatprep.mubr.f32.mxu0 %v2919_v60 }
 0x3b9   :  { %3348 = vmatmul.mubr.f32.gmra.mrb[92].mxu0 %v2918_v59 }
 0x3ba   :  { %3352 = vmatprep.mubr.f32.mxu0 %v2923_v62 }
 0x3bd   :  { %3353 = vmatmul.mubr.f32.gmra.mrb[94].mxu0 %v2922_v54 }
 0x3be   :  { %3357 = vmatprep.mubr.f32.mxu0 %v2927_v18 }
 0x3c1   :  { %3358 = vmatmul.mubr.f32.gmra.mrb[96].mxu0 %v2926_v2 }
 0x3c2   :  { %3362 = vmatprep.mubr.f32.mxu0 %v2931_v31 }
 0x3c5   :  { %3363 = vmatmul.mubr.f32.gmra.mrb[98].mxu0 %v2930_v46 }
 0x3c6   :  { %3367 = vmatprep.mubr.f32.mxu0 %v2935_v39 }
 0x3c9   :  { %3368 = vmatmul.mubr.f32.gmra.mrb[100].mxu0 %v2934_v35 }
 0x3ca   :  { %3372 = vmatprep.mubr.f32.mxu0 %v2939_v15 }
 0x3cd   :  { %3373 = vmatmul.mubr.f32.gmra.mrb[102].mxu0 %v2938_v5 }
 0x3ce   :  { %3377 = vmatprep.mubr.f32.mxu0 %v2943_v21 }
 0x3d1   :  { %3378 = vmatmul.mubr.f32.gmra.mrb[104].mxu0 %v2942_v23 }
 0x3d2   :  { %3382 = vmatprep.mubr.f32.mxu0 %v2947_v16 }
 0x3d5   :  { %3383 = vmatmul.mubr.f32.gmra.mrb[106].mxu0 %v2946_v24 }
 0x3d6   :  { %3387 = vmatprep.mubr.f32.mxu0 %v2951_v32 }
 0x3d8   :  { %v3054_v17 = vpop.f32.mrb[0].mxu1 }
 0x3d9   :  { %3388 = vmatmul.mubr.f32.gmra.mrb[108].mxu0 %v2950_v11  ;;  %v3056_v50 = vpop.f32.mrb[1].mxu1 }
 0x3dc   :  { %v3059_v43 = vpop.f32.mrb[2].mxu1 }
 0x3dd   :  { %v3061_v40 = vpop.f32.mrb[3].mxu1 }
 0x3e0   :  { %v3064_v48 = vpop.f32.mrb[4].mxu1 }
 0x3e1   :  { %v3066_v25 = vpop.f32.mrb[5].mxu1 }
 0x3e4   :  { %v8204_v57 = vpop.f32.mrb[6].mxu1 }
 0x3e5   :  { %v3071_v0 = vpop.f32.mrb[7].mxu1 }
 0x3e8   :  { %v8206_v56 = vpop.f32.mrb[8].mxu1 }
 0x3e9   :  { %v3076_v42 = vpop.f32.mrb[9].mxu1 }
 0x3ec   :  { %v8208_v34 = vpop.f32.mrb[10].mxu1 }
 0x3ed   :  { %v3081_v6 = vpop.f32.mrb[11].mxu1 }
 0x3f0   :  { %v8210_v26 = vpop.f32.mrb[12].mxu1 }
 0x3f1   :  { %v3086_v41 = vpop.f32.mrb[13].mxu1 }
 0x3f4   :  { %v8212_v58 = vpop.f32.mrb[14].mxu1 }
 0x3f5   :  { %v3091_v44 = vpop.f32.mrb[15].mxu1 }
 0x3f8   :  { %v8214_v22 = vpop.f32.mrb[16].mxu1 }
 0x3f9   :  { %v3096_v53 = vpop.f32.mrb[17].mxu1 }
 0x3fc   :  { %v8216_v10 = vpop.f32.mrb[18].mxu1 }
 0x3fd   :  { %v3101_v13 = vpop.f32.mrb[19].mxu1 }
 0x400   :  { %v8218_v61 = vpop.f32.mrb[20].mxu1 }
 0x401   :  { %v3106_v8 = vpop.f32.mrb[21].mxu1 }
 0x404   :  { %v8220_v52 = vpop.f32.mrb[22].mxu1 }
 0x405   :  { %v3111_v4 = vpop.f32.mrb[23].mxu1 }
 0x408   :  { %v8222_v49 = vpop.f32.mrb[24].mxu1 }
 0x409   :  { %v3116_v12 = vpop.f32.mrb[25].mxu1 }
 0x40c   :  { %v8224_v30 = vpop.f32.mrb[26].mxu1 }
 0x40d   :  { %v3121_v63 = vpop.f32.mrb[27].mxu1 }
 0x410   :  { %v8226_v9 = vpop.f32.mrb[28].mxu1 }
 0x411   :  { %v3126_v28 = vpop.f32.mrb[29].mxu1 }
 0x414   :  { %v8228_v37 = vpop.f32.mrb[30].mxu1 }
 0x415   :  { %v3131_v14 = vpop.f32.mrb[31].mxu1 }
 0x418   :  { %v8230_v29 = vpop.f32.mrb[32].mxu1 }
 0x419   :  { %v3136_v36 = vpop.f32.mrb[33].mxu1 }
 0x41c   :  { %v8232_v19 = vpop.f32.mrb[34].mxu1 }
 0x41d   :  { %v3141_v38 = vpop.f32.mrb[35].mxu1 }
 0x420   :  { %v8234_v3 = vpop.f32.mrb[36].mxu1 }
 0x421   :  { %v3146_v45 = vpop.f32.mrb[37].mxu1 }
 0x424   :  { %v8236_v27 = vpop.f32.mrb[38].mxu1 }
 0x425   :  { %v3151_v33 = vpop.f32.mrb[39].mxu1 }
 0x428   :  { %v8238_v55 = vpop.f32.mrb[40].mxu1 }
 0x429   :  { %v3156_v7 = vpop.f32.mrb[41].mxu1 }
 0x42c   :  { %v8240_v47 = vpop.f32.mrb[42].mxu1 }
 0x42d   :  { %v3161_v1 = vpop.f32.mrb[43].mxu1 }
 0x430   :  { %v8242_v51 = vpop.f32.mrb[44].mxu1 }
 0x431   :  { %v3166_v20 = vpop.f32.mrb[45].mxu1 }
 0x454   :  { %v3279_v60 = vpop.f32.mrb[64].mxu0 }
 0x455   :  { %v8244_v59 = vadd.f32 %v3279_v60, %v3054_v17  ;;  %v3281_v62 = vpop.f32.mrb[65].mxu0 }
 0x457   :  { %v3502_v54 = vsel %vm811_vm4, %v8244_v59, 0.0  ;;  %v3598_v18 = vmul.f32 %v8244_v59, %v8244_v59 }
 0x458   :  { %v3284_v2 = vpop.f32.mrb[66].mxu0  ;;  %3503 = vadd.xlane.f32.xlu1 %v3502_v54  ;;  %v8250_v31 = vpop.f32.mrb[46].mxu1 }
 0x459   :  { %9318 = vst [vmem:[#allocation6_spill] sm:$0xff] %v8250_v31  ;;  %v8252_v46 = vadd.f32 %v3284_v2, %v3059_v43  ;;  %v3630_v39 = vsel %vm811_vm4, %v3598_v18, 0.0  ;;  %v3286_v35 = vpop.f32.mrb[67].mxu0  ;;  %v3396_v15 = vpop.f32.mrb[47].mxu1 }
 0x45a   :  { %3631 = vadd.xlane.f32.xlu0 %v3630_v39 }
 0x45b   :  { %v3599_v5 = vmul.f32 %v8252_v46, %v8252_v46  ;;  %v3505_v24 = vsel %vm811_vm4, %v8252_v46, 0.0 }
 0x45c   :  { %v3289_v21 = vpop.f32.mrb[68].mxu0  ;;  %v8257_v23 = vpop.f32.mrb[48].mxu1 }
 0x45d   :  { %9319 = vst [vmem:[#allocation83_spill] sm:$0xff] %v8257_v23  ;;  %v8259_v16 = vadd.f32 %v3289_v21, %v3064_v48  ;;  %v3633_v32 = vsel %vm811_vm4, %v3599_v5, 0.0  ;;  %v3291_v11 = vpop.f32.mrb[69].mxu0  ;;  %v3401_v17 = vpop.f32.mrb[49].mxu1 }
 0x45e   :  { %3506 = vadd.xlane.f32.xlu0 %v3505_v24  ;;  %3634 = vadd.xlane.f32.xlu1 %v3633_v32 }
 0x45f   :  { %v3508_v25 = vsel %vm811_vm4, %v8259_v16, 0.0  ;;  %v3600_v0 = vmul.f32 %v8259_v16, %v8259_v16 }
 0x460   :  { %v3294_v50 = vpop.f32.mrb[70].mxu0  ;;  %v8264_v43 = vpop.f32.mrb[50].mxu1 }
 0x461   :  { %9320 = vst [vmem:[#allocation7_spill] sm:$0xff] %v8264_v43  ;;  %v8267_v40 = vadd.f32 %v3294_v50, %v8204_v57  ;;  %v3296_v48 = vpop.f32.mrb[71].mxu0  ;;  %v3406_v42 = vpop.f32.mrb[51].mxu1  ;;  %v3636_v13 = vsel %vm811_vm4, %v3600_v0, 0.0 }
 0x462   :  { %3509 = vadd.xlane.f32.xlu0 %v3508_v25 }
 0x463   :  { %v3511_v6 = vsel %vm811_vm4, %v8267_v40, 0.0  ;;  %v3601_v41 = vmul.f32 %v8267_v40, %v8267_v40 }
 0x464   :  { %v3299_v44 = vpop.f32.mrb[72].mxu0  ;;  %3512 = vadd.xlane.f32.xlu1 %v3511_v6  ;;  %v8277_v53 = vpop.f32.mrb[52].mxu1 }
 0x465   :  { %9321 = vst [vmem:[#allocation8_spill] sm:$0xff] %v8277_v53  ;;  %v8280_v57 = vadd.f32 %v3299_v44, %v8206_v56  ;;  %v3301_v8 = vpop.f32.mrb[73].mxu0  ;;  %v3411_v4 = vpop.f32.mrb[53].mxu1  ;;  %v3639_v12 = vsel %vm811_vm4, %v3601_v41, 0.0 }
 0x466   :  { %3637 = vadd.xlane.f32.xlu0 %v3636_v13 }
 0x467   :  { %v3514_v36 = vsel %vm811_vm4, %v8280_v57, 0.0  ;;  %v3602_v56 = vmul.f32 %v8280_v57, %v8280_v57 }
 0x468   :  { %v3304_v63 = vpop.f32.mrb[74].mxu0  ;;  %3640 = vadd.xlane.f32.xlu1 %v3639_v12  ;;  %v8284_v28 = vpop.f32.mrb[54].mxu1 }
 0x469   :  { %9322 = vst [vmem:[#allocation9_spill] sm:$0xff] %v8284_v28  ;;  %v8287_v14 = vadd.f32 %v3304_v63, %v8208_v34  ;;  %v3306_v38 = vpop.f32.mrb[75].mxu0  ;;  %v3416_v45 = vpop.f32.mrb[55].mxu1  ;;  %v3642_v60 = vsel %vm811_vm4, %v3602_v56, 0.0 }
 0x46a   :  { %3515 = vadd.xlane.f32.xlu0 %v3514_v36 }
 0x46b   :  { %v3517_v33 = vsel %vm811_vm4, %v8287_v14, 0.0  ;;  %v3603_v7 = vmul.f32 %v8287_v14, %v8287_v14 }
 0x46c   :  { %v3309_v1 = vpop.f32.mrb[76].mxu0  ;;  %3518 = vadd.xlane.f32.xlu1 %v3517_v33  ;;  %v8297_v20 = vpop.f32.mrb[56].mxu1 }
 0x46d   :  { %9323 = vst [vmem:[#allocation10_spill] sm:$0xff] %v8297_v20  ;;  %v8300_v34 = vadd.f32 %v3309_v1, %v8210_v26  ;;  %v3311_v62 = vpop.f32.mrb[77].mxu0  ;;  %v3421_v54 = vpop.f32.mrb[57].mxu1  ;;  %v3645_v18 = vsel %vm811_vm4, %v3603_v7, 0.0 }
 0x46e   :  { %3643 = vadd.xlane.f32.xlu0 %v3642_v60 }
 0x46f   :  { %v3520_v15 = vsel %vm811_vm4, %v8300_v34, 0.0  ;;  %v3604_v26 = vmul.f32 %v8300_v34, %v8300_v34 }
 0x470   :  { %v3314_v2 = vpop.f32.mrb[78].mxu0  ;;  %3646 = vadd.xlane.f32.xlu1 %v3645_v18  ;;  %v8304_v39 = vpop.f32.mrb[58].mxu1 }
 0x471   :  { %9324 = vst [vmem:[#allocation84_spill] sm:$0xff] %v8304_v39  ;;  %v8307_v35 = vadd.f32 %v3314_v2, %v8212_v58  ;;  %v3316_v5 = vpop.f32.mrb[79].mxu0  ;;  %v3426_v21 = vpop.f32.mrb[59].mxu1  ;;  %v3648_v50 = vsel %vm811_vm4, %v3604_v26, 0.0 }
 0x472   :  { %3521 = vadd.xlane.f32.xlu0 %v3520_v15 }
 0x473   :  { %v3523_v24 = vsel %vm811_vm4, %v8307_v35, 0.0  ;;  %v3605_v32 = vmul.f32 %v8307_v35, %v8307_v35 }
 0x474   :  { %v3319_v11 = vpop.f32.mrb[80].mxu0  ;;  %3524 = vadd.xlane.f32.xlu1 %v3523_v24  ;;  %v8317_v17 = vpop.f32.mrb[60].mxu1 }
 0x475   :  { %9325 = vst [vmem:[#allocation72_spill] sm:$0xff] %v8317_v17  ;;  %v8320_v58 = vadd.f32 %v3319_v11, %v8214_v22  ;;  %v3321_v25 = vpop.f32.mrb[81].mxu0  ;;  %v3431_v48 = vpop.f32.mrb[61].mxu1  ;;  %v3651_v0 = vsel %vm811_vm4, %v3605_v32, 0.0 }
 0x476   :  { %3649 = vadd.xlane.f32.xlu0 %v3648_v50 }
 0x477   :  { %v3526_v44 = vsel %vm811_vm4, %v8320_v58, 0.0  ;;  %v3606_v22 = vmul.f32 %v8320_v58, %v8320_v58 }
 0x478   :  { %v3324_v42 = vpop.f32.mrb[82].mxu0  ;;  %3652 = vadd.xlane.f32.xlu1 %v3651_v0  ;;  %v8324_v6 = vpop.f32.mrb[62].mxu1 }
 0x479   :  { %9326 = vst [vmem:[#allocation11_spill] sm:$0xff] %v8324_v6  ;;  %v8327_v41 = vadd.f32 %v3324_v42, %v8216_v10  ;;  %v3326_v13 = vpop.f32.mrb[83].mxu0  ;;  %v3436_v8 = vpop.f32.mrb[63].mxu1  ;;  %v3654_v36 = vsel %vm811_vm4, %v3606_v22, 0.0 }
 0x47a   :  { %3527 = vadd.xlane.f32.xlu0 %v3526_v44  ;;  %v8373_v0 = vpop.permute.xlu0 %4560 }
 0x47b   :  { %v3529_v4 = vsel %vm811_vm4, %v8327_v41, 0.0  ;;  %v3607_v12 = vmul.f32 %v8327_v41, %v8327_v41 }
 0x47c   :  { %v3329_v63 = vpop.f32.mrb[84].mxu0  ;;  %3530 = vadd.xlane.f32.xlu1 %v3529_v4 }
 0x47d   :  { %v8338_v10 = vadd.f32 %v3329_v63, %v8218_v61  ;;  %v3331_v38 = vpop.f32.mrb[85].mxu0  ;;  %v3657_v56 = vsel %vm811_vm4, %v3607_v12, 0.0 }
 0x47e   :  { %3655 = vadd.xlane.f32.xlu0 %v3654_v36  ;;  %v8385_v63 = vpop.permute.xlu0 %4570 }
 0x47f   :  { %v3532_v7 = vsel %vm811_vm4, %v8338_v10, 0.0  ;;  %v3608_v60 = vmul.f32 %v8338_v10, %v8338_v10 }
 0x480   :  { %v3334_v45 = vpop.f32.mrb[86].mxu0  ;;  %3658 = vadd.xlane.f32.xlu1 %v3657_v56  ;;  %v3571_v56 = vsel %vm811_vm4, %v8250_v31, 0.0 }
 0x481   :  { %v8343_v33 = vadd.f32 %v3334_v45, %v8220_v52  ;;  %v3336_v1 = vpop.f32.mrb[87].mxu0  ;;  %v3660_v52 = vsel %vm811_vm4, %v3608_v60, 0.0 }
 0x482   :  { %3533 = vadd.xlane.f32.xlu0 %v3532_v7 }
 0x483   :  { %v3535_v61 = vsel %vm811_vm4, %v8343_v33, 0.0  ;;  %v3609_v62 = vmul.f32 %v8343_v33, %v8343_v33 }
 0x484   :  { %v3339_v54 = vpop.f32.mrb[88].mxu0  ;;  %3536 = vadd.xlane.f32.xlu1 %v3535_v61  ;;  %v8400_v61 = vpop.permute.xlu0 %4580 }
 0x485   :  { %v8354_v18 = vadd.f32 %v3339_v54, %v8222_v49  ;;  %v3341_v2 = vpop.f32.mrb[89].mxu0  ;;  %v3663_v15 = vsel %vm811_vm4, %v3609_v62, 0.0  ;;  %v3621_v62 = vmul.f32 %v8250_v31, %v8250_v31 }
 0x486   :  { %3661 = vadd.xlane.f32.xlu0 %v3660_v52 }
 0x487   :  { %v3538_v21 = vsel %vm811_vm4, %v8354_v18, 0.0  ;;  %v3610_v32 = vmul.f32 %v8354_v18, %v8354_v18 }
 0x488   :  { %v3344_v5 = vpop.f32.mrb[90].mxu0  ;;  %3664 = vadd.xlane.f32.xlu1 %v3663_v15 }
 0x489   :  { %v8359_v26 = vadd.f32 %v3344_v5, %v8224_v30  ;;  %v3346_v24 = vpop.f32.mrb[91].mxu0  ;;  %v3666_v30 = vsel %vm811_vm4, %v3610_v32, 0.0  ;;  %v8413_v32 = vpop.permute.xlu0 %4590 }
 0x48a   :  { %3539 = vadd.xlane.f32.xlu0 %v3538_v21  ;;  %v3699_v21 = vsel %vm811_vm4, %v3621_v62, 0.0 }
 0x48b   :  { %v3541_v49 = vsel %vm811_vm4, %v8359_v26, 0.0  ;;  %v3611_v11 = vmul.f32 %v8359_v26, %v8359_v26 }
 0x48c   :  { %v3349_v50 = vpop.f32.mrb[92].mxu0  ;;  %3542 = vadd.xlane.f32.xlu1 %v3541_v49  ;;  %v3622_v49 = vmul.f32 %v8257_v23, %v8257_v23 }
 0x48d   :  { %v8370_v25 = vadd.f32 %v3349_v50, %v8226_v9  ;;  %v3351_v48 = vpop.f32.mrb[93].mxu0  ;;  %v3669_v42 = vsel %vm811_vm4, %v3611_v11, 0.0 }
 0x48e   :  { %3667 = vadd.xlane.f32.xlu0 %v3666_v30 }
 0x48f   :  { %v3544_v22 = vsel %vm811_vm4, %v8370_v25, 0.0  ;;  %v3612_v9 = vmul.f32 %v8370_v25, %v8370_v25 }
 0x490   :  { %v3354_v44 = vpop.f32.mrb[94].mxu0  ;;  %3670 = vadd.xlane.f32.xlu1 %v3669_v42 }
 0x491   :  { %v8377_v13 = vadd.f32 %v3354_v44, %v8228_v37  ;;  %v3356_v8 = vpop.f32.mrb[95].mxu0  ;;  %v3672_v37 = vsel %vm811_vm4, %v3612_v9, 0.0  ;;  %v3702_v44 = vsel %vm811_vm4, %v3622_v49, 0.0 }
 0x492   :  { %3545 = vadd.xlane.f32.xlu0 %v3544_v22  ;;  %v8427_v8 = vpop.permute.xlu0 %4600 }
 0x493   :  { %v3547_v4 = vsel %vm811_vm4, %v8377_v13, 0.0  ;;  %v3613_v45 = vmul.f32 %v8377_v13, %v8377_v13 }
 0x494   :  { %v3359_v12 = vpop.f32.mrb[96].mxu0  ;;  %3548 = vadd.xlane.f32.xlu1 %v3547_v4 }
 0x495   :  { %v8388_v36 = vadd.f32 %v3359_v12, %v8230_v29  ;;  %v3361_v38 = vpop.f32.mrb[97].mxu0  ;;  %v3675_v54 = vsel %vm811_vm4, %v3613_v45, 0.0 }
 0x496   :  { %3673 = vadd.xlane.f32.xlu0 %v3672_v37  ;;  %v8438_v38 = vpop.permute.xlu1 %4565 }
 0x497   :  { %v3550_v60 = vsel %vm811_vm4, %v8388_v36, 0.0  ;;  %v3614_v5 = vmul.f32 %v8388_v36, %v8388_v36 }
 0x498   :  { %v3364_v7 = vpop.f32.mrb[98].mxu0  ;;  %3572 = vadd.xlane.f32.xlu1 %v3571_v56  ;;  %v3623_v56 = vmul.f32 %v8264_v43, %v8264_v43 }
 0x499   :  { %v8396_v1 = vadd.f32 %v3364_v7, %v8232_v19  ;;  %v3366_v29 = vpop.f32.mrb[99].mxu0  ;;  %v3574_v19 = vsel %vm811_vm4, %v8257_v23, 0.0  ;;  %v3678_v11 = vsel %vm811_vm4, %v3614_v5, 0.0 }
 0x49a   :  { %3551 = vadd.xlane.f32.xlu0 %v3550_v60  ;;  %v8443_v60 = vpop.permute.xlu0 %4610 }
 0x49b   :  { %v3553_v30 = vsel %vm811_vm4, %v8396_v1, 0.0  ;;  %v3615_v9 = vmul.f32 %v8396_v1, %v8396_v1 }
 0x49c   :  { %v3369_v52 = vpop.f32.mrb[100].mxu0  ;;  %3676 = vadd.xlane.f32.xlu1 %v3675_v54 }
 0x49d   :  { %v8406_v2 = vadd.f32 %v3369_v52, %v8234_v3  ;;  %v3371_v15 = vpop.f32.mrb[101].mxu0  ;;  %v3681_v45 = vsel %vm811_vm4, %v3615_v9, 0.0  ;;  %v3705_v52 = vsel %vm811_vm4, %v3623_v56, 0.0  ;;  %v3586_v9 = vsel %vm811_vm4, %v8297_v20, 0.0 }
 0x49e   :  { %3575 = vadd.xlane.f32.xlu0 %v3574_v19  ;;  %v8453_v19 = vpop.permute.xlu1 %4575  ;;  %v3624_v15 = vmul.f32 %v8277_v53, %v8277_v53  ;;  %v3626_v56 = vmul.f32 %v8297_v20, %v8297_v20 }
 0x49f   :  { %v3616_v62 = vmul.f32 %v8406_v2, %v8406_v2 }
 0x4a0   :  { %v3374_v24 = vpop.f32.mrb[102].mxu0  ;;  %3700 = vadd.xlane.f32.xlu1 %v3699_v21 }
 0x4a1   :  { %v8418_v3 = vadd.f32 %v3374_v24, %v8236_v27  ;;  %v3376_v50 = vpop.f32.mrb[103].mxu0  ;;  %v3577_v27 = vsel %vm811_vm4, %v8264_v43, 0.0  ;;  %v3684_v5 = vsel %vm811_vm4, %v3616_v62, 0.0  ;;  %v3708_v24 = vsel %vm811_vm4, %v3624_v15, 0.0 }
 0x4a2   :  { %3679 = vadd.xlane.f32.xlu0 %v3678_v11  ;;  %v8463_v49 = vpop.permute.xlu1 %4585  ;;  %v3583_v11 = vsel %vm811_vm4, %v8284_v28, 0.0 }
 0x4a3   :  { %9327 = vst [vmem:[#allocation70_spill] sm:$0xff] %v8418_v3  ;;  %v3559_v21 = vsel %vm811_vm4, %v8418_v3, 0.0  ;;  %v3617_v50 = vmul.f32 %v8418_v3, %v8418_v3 }
 0x4a4   :  { %v3379_v48 = vpop.f32.mrb[104].mxu0  ;;  %3554 = vadd.xlane.f32.xlu1 %v3553_v30 }
 0x4a5   :  { %v8424_v42 = vadd.f32 %v3379_v48, %v8238_v55  ;;  %v3381_v22 = vpop.f32.mrb[105].mxu0  ;;  %v3556_v55 = vsel %vm811_vm4, %v8406_v2, 0.0 }
 0x4a6   :  { %3703 = vadd.xlane.f32.xlu0 %v3702_v44  ;;  %v3625_v44 = vmul.f32 %v8284_v28, %v8284_v28  ;;  %v3687_v22 = vsel %vm811_vm4, %v3617_v50, 0.0 }
 0x4a7   :  { %9328 = vst [vmem:[#allocation12_spill] sm:$0xff] %v8424_v42  ;;  %v3562_v48 = vsel %vm811_vm4, %v8424_v42, 0.0 }
 0x4a8   :  { %v3384_v4 = vpop.f32.mrb[106].mxu0  ;;  %3578 = vadd.xlane.f32.xlu1 %v3577_v27  ;;  %v8476_v27 = vpop.permute.xlu1 %4595 }
 0x4a9   :  { %v8434_v12 = vadd.f32 %v3384_v4, %v8240_v47  ;;  %v3386_v37 = vpop.f32.mrb[107].mxu0  ;;  %v3580_v47 = vsel %vm811_vm4, %v8277_v53, 0.0  ;;  %v3618_v4 = vmul.f32 %v8424_v42, %v8424_v42 }
 0x4aa   :  { %3557 = vadd.xlane.f32.xlu0 %v3556_v55  ;;  %v3711_v37 = vsel %vm811_vm4, %v3625_v44, 0.0 }
 0x4ab   :  { %9329 = vst [vmem:[#allocation75_spill] sm:$0xff] %v8434_v12  ;;  %v3619_v15 = vmul.f32 %v8434_v12, %v8434_v12 }
 0x4ac   :  { %v3389_v7 = vpop.f32.mrb[108].mxu0  ;;  %3682 = vadd.xlane.f32.xlu1 %v3681_v45  ;;  %v3690_v45 = vsel %vm811_vm4, %v3618_v4, 0.0 }
 0x4ad   :  { %v8446_v29 = vadd.f32 %v3389_v7, %v8242_v51  ;;  %v3391_v54 = vpop.f32.mrb[109].mxu0  ;;  %v8458_v51 = vpop.permute.xlu0 %4620  ;;  %v3693_v50 = vsel %vm811_vm4, %v3619_v15, 0.0 }
 0x4ae   :  { %3581 = vadd.xlane.f32.xlu0 %v3580_v47  ;;  %v8488_v7 = vpop.permute.xlu1 %4605  ;;  %v3565_v47 = vsel %vm811_vm4, %v8434_v12, 0.0  ;;  %v3714_v54 = vsel %vm811_vm4, %v3626_v56, 0.0 }
 0x4af   :  { %9330 = vst [vmem:[#allocation13_spill] sm:$0xff] %v8446_v29  ;;  %v3620_v44 = vmul.f32 %v8446_v29, %v8446_v29 }
 0x4b0   :  { %3706 = vadd.xlane.f32.xlu1 %v3705_v52  ;;  %v3589_v52 = vsel %vm811_vm4, %v8304_v39, 0.0 }
 0x4b1   :  { %v8469_v30 = vpop.permute.xlu0 %4630  ;;  %v3696_v56 = vsel %vm811_vm4, %v3620_v44, 0.0 }
 0x4b2   :  { %3685 = vadd.xlane.f32.xlu0 %v3684_v5  ;;  %9331 = vst [vmem:[#allocation71_spill] sm:$0xff] %v8469_v30  ;;  %v8499_v5 = vpop.permute.xlu1 %4615 }
 0x4b4   :  { %3560 = vadd.xlane.f32.xlu1 %v3559_v21  ;;  %v3568_v21 = vsel %vm811_vm4, %v8446_v29, 0.0 }
 0x4b5   :  { %v8482_v55 = vpop.permute.xlu0 %4640 }
 0x4b6   :  { %3709 = vadd.xlane.f32.xlu0 %v3708_v24  ;;  %9332 = vst [vmem:[#allocation14_spill] sm:$0xff] %v8482_v55 }
 0x4b8   :  { %3584 = vadd.xlane.f32.xlu1 %v3583_v11  ;;  %v3627_v11 = vmul.f32 %v8304_v39, %v8304_v39 }
 0x4b9   :  { %v8492_v62 = vpop.permute.xlu0 %4650 }
 0x4ba   :  { %3563 = vadd.xlane.f32.xlu0 %v3562_v48  ;;  %9333 = vst [vmem:[#allocation15_spill] sm:$0xff] %v8492_v62  ;;  %v3592_v48 = vsel %vm811_vm4, %v8317_v17, 0.0  ;;  %v3471_v62 = vld [vmem:[%s9048_s6 + $0x8] sm:$0xff] }
 0x4bc   :  { %3688 = vadd.xlane.f32.xlu1 %v3687_v22  ;;  %v8512_v22 = vpop.permute.xlu1 %4625 }
 0x4bd   :  { %v8503_v24 = vpop.permute.xlu0 %4660  ;;  %9335 = vst [vmem:[#allocation16_spill] sm:$0xff] %v8512_v22 }
 0x4be   :  { %3587 = vadd.xlane.f32.xlu0 %v3586_v9  ;;  %9334 = vst [vmem:[#allocation85_spill] sm:$0xff] %v8503_v24  ;;  %v3717_v9 = vsel %vm811_vm4, %v3627_v11, 0.0 }
 0x4c0   :  { %3712 = vadd.xlane.f32.xlu1 %v3711_v37  ;;  %v3628_v37 = vmul.f32 %v8317_v17, %v8317_v17 }
 0x4c1   :  { %v8515_v4 = vpop.permute.xlu0 %4665 }
 0x4c2   :  { %3691 = vadd.xlane.f32.xlu0 %v3690_v45  ;;  %9336 = vst [vmem:[#allocation79_spill] sm:$0xff] %v8515_v4  ;;  %v3629_v45 = vmul.f32 %v8324_v6, %v8324_v6 }
 0x4c4   :  { %3566 = vadd.xlane.f32.xlu1 %v3565_v47  ;;  %v3595_v47 = vsel %vm811_vm4, %v8324_v6, 0.0 }
 0x4c5   :  { %v8527_v15 = vpop.permute.xlu0 %4670 }
 0x4c6   :  { %3715 = vadd.xlane.f32.xlu0 %v3714_v54  ;;  %v8524_v54 = vpop.permute.xlu1 %4635  ;;  %9338 = vst [vmem:[#allocation73_spill] sm:$0xff] %v8527_v15 }
 0x4c7   :  { %9337 = vst [vmem:[#allocation17_spill] sm:$0xff] %v8524_v54 }
 0x4c8   :  { %3590 = vadd.xlane.f32.xlu1 %v3589_v52  ;;  %v3720_v52 = vsel %vm811_vm4, %v3628_v37, 0.0 }
 0x4ca   :  { %3569 = vadd.xlane.f32.xlu0 %v3568_v21  ;;  %v3723_v21 = vsel %vm811_vm4, %v3629_v45, 0.0  ;;  %v8530_v11 = vpop.permute.xlu1 %4645 }
 0x4cb   :  { %9339 = vst [vmem:[#allocation74_spill] sm:$0xff] %v8530_v11 }
 0x4cc   :  { %3694 = vadd.xlane.f32.xlu1 %v3693_v50  ;;  %v8532_v50 = vpop.permute.xlu0 %4675 }
 0x4cd   :  { %9340 = vst [vmem:[#allocation18_spill] sm:$0xff] %v8532_v50 }
 0x4ce   :  { %3593 = vadd.xlane.f32.xlu0 %v3592_v48  ;;  %v8534_v48 = vpop.permute.xlu1 %4655 }
 0x4cf   :  { %9341 = vst [vmem:[#allocation76_spill] sm:$0xff] %v8534_v48 }
 0x4d0   :  { %3718 = vadd.xlane.f32.xlu1 %v3717_v9  ;;  %v8536_v44 = vpop.permute.xlu0 %4680 }
 0x4d1   :  { %9342 = vst [vmem:[#allocation19_spill] sm:$0xff] %v8536_v44 }
 0x4d2   :  { %3697 = vadd.xlane.f32.xlu0 %v3696_v56 }
 0x4d4   :  { %3596 = vadd.xlane.f32.xlu1 %v3595_v47 }
 0x4d6   :  { %3721 = vadd.xlane.f32.xlu0 %v3720_v52 }
 0x4d8   :  { %3724 = vadd.xlane.f32.xlu1 %v3723_v21 }
 0x4e5   :  { %v3504_v9 = vpop.xlane.xlu1 %3503 }
 0x4e6   :  { %v3726_v56 = vmul.f32 0.125, %v3504_v9 }
 0x4e7   :  { %v3632_v47 = vpop.xlane.xlu0 %3631 }
 0x4e8   :  { %v3790_v6 = vmul.f32 %v3726_v56, %v3726_v56  ;;  %v3758_v17 = vmul.f32 0.125, %v3632_v47 }
 0x4ea   :  { %v3822_v37 = vsub.f32 %v3758_v17, %v3790_v6 }
 0x4eb   :  { %v3635_v52 = vpop.xlane.xlu1 %3634  ;;  %v3507_v39 = vpop.xlane.xlu0 %3506 }
 0x4ec   :  { %v3854_v20 = vmax.f32 %v3822_v37, 0.0  ;;  %v3727_v15 = vmul.f32 0.125, %v3507_v39  ;;  %v3759_v21 = vmul.f32 0.125, %v3635_v52 }
 0x4ee   :  { %v3886_v45 = vadd.f32 1e-05, %v3854_v20  ;;  %v3791_v28 = vmul.f32 %v3727_v15, %v3727_v15 }
 0x4ef   :  { %v3510_v4 = vpop.xlane.xlu0 %3509 }
 0x4f0   :  { %5393 = vrsqrt.f32 %v3886_v45  ;;  %v3823_v50 = vsub.f32 %v3759_v21, %v3791_v28  ;;  %v8538_v53 = vmul.f32 0.125, %v3510_v4 }
 0x4f1   :  { %v3513_v29 = vpop.xlane.xlu1 %3512 }
 0x4f2   :  { %v3855_v44 = vmax.f32 %v3823_v50, 0.0  ;;  %v8540_v43 = vmul.f32 0.125, %v3513_v29  ;;  %v3792_v17 = vmul.f32 %v8538_v53, %v8538_v53  ;;  %v3438_v29 = vld [vmem:[%s9047_s5] sm:$0xff] }
 0x4f3   :  { %v3638_v9 = vpop.xlane.xlu0 %3637 }
 0x4f4   :  { %v3887_v24 = vadd.f32 1e-05, %v3855_v44  ;;  %v3760_v6 = vmul.f32 0.125, %v3638_v9  ;;  %v3793_v20 = vmul.f32 %v8540_v43, %v8540_v43 }
 0x4f5   :  { %v3641_v47 = vpop.xlane.xlu1 %3640 }
 0x4f6   :  { %5395 = vrsqrt.f32 %v3887_v24  ;;  %v3824_v39 = vsub.f32 %v3760_v6, %v3792_v17  ;;  %v3761_v37 = vmul.f32 0.125, %v3641_v47 }
 0x4f7   :  { %v3516_v28 = vpop.xlane.xlu0 %3515 }
 0x4f8   :  { %v3856_v4 = vmax.f32 %v3824_v39, 0.0  ;;  %v3825_v52 = vsub.f32 %v3761_v37, %v3793_v20  ;;  %v8546_v45 = vmul.f32 0.125, %v3516_v28  ;;  %v3439_v39 = vld [vmem:[%s9047_s5 + $0x8] sm:$0xff] }
 0x4f9   :  { %v3519_v50 = vpop.xlane.xlu1 %3518 }
 0x4fa   :  { %v5394_v44 = vpop.eup %5393  ;;  %v3888_v21 = vadd.f32 1e-05, %v3856_v4  ;;  %v3857_v9 = vmax.f32 %v3825_v52, 0.0  ;;  %v8551_v23 = vmul.f32 0.125, %v3519_v50  ;;  %v3794_v6 = vmul.f32 %v8546_v45, %v8546_v45 }
 0x4fb   :  { %v3644_v24 = vpop.xlane.xlu0 %3643  ;;  %v3950_v48 = vmul.f32 %v5394_v44, %v3438_v29 }
 0x4fc   :  { %5397 = vrsqrt.f32 %v3888_v21  ;;  %v3889_v17 = vadd.f32 1e-05, %v3857_v9  ;;  %v3762_v47 = vmul.f32 0.125, %v3644_v24  ;;  %v3795_v37 = vmul.f32 %v8551_v23, %v8551_v23 }
 0x4fd   :  { %v3647_v20 = vpop.xlane.xlu1 %3646  ;;  %4048 = vperm.xlu0 %5264, %v3950_v48   ;;  %v3982_v31 = vmul.f32 %v3950_v48, %v3726_v56 }
 0x4fe   :  { %5399 = vrsqrt.f32 %v3889_v17  ;;  %v3826_v28 = vsub.f32 %v3762_v47, %v3794_v6  ;;  %v3763_v4 = vmul.f32 0.125, %v3647_v20  ;;  %v3470_v6 = vld [vmem:[%s9048_s6] sm:$0xff] }
 0x4ff   :  { %v3522_v52 = vpop.xlane.xlu0 %3521 }
 0x500   :  { %v5396_v29 = vpop.eup %5395  ;;  %v3858_v50 = vmax.f32 %v3826_v28, 0.0  ;;  %v3827_v44 = vsub.f32 %v3763_v4, %v3795_v37  ;;  %v8560_v21 = vmul.f32 0.125, %v3522_v52  ;;  %v4014_v52 = vsub.f32 %v3470_v6, %v3982_v31 }
 0x501   :  { %v3951_v9 = vmul.f32 %v5396_v29, %v3439_v39  ;;  %v3525_v24 = vpop.xlane.xlu1 %3524  ;;  %v3440_v39 = vld [vmem:[%s9047_s5 + $0x10] sm:$0xff] }
 0x502   :  { %v3890_v12 = vadd.f32 1e-05, %v3858_v50  ;;  %v3859_v17 = vmax.f32 %v3827_v44, 0.0  ;;  %v8565_v11 = vmul.f32 0.125, %v3525_v24  ;;  %v3796_v48 = vmul.f32 %v8560_v21, %v8560_v21 }
 0x503   :  { %v3983_v47 = vmul.f32 %v3951_v9, %v3727_v15  ;;  %4053 = vperm.xlu1 %5263, %v3951_v9   ;;  %v3650_v20 = vpop.xlane.xlu0 %3649 }
 0x504   :  { %5401 = vrsqrt.f32 %v3890_v12  ;;  %v3891_v37 = vadd.f32 1e-05, %v3859_v17  ;;  %v3764_v56 = vmul.f32 0.125, %v3650_v20  ;;  %v3797_v15 = vmul.f32 %v8565_v11, %v8565_v11  ;;  %v3441_v12 = vld [vmem:[%s9047_s5 + $0x18] sm:$0xff] }
 0x505   :  { %v4015_v28 = vsub.f32 %v3471_v62, %v3983_v47  ;;  %v3653_v4 = vpop.xlane.xlu1 %3652 }
 0x506   :  { %v5398_v29 = vpop.eup %5397  ;;  %5403 = vrsqrt.f32 %v3891_v37  ;;  %v3828_v50 = vsub.f32 %v3764_v56, %v3796_v48  ;;  %v3765_v44 = vmul.f32 0.125, %v3653_v4  ;;  %v3473_v4 = vld [vmem:[%s9048_s6 + $0x18] sm:$0xff] }
 0x507   :  { %4240 = vperm.xlu1 %5263, %v4014_v52   ;;  %4245 = vperm.xlu0 %5264, %v4015_v28   ;;  %v3528_v9 = vpop.xlane.xlu0 %3527  ;;  %v3952_v24 = vmul.f32 %v5398_v29, %v3440_v39  ;;  %v3472_v39 = vld [vmem:[%s9048_s6 + $0x10] sm:$0xff] }
 0x508   :  { %v5400_v17 = vpop.eup %5399  ;;  %v3860_v20 = vmax.f32 %v3828_v50, 0.0  ;;  %v3829_v62 = vsub.f32 %v3765_v44, %v3797_v15  ;;  %v8580_v47 = vmul.f32 0.125, %v3528_v9  ;;  %v3442_v50 = vld [vmem:[%s9047_s5 + $0x20] sm:$0xff] }
 0x509   :  { %v3531_v31 = vpop.xlane.xlu1 %3530  ;;  %v3953_v6 = vmul.f32 %v5400_v17, %v3441_v12  ;;  %v3984_v37 = vmul.f32 %v3952_v24, %v8538_v53 }
 0x50a   :  { %v3892_v42 = vadd.f32 1e-05, %v3860_v20  ;;  %v3861_v48 = vmax.f32 %v3829_v62, 0.0  ;;  %v8583_v56 = vmul.f32 0.125, %v3531_v31  ;;  %v3798_v53 = vmul.f32 %v8580_v47, %v8580_v47 }
 0x50b   :  { %4063 = vperm.xlu0 %5264, %v3953_v6   ;;  %4058 = vperm.xlu1 %5263, %v3952_v24   ;;  %v3656_v28 = vpop.xlane.xlu0 %3655  ;;  %v3985_v52 = vmul.f32 %v3953_v6, %v8540_v43  ;;  %v4016_v9 = vsub.f32 %v3472_v39, %v3984_v37 }
 0x50c   :  { %5405 = vrsqrt.f32 %v3892_v42  ;;  %v3893_v29 = vadd.f32 1e-05, %v3861_v48  ;;  %v3766_v15 = vmul.f32 0.125, %v3656_v28  ;;  %v3799_v24 = vmul.f32 %v8583_v56, %v8583_v56  ;;  %v3443_v42 = vld [vmem:[%s9047_s5 + $0x28] sm:$0xff] }
 0x50d   :  { %v3659_v44 = vpop.xlane.xlu1 %3658  ;;  %v4017_v12 = vsub.f32 %v3473_v4, %v3985_v52 }
 0x50e   :  { %v5402_v17 = vpop.eup %5401  ;;  %5407 = vrsqrt.f32 %v3893_v29  ;;  %v3830_v20 = vsub.f32 %v3766_v15, %v3798_v53  ;;  %v3767_v43 = vmul.f32 0.125, %v3659_v44  ;;  %v3475_v44 = vld [vmem:[%s9048_s6 + $0x28] sm:$0xff] }
 0x50f   :  { %4255 = vperm.xlu0 %5264, %v4017_v12   ;;  %4250 = vperm.xlu1 %5263, %v4016_v9   ;;  %v3534_v62 = vpop.xlane.xlu0 %3533  ;;  %v3954_v31 = vmul.f32 %v5402_v17, %v3442_v50  ;;  %v3474_v50 = vld [vmem:[%s9048_s6 + $0x20] sm:$0xff] }
 0x510   :  { %v5404_v6 = vpop.eup %5403  ;;  %v3862_v48 = vmax.f32 %v3830_v20, 0.0  ;;  %v3831_v28 = vsub.f32 %v3767_v43, %v3799_v24  ;;  %v8602_v4 = vmul.f32 0.125, %v3534_v62  ;;  %v3444_v20 = vld [vmem:[%s9047_s5 + $0x30] sm:$0xff] }
 0x511   :  { %v3537_v37 = vpop.xlane.xlu1 %3536  ;;  %v3955_v39 = vmul.f32 %v5404_v6, %v3443_v42  ;;  %v3986_v52 = vmul.f32 %v3954_v31, %v8546_v45 }
 0x512   :  { %v3894_v29 = vadd.f32 1e-05, %v3862_v48  ;;  %v3863_v53 = vmax.f32 %v3831_v28, 0.0  ;;  %v8605_v15 = vmul.f32 0.125, %v3537_v37  ;;  %v3800_v45 = vmul.f32 %v8602_v4, %v8602_v4  ;;  %v3445_v28 = vld [vmem:[%s9047_s5 + $0x38] sm:$0xff] }
 0x513   :  { %4073 = vperm.xlu0 %5264, %v3955_v39   ;;  %4068 = vperm.xlu1 %5263, %v3954_v31   ;;  %v3662_v12 = vpop.xlane.xlu0 %3661  ;;  %v3987_v9 = vmul.f32 %v3955_v39, %v8551_v23  ;;  %v4018_v62 = vsub.f32 %v3474_v50, %v3986_v52 }
 0x514   :  { %5409 = vrsqrt.f32 %v3894_v29  ;;  %v3895_v17 = vadd.f32 1e-05, %v3863_v53  ;;  %v3768_v24 = vmul.f32 0.125, %v3662_v12  ;;  %v3801_v31 = vmul.f32 %v8605_v15, %v8605_v15 }
 0x515   :  { %v3665_v43 = vpop.xlane.xlu1 %3664  ;;  %v4019_v42 = vsub.f32 %v3475_v44, %v3987_v9 }
 0x516   :  { %v5406_v6 = vpop.eup %5405  ;;  %5411 = vrsqrt.f32 %v3895_v17  ;;  %v3832_v48 = vsub.f32 %v3768_v24, %v3800_v45  ;;  %v3769_v23 = vmul.f32 0.125, %v3665_v43  ;;  %v3477_v43 = vld [vmem:[%s9048_s6 + $0x38] sm:$0xff] }
 0x517   :  { %4265 = vperm.xlu0 %5264, %v4019_v42   ;;  %4260 = vperm.xlu1 %5263, %v4018_v62   ;;  %v3540_v37 = vpop.xlane.xlu0 %3539  ;;  %v3956_v39 = vmul.f32 %v5406_v6, %v3444_v20  ;;  %v3476_v20 = vld [vmem:[%s9048_s6 + $0x30] sm:$0xff] }
 0x518   :  { %v5408_v29 = vpop.eup %5407  ;;  %v3864_v53 = vmax.f32 %v3832_v48, 0.0  ;;  %v3833_v12 = vsub.f32 %v3769_v23, %v3801_v31  ;;  %v8624_v44 = vmul.f32 0.125, %v3540_v37  ;;  %v3446_v48 = vld [vmem:[%s9047_s5 + $0x40] sm:$0xff] }
 0x519   :  { %v3543_v52 = vpop.xlane.xlu1 %3542  ;;  %v3957_v50 = vmul.f32 %v5408_v29, %v3445_v28  ;;  %v3988_v9 = vmul.f32 %v3956_v39, %v8560_v21 }
 0x51a   :  { %v3896_v17 = vadd.f32 1e-05, %v3864_v53  ;;  %v3865_v45 = vmax.f32 %v3833_v12, 0.0  ;;  %v8627_v24 = vmul.f32 0.125, %v3543_v52  ;;  %v3802_v21 = vmul.f32 %v8624_v44, %v8624_v44  ;;  %v3447_v12 = vld [vmem:[%s9047_s5 + $0x48] sm:$0xff] }
 0x51b   :  { %4083 = vperm.xlu0 %5264, %v3957_v50   ;;  %4078 = vperm.xlu1 %5263, %v3956_v39   ;;  %v3668_v42 = vpop.xlane.xlu0 %3667  ;;  %v3989_v62 = vmul.f32 %v3957_v50, %v8565_v11  ;;  %v4020_v37 = vsub.f32 %v3476_v20, %v3988_v9 }
 0x51c   :  { %5413 = vrsqrt.f32 %v3896_v17  ;;  %v3897_v6 = vadd.f32 1e-05, %v3865_v45  ;;  %v3770_v31 = vmul.f32 0.125, %v3668_v42  ;;  %v3803_v39 = vmul.f32 %v8627_v24, %v8627_v24 }
 0x51d   :  { %v3671_v23 = vpop.xlane.xlu1 %3670  ;;  %v4021_v28 = vsub.f32 %v3477_v43, %v3989_v62 }
 0x51e   :  { %v5410_v29 = vpop.eup %5409  ;;  %5415 = vrsqrt.f32 %v3897_v6  ;;  %v3834_v53 = vsub.f32 %v3770_v31, %v3802_v21  ;;  %v3771_v11 = vmul.f32 0.125, %v3671_v23  ;;  %v3479_v31 = vld [vmem:[%s9048_s6 + $0x48] sm:$0xff]  ;;  %v3478_v23 = vld [vmem:[%s9048_s6 + $0x40] sm:$0xff] }
 0x51f   :  { %4275 = vperm.xlu0 %5264, %v4021_v28   ;;  %4270 = vperm.xlu1 %5263, %v4020_v37   ;;  %v3546_v52 = vpop.xlane.xlu0 %3545  ;;  %v3958_v50 = vmul.f32 %v5410_v29, %v3446_v48 }
 0x520   :  { %v5412_v17 = vpop.eup %5411  ;;  %v3866_v45 = vmax.f32 %v3834_v53, 0.0  ;;  %v3835_v42 = vsub.f32 %v3771_v11, %v3803_v39  ;;  %v8646_v43 = vmul.f32 0.125, %v3546_v52  ;;  %v3448_v39 = vld [vmem:[%s9047_s5 + $0x50] sm:$0xff] }
 0x521   :  { %v3549_v9 = vpop.xlane.xlu1 %3548  ;;  %v3959_v20 = vmul.f32 %v5412_v17, %v3447_v12  ;;  %v3990_v62 = vmul.f32 %v3958_v50, %v8580_v47 }
 0x522   :  { %v3898_v6 = vadd.f32 1e-05, %v3866_v45  ;;  %v3867_v21 = vmax.f32 %v3835_v42, 0.0  ;;  %v3804_v47 = vmul.f32 %v8646_v43, %v8646_v43  ;;  %v8661_v17 = vmul.f32 0.125, %v3549_v9 }
 0x523   :  { %4093 = vperm.xlu0 %5264, %v3959_v20   ;;  %4088 = vperm.xlu1 %5263, %v3958_v50   ;;  %v3674_v48 = vpop.xlane.xlu0 %3673  ;;  %v3991_v28 = vmul.f32 %v3959_v20, %v8583_v56  ;;  %v4022_v12 = vsub.f32 %v3478_v23, %v3990_v62  ;;  %v3449_v56 = vld [vmem:[%s9047_s5 + $0x58] sm:$0xff] }
 0x524   :  { %5417 = vrsqrt.f32 %v3898_v6  ;;  %v3899_v37 = vadd.f32 1e-05, %v3867_v21  ;;  %v3772_v29 = vmul.f32 0.125, %v3674_v48  ;;  %v3805_v62 = vmul.f32 %v8661_v17, %v8661_v17 }
 0x525   :  { %v3573_v53 = vpop.xlane.xlu1 %3572  ;;  %v4023_v11 = vsub.f32 %v3479_v31, %v3991_v28 }
 0x526   :  { %v5414_v52 = vpop.eup %5413  ;;  %5419 = vrsqrt.f32 %v3899_v37  ;;  %v3836_v50 = vsub.f32 %v3772_v29, %v3804_v47  ;;  %v8669_v23 = vmul.f32 0.125, %v3573_v53  ;;  %v3481_v37 = vld [vmem:[%s9048_s6 + $0x58] sm:$0xff]  ;;  %v3480_v47 = vld [vmem:[%s9048_s6 + $0x50] sm:$0xff]  ;;  %v3450_v53 = vld [vmem:[%s9047_s5 + $0x60] sm:$0xff] }
 0x527   :  { %4285 = vperm.xlu0 %5264, %v4023_v11   ;;  %4280 = vperm.xlu1 %5263, %v4022_v12   ;;  %v3552_v45 = vpop.xlane.xlu0 %3551  ;;  %v3960_v42 = vmul.f32 %v5414_v52, %v3448_v39 }
 0x528   :  { %v5416_v20 = vpop.eup %5415  ;;  %v3868_v6 = vmax.f32 %v3836_v50, 0.0  ;;  %v8677_v29 = vmul.f32 0.125, %v3552_v45 }
 0x529   :  { %v3677_v21 = vpop.xlane.xlu1 %3676  ;;  %v3961_v48 = vmul.f32 %v5416_v20, %v3449_v56  ;;  %v3992_v31 = vmul.f32 %v3960_v42, %v8602_v4  ;;  %v3813_v20 = vmul.f32 %v8669_v23, %v8669_v23 }
 0x52a   :  { %v3900_v9 = vadd.f32 1e-05, %v3868_v6  ;;  %v3773_v28 = vmul.f32 0.125, %v3677_v21 }
 0x52b   :  { %4103 = vperm.xlu0 %5264, %v3961_v48   ;;  %4098 = vperm.xlu1 %5263, %v3960_v42   ;;  %v3576_v4 = vpop.xlane.xlu0 %3575  ;;  %v3993_v39 = vmul.f32 %v3961_v48, %v8605_v15  ;;  %v4024_v50 = vsub.f32 %v3480_v47, %v3992_v31  ;;  %v3451_v42 = vld [vmem:[%s9047_s5 + $0x68] sm:$0xff]  ;;  %v3806_v15 = vmul.f32 %v8677_v29, %v8677_v29 }
 0x52c   :  { %5421 = vrsqrt.f32 %v3900_v9  ;;  %v3837_v11 = vsub.f32 %v3773_v28, %v3805_v62  ;;  %v8690_v31 = vmul.f32 0.125, %v3576_v4 }
 0x52d   :  { %v3701_v12 = vpop.xlane.xlu1 %3700  ;;  %v4025_v52 = vsub.f32 %v3481_v37, %v3993_v39 }
 0x52e   :  { %v5418_v56 = vpop.eup %5417  ;;  %v3869_v45 = vmax.f32 %v3837_v11, 0.0  ;;  %v3781_v6 = vmul.f32 0.125, %v3701_v12 }
 0x52f   :  { %4295 = vperm.xlu0 %5264, %v4025_v52   ;;  %4290 = vperm.xlu1 %5263, %v4024_v50   ;;  %v3680_v21 = vpop.xlane.xlu0 %3679  ;;  %v3962_v48 = vmul.f32 %v5418_v56, %v3450_v53  ;;  %v3483_v52 = vld [vmem:[%s9048_s6 + $0x68] sm:$0xff]  ;;  %v3482_v53 = vld [vmem:[%s9048_s6 + $0x60] sm:$0xff]  ;;  %v3814_v56 = vmul.f32 %v8690_v31, %v8690_v31 }
 0x530   :  { %v5420_v62 = vpop.eup %5419  ;;  %v3901_v9 = vadd.f32 1e-05, %v3869_v45  ;;  %v3845_v28 = vsub.f32 %v3781_v6, %v3813_v20  ;;  %v3774_v37 = vmul.f32 0.125, %v3680_v21  ;;  %v3452_v6 = vld [vmem:[%s9047_s5 + $0x70] sm:$0xff] }
 0x531   :  { %v3555_v47 = vpop.xlane.xlu1 %3554  ;;  %v3963_v39 = vmul.f32 %v5420_v62, %v3451_v42  ;;  %v3994_v11 = vmul.f32 %v3962_v48, %v8624_v44 }
 0x532   :  { %5423 = vrsqrt.f32 %v3901_v9  ;;  %v3877_v12 = vmax.f32 %v3845_v28, 0.0  ;;  %v3838_v55 = vsub.f32 %v3774_v37, %v3806_v15 }
 0x533   :  { %4113 = vperm.xlu0 %5264, %v3963_v39   ;;  %4108 = vperm.xlu1 %5263, %v3962_v48   ;;  %v3704_v4 = vpop.xlane.xlu0 %3703  ;;  %v3995_v50 = vmul.f32 %v3963_v39, %v8627_v24  ;;  %v4026_v21 = vsub.f32 %v3482_v53, %v3994_v11  ;;  %v8705_v48 = vmul.f32 0.125, %v3555_v47  ;;  %v3453_v47 = vld [vmem:[%s9047_s5 + $0x78] sm:$0xff] }
 0x534   :  { %v3909_v44 = vadd.f32 1e-05, %v3877_v12  ;;  %v3870_v20 = vmax.f32 %v3838_v55, 0.0  ;;  %v3782_v45 = vmul.f32 0.125, %v3704_v4 }
 0x535   :  { %v3579_v42 = vpop.xlane.xlu1 %3578  ;;  %v4027_v15 = vsub.f32 %v3483_v52, %v3995_v50  ;;  %v3807_v4 = vmul.f32 %v8705_v48, %v8705_v48  ;;  %v3484_v50 = vld [vmem:[%s9048_s6 + $0x70] sm:$0xff] }
 0x536   :  { %v5422_v62 = vpop.eup %5421  ;;  %5425 = vrsqrt.f32 %v3909_v44  ;;  %v3902_v9 = vadd.f32 1e-05, %v3870_v20  ;;  %v3846_v28 = vsub.f32 %v3782_v45, %v3814_v56  ;;  %v8710_v11 = vmul.f32 0.125, %v3579_v42 }
 0x537   :  { %4305 = vperm.xlu0 %5264, %v4027_v15   ;;  %4300 = vperm.xlu1 %5263, %v4026_v21   ;;  %v3558_v24 = vpop.xlane.xlu0 %3557  ;;  %v3964_v37 = vmul.f32 %v5422_v62, %v3452_v6 }
 0x538   :  { %5427 = vrsqrt.f32 %v3902_v9  ;;  %v3878_v55 = vmax.f32 %v3846_v28, 0.0  ;;  %v8718_v56 = vmul.f32 0.125, %v3558_v24  ;;  %v3815_v15 = vmul.f32 %v8710_v11, %v8710_v11  ;;  %v3461_v9 = vld [vmem:[%s9047_s5 + $0xb8] sm:$0xff] }
 0x539   :  { %v3683_v39 = vpop.xlane.xlu1 %3682  ;;  %v3996_v12 = vmul.f32 %v3964_v37, %v8646_v43 }
 0x53a   :  { %v3910_v52 = vadd.f32 1e-05, %v3878_v55  ;;  %v3775_v53 = vmul.f32 0.125, %v3683_v39  ;;  %v3808_v28 = vmul.f32 %v8718_v56, %v8718_v56 }
 0x53b   :  { %4118 = vperm.xlu1 %5263, %v3964_v37   ;;  %v3582_v44 = vpop.xlane.xlu0 %3581  ;;  %v4028_v42 = vsub.f32 %v3484_v50, %v3996_v12 }
 0x53c   :  { %v5424_v43 = vpop.eup %5423  ;;  %5429 = vrsqrt.f32 %v3910_v52  ;;  %v3839_v20 = vsub.f32 %v3775_v53, %v3807_v4  ;;  %v8727_v39 = vmul.f32 0.125, %v3582_v44  ;;  %v3454_v52 = vld [vmem:[%s9047_s5 + $0x80] sm:$0xff] }
 0x53d   :  { %v3707_v45 = vpop.xlane.xlu1 %3706  ;;  %v3965_v6 = vmul.f32 %v5424_v43, %v3453_v47 }
 0x53e   :  { %v3871_v21 = vmax.f32 %v3839_v20, 0.0  ;;  %v3783_v62 = vmul.f32 0.125, %v3707_v45 }
 0x53f   :  { %4123 = vperm.xlu0 %5264, %v3965_v6   ;;  %4310 = vperm.xlu1 %5263, %v4028_v42   ;;  %v3686_v24 = vpop.xlane.xlu0 %3685  ;;  %v3997_v50 = vmul.f32 %v3965_v6, %v8661_v17  ;;  %v3485_v42 = vld [vmem:[%s9048_s6 + $0x78] sm:$0xff]  ;;  %v3462_v17 = vld [vmem:[%s9047_s5 + $0xc0] sm:$0xff] }
 0x540   :  { %v5426_v37 = vpop.eup %5425  ;;  %v3903_v55 = vadd.f32 1e-05, %v3871_v21  ;;  %v3847_v12 = vsub.f32 %v3783_v62, %v3815_v15  ;;  %v3776_v4 = vmul.f32 0.125, %v3686_v24  ;;  %v3816_v21 = vmul.f32 %v8727_v39, %v8727_v39 }
 0x541   :  { %v3561_v53 = vpop.xlane.xlu1 %3560  ;;  %v3973_v47 = vmul.f32 %v5426_v37, %v3461_v9 }
 0x542   :  { %v5428_v43 = vpop.eup %5427  ;;  %5431 = vrsqrt.f32 %v3903_v55  ;;  %v3879_v20 = vmax.f32 %v3847_v12, 0.0  ;;  %v3840_v45 = vsub.f32 %v3776_v4, %v3808_v28  ;;  %v8741_v6 = vmul.f32 0.125, %v3561_v53 }
 0x543   :  { %4163 = vperm.xlu0 %5264, %v3973_v47   ;;  %v3710_v44 = vpop.xlane.xlu0 %3709  ;;  %v3966_v15 = vmul.f32 %v5428_v43, %v3454_v52  ;;  %v4029_v28 = vsub.f32 %v3485_v42, %v3997_v50  ;;  %v4005_v43 = vmul.f32 %v3973_v47, %v8669_v23 }
 0x544   :  { %v3911_v62 = vadd.f32 1e-05, %v3879_v20  ;;  %v3872_v24 = vmax.f32 %v3840_v45, 0.0  ;;  %v3784_v54 = vmul.f32 0.125, %v3710_v44  ;;  %v3493_v45 = vld [vmem:[%s9048_s6 + $0xb8] sm:$0xff]  ;;  %v3809_v53 = vmul.f32 %v8741_v6, %v8741_v6 }
 0x545   :  { %v3585_v9 = vpop.xlane.xlu1 %3584  ;;  %4128 = vperm.xlu1 %5263, %v3966_v15  }
 0x546   :  { %v5430_v37 = vpop.eup %5429  ;;  %5433 = vrsqrt.f32 %v3911_v62  ;;  %v3904_v55 = vadd.f32 1e-05, %v3872_v24  ;;  %v3848_v12 = vsub.f32 %v3784_v54, %v3816_v21  ;;  %v8749_v42 = vmul.f32 0.125, %v3585_v9  ;;  %v3455_v21 = vld [vmem:[%s9047_s5 + $0x88] sm:$0xff] }
 0x547   :  { %4315 = vperm.xlu0 %5264, %v4029_v28   ;;  %v3564_v4 = vpop.xlane.xlu0 %3563  ;;  %v3974_v52 = vmul.f32 %v5430_v37, %v3462_v17  ;;  %v4037_v62 = vsub.f32 %v3493_v45, %v4005_v43  ;;  %v3998_v24 = vmul.f32 %v3966_v15, %v8677_v29  ;;  %v3486_v37 = vld [vmem:[%s9048_s6 + $0x80] sm:$0xff]  ;;  %v3463_v43 = vld [vmem:[%s9047_s5 + $0xc8] sm:$0xff] }
 0x548   :  { %v3880_v20 = vmax.f32 %v3848_v12, 0.0  ;;  %5435 = vrsqrt.f32 %v3904_v55  ;;  %v8754_v23 = vmul.f32 0.125, %v3564_v4  ;;  %v3817_v12 = vmul.f32 %v8749_v42, %v8749_v42 }
 0x549   :  { %v3689_v44 = vpop.xlane.xlu1 %3688  ;;  %4168 = vperm.xlu1 %5263, %v3974_v52   ;;  %v4030_v45 = vsub.f32 %v3486_v37, %v3998_v24 }
 0x54a   :  { %v3912_v50 = vadd.f32 1e-05, %v3880_v20  ;;  %v3777_v54 = vmul.f32 0.125, %v3689_v44  ;;  %v3810_v29 = vmul.f32 %v8754_v23, %v8754_v23 }
 0x54b   :  { %v3588_v47 = vpop.xlane.xlu0 %3587 }
 0x54c   :  { %v5432_v17 = vpop.eup %5431  ;;  %v3841_v28 = vsub.f32 %v3777_v54, %v3809_v53  ;;  %5437 = vrsqrt.f32 %v3912_v50  ;;  %v4006_v53 = vmul.f32 %v3974_v52, %v8690_v31  ;;  %v8768_v50 = vmul.f32 0.125, %v3588_v47  ;;  %v3487_v31 = vld [vmem:[%s9048_s6 + $0x88] sm:$0xff] }
 0x54d   :  { %v3713_v55 = vpop.xlane.xlu1 %3712  ;;  %4355 = vperm.xlu1 %5263, %v4037_v62   ;;  %v3967_v9 = vmul.f32 %v5432_v17, %v3455_v21  ;;  %v3494_v17 = vld [vmem:[%s9048_s6 + $0xc0] sm:$0xff] }
 0x54e   :  { %v3873_v20 = vmax.f32 %v3841_v28, 0.0  ;;  %v3785_v4 = vmul.f32 0.125, %v3713_v55  ;;  %v4038_v47 = vsub.f32 %v3494_v17, %v4006_v53 }
 0x54f   :  { %4133 = vperm.xlu0 %5264, %v3967_v9   ;;  %v3692_v15 = vpop.xlane.xlu0 %3691  ;;  %v3999_v3 = vmul.f32 %v3967_v9, %v8705_v48  ;;  %v3456_v48 = vld [vmem:[%s9047_s5 + $0x90] sm:$0xff] }
 0x550   :  { %v5434_v44 = vpop.eup %5433  ;;  %v3905_v54 = vadd.f32 1e-05, %v3873_v20  ;;  %v3849_v21 = vsub.f32 %v3785_v4, %v3817_v12  ;;  %v3778_v62 = vmul.f32 0.125, %v3692_v15  ;;  %v3818_v12 = vmul.f32 %v8768_v50, %v8768_v50 }
 0x551   :  { %v3567_v28 = vpop.xlane.xlu1 %3566  ;;  %4320 = vperm.xlu1 %5263, %v4030_v45   ;;  %v3975_v55 = vmul.f32 %v5434_v44, %v3463_v43  ;;  %v4031_v43 = vsub.f32 %v3487_v31, %v3999_v3 }
 0x552   :  { %5439 = vrsqrt.f32 %v3905_v54  ;;  %v3881_v30 = vmax.f32 %v3849_v21, 0.0  ;;  %v3842_v24 = vsub.f32 %v3778_v62, %v3810_v29  ;;  %v5436_v37 = vpop.eup %5435  ;;  %v8782_v15 = vmul.f32 0.125, %v3567_v28 }
 0x553   :  { %4173 = vperm.xlu0 %5264, %v3975_v55   ;;  %v3716_v52 = vpop.xlane.xlu0 %3715  ;;  %v3968_v44 = vmul.f32 %v5436_v37, %v3456_v48  ;;  %v3495_v48 = vld [vmem:[%s9048_s6 + $0xc8] sm:$0xff] }
 0x554   :  { %v3913_v20 = vadd.f32 1e-05, %v3881_v30  ;;  %v3786_v4 = vmul.f32 0.125, %v3716_v52  ;;  %v3874_v29 = vmax.f32 %v3842_v24, 0.0  ;;  %v3464_v30 = vld [vmem:[%s9047_s5 + $0xd0] sm:$0xff]  ;;  %v3811_v3 = vmul.f32 %v8782_v15, %v8782_v15  ;;  %v3457_v24 = vld [vmem:[%s9047_s5 + $0x98] sm:$0xff] }
 0x555   :  { %v3591_v9 = vpop.xlane.xlu1 %3590  ;;  %4360 = vperm.xlu1 %5263, %v4038_v47  }
 0x556   :  { %5441 = vrsqrt.f32 %v3913_v20  ;;  %v3850_v45 = vsub.f32 %v3786_v4, %v3818_v12  ;;  %v5438_v54 = vpop.eup %5437  ;;  %v3906_v17 = vadd.f32 1e-05, %v3874_v29  ;;  %v8789_v31 = vmul.f32 0.125, %v3591_v9 }
 0x557   :  { %4325 = vperm.xlu0 %5264, %v4031_v43   ;;  %v3570_v53 = vpop.xlane.xlu0 %3569  ;;  %v3976_v37 = vmul.f32 %v5438_v54, %v3464_v30  ;;  %v4007_v12 = vmul.f32 %v3975_v55, %v8710_v11  ;;  %v3465_v11 = vld [vmem:[%s9047_s5 + $0xd8] sm:$0xff] }
 0x558   :  { %v3882_v21 = vmax.f32 %v3850_v45, 0.0  ;;  %v8794_v52 = vmul.f32 0.125, %v3570_v53  ;;  %5443 = vrsqrt.f32 %v3906_v17  ;;  %v3819_v45 = vmul.f32 %v8789_v31, %v8789_v31 }
 0x559   :  { %v3695_v62 = vpop.xlane.xlu1 %3694  ;;  %4138 = vperm.xlu1 %5263, %v3968_v44   ;;  %v4039_v30 = vsub.f32 %v3495_v48, %v4007_v12 }
 0x55a   :  { %v3779_v28 = vmul.f32 0.125, %v3695_v62  ;;  %v3914_v43 = vadd.f32 1e-05, %v3882_v21  ;;  %v3812_v55 = vmul.f32 %v8794_v52, %v8794_v52  ;;  %v4000_v21 = vmul.f32 %v3968_v44, %v8718_v56  ;;  %v3489_v44 = vld [vmem:[%s9048_s6 + $0x98] sm:$0xff] }
 0x55b   :  { %v3594_v47 = vpop.xlane.xlu0 %3593 }
 0x55c   :  { %v5440_v20 = vpop.eup %5439  ;;  %v3843_v4 = vsub.f32 %v3779_v28, %v3811_v3  ;;  %v8808_v17 = vmul.f32 0.125, %v3594_v47  ;;  %5445 = vrsqrt.f32 %v3914_v43 }
 0x55d   :  { %v3719_v9 = vpop.xlane.xlu1 %3718  ;;  %4178 = vperm.xlu1 %5263, %v3976_v37   ;;  %v3969_v29 = vmul.f32 %v5440_v20, %v3457_v24 }
 0x55e   :  { %v3875_v53 = vmax.f32 %v3843_v4, 0.0  ;;  %v3787_v62 = vmul.f32 0.125, %v3719_v9  ;;  %v3488_v4 = vld [vmem:[%s9048_s6 + $0x90] sm:$0xff]  ;;  %v3820_v43 = vmul.f32 %v8808_v17, %v8808_v17 }
 0x55f   :  { %4143 = vperm.xlu0 %5264, %v3969_v29   ;;  %v3698_v54 = vpop.xlane.xlu0 %3697  ;;  %v4001_v22 = vmul.f32 %v3969_v29, %v8741_v6  ;;  %v3496_v29 = vld [vmem:[%s9048_s6 + $0xd0] sm:$0xff] }
 0x560   :  { %v5442_v3 = vpop.eup %5441  ;;  %v3907_v28 = vadd.f32 1e-05, %v3875_v53  ;;  %v3851_v24 = vsub.f32 %v3787_v62, %v3819_v45  ;;  %v3780_v20 = vmul.f32 0.125, %v3698_v54  ;;  %v4032_v45 = vsub.f32 %v3488_v4, %v4000_v21 }
 0x561   :  { %4365 = vperm.xlu1 %5263, %v4039_v30   ;;  %v8813_v9 = vmul.f32 %v5442_v3, %v3465_v11  ;;  %v3597_v56 = vpop.xlane.xlu1 %3596  ;;  %v4008_v53 = vmul.f32 %v3976_v37, %v8727_v39  ;;  %v3458_v37 = vld [vmem:[%s9047_s5 + $0xa0] sm:$0xff] }
 0x562   :  { %5447 = vrsqrt.f32 %v3907_v28  ;;  %v3883_v12 = vmax.f32 %v3851_v24, 0.0  ;;  %v3844_v48 = vsub.f32 %v3780_v20, %v3812_v55  ;;  %v4033_v55 = vsub.f32 %v3489_v44, %v4001_v22  ;;  %v5444_v21 = vpop.eup %5443  ;;  %v3459_v22 = vld [vmem:[%s9047_s5 + $0xa8] sm:$0xff] }
 0x563   :  { %4183 = vperm.xlu0 %5264, %v8813_v9   ;;  %v3722_v47 = vpop.xlane.xlu0 %3721  ;;  %v4040_v3 = vsub.f32 %v3496_v29, %v4008_v53  ;;  %v8829_v24 = vmul.f32 0.125, %v3597_v56  ;;  %v3467_v53 = vld [vmem:[%s9047_s5 + $0xe8] sm:$0xff]  ;;  %v3490_v29 = vld [vmem:[%s9048_s6 + $0xa0] sm:$0xff] }
 0x564   :  { %v3915_v62 = vadd.f32 1e-05, %v3883_v12  ;;  %v3876_v11 = vmax.f32 %v3844_v48, 0.0  ;;  %v3788_v6 = vmul.f32 0.125, %v3722_v47  ;;  %v3970_v48 = vmul.f32 %v5444_v21, %v3458_v37  ;;  %v3466_v47 = vld [vmem:[%s9047_s5 + $0xe0] sm:$0xff] }
 0x565   :  { %4330 = vperm.xlu1 %5263, %v4032_v45   ;;  %v3725_v39 = vpop.xlane.xlu1 %3724  ;;  %v3821_v45 = vmul.f32 %v8829_v24, %v8829_v24 }
 0x566   :  { %5449 = vrsqrt.f32 %v3915_v62  ;;  %v3908_v54 = vadd.f32 1e-05, %v3876_v11  ;;  %v3852_v30 = vsub.f32 %v3788_v6, %v3820_v43  ;;  %v5446_v4 = vpop.eup %5445  ;;  %v3789_v12 = vmul.f32 0.125, %v3725_v39 }
 0x567   :  { %4335 = vperm.xlu0 %5264, %v4033_v55   ;;  %v3978_v62 = vmul.f32 %v5446_v4, %v3466_v47  ;;  %v4002_v11 = vmul.f32 %v3970_v48, %v8754_v23  ;;  %v3460_v23 = vld [vmem:[%s9047_s5 + $0xb0] sm:$0xff] }
 0x568   :  { %v3884_v28 = vmax.f32 %v3852_v30, 0.0  ;;  %5451 = vrsqrt.f32 %v3908_v54  ;;  %v3853_v43 = vsub.f32 %v3789_v12, %v3821_v45  ;;  %v3491_v30 = vld [vmem:[%s9048_s6 + $0xa8] sm:$0xff]  ;;  %v3468_v4 = vld [vmem:[%s9047_s5 + $0xf0] sm:$0xff] }
 0x569   :  { %4370 = vperm.xlu1 %5263, %v4040_v3   ;;  %v4034_v21 = vsub.f32 %v3490_v29, %v4002_v11  ;;  %v3492_v47 = vld [vmem:[%s9048_s6 + $0xb0] sm:$0xff]  ;;  %v4010_v29 = vmul.f32 %v3978_v62, %v8768_v50 }
 0x56a   :  { %v3916_v20 = vadd.f32 1e-05, %v3884_v28  ;;  %v3885_v3 = vmax.f32 %v3853_v43, 0.0 }
 0x56c   :  { %v5448_v44 = vpop.eup %5447  ;;  %5453 = vrsqrt.f32 %v3916_v20  ;;  %v3917_v37 = vadd.f32 1e-05, %v3885_v3 }
 0x56d   :  { %4148 = vperm.xlu1 %5263, %v3970_v48   ;;  %v3971_v56 = vmul.f32 %v5448_v44, %v3459_v22  ;;  %v4552_v44 = vld [vmem:[%s9049_s7 + $0xd0] sm:$0xff] }
 0x56e   :  { %5455 = vrsqrt.f32 %v3917_v37 }
 0x56f   :  { %4153 = vperm.xlu0 %5264, %v3971_v56   ;;  %v4003_v54 = vmul.f32 %v3971_v56, %v8782_v15  ;;  %v4551_v15 = vld [vmem:[%s9049_s7 + $0xc8] sm:$0xff]  ;;  %v4009_v56 = vmul.f32 %v8813_v9, %v8749_v42  ;;  %v3498_v42 = vld [vmem:[%s9048_s6 + $0xe0] sm:$0xff] }
 0x570   :  { %v5450_v6 = vpop.eup %5449 }
 0x571   :  { %4188 = vperm.xlu1 %5263, %v3978_v62   ;;  %v3979_v55 = vmul.f32 %v5450_v6, %v3467_v53  ;;  %v4035_v39 = vsub.f32 %v3491_v30, %v4003_v54  ;;  %v4553_v53 = vld [vmem:[%s9049_s7 + $0xd8] sm:$0xff]  ;;  %v4554_v54 = vld [vmem:[%s9049_s7 + $0xe0] sm:$0xff] }
 0x572   :  { %v5452_v28 = vpop.eup %5451 }
 0x573   :  { %4193 = vperm.xlu0 %5264, %v3979_v55   ;;  %v3972_v20 = vmul.f32 %v5452_v28, %v3460_v23  ;;  %v4011_v37 = vmul.f32 %v3979_v55, %v8789_v31  ;;  %v3500_v31 = vld [vmem:[%s9048_s6 + $0xf0] sm:$0xff] }
 0x575   :  { %4340 = vperm.xlu1 %5263, %v4034_v21   ;;  %v4004_v48 = vmul.f32 %v3972_v20, %v8794_v52  ;;  %v3497_v52 = vld [vmem:[%s9048_s6 + $0xd8] sm:$0xff] }
 0x576   :  { %v5454_v22 = vpop.eup %5453  ;;  %v4041_v6 = vsub.f32 %v3497_v52, %v4009_v56  ;;  %v3469_v21 = vld [vmem:[%s9047_s5 + $0xf8] sm:$0xff] }
 0x577   :  { %4345 = vperm.xlu0 %5264, %v4035_v39   ;;  %v3980_v12 = vmul.f32 %v5454_v22, %v3468_v4  ;;  %v4036_v45 = vsub.f32 %v3492_v47, %v4004_v48  ;;  %v4042_v39 = vsub.f32 %v3498_v42, %v4010_v29 }
 0x578   :  { %v5456_v9 = vpop.eup %5455 }
 0x579   :  { %4158 = vperm.xlu1 %5263, %v3972_v20   ;;  %v3981_v20 = vmul.f32 %v5456_v9, %v3469_v21  ;;  %v4012_v48 = vmul.f32 %v3980_v12, %v8808_v17 }
 0x57b   :  { %4685 = vperm.xlu0 %5264, %v4551_v15   ;;  %v4044_v29 = vsub.f32 %v3500_v31, %v4012_v48 }
 0x57c   :  { %v4049_v43 = vpop.permute.xlu0 %4048 }
 0x57d   :  { %4198 = vperm.xlu1 %5263, %v3980_v12   ;;  %v4206_v30 = vmul.f32 %v4049_v43, %v8244_v59  ;;  %v3499_v59 = vld [vmem:[%s9048_s6 + $0xe8] sm:$0xff] }
 0x57f   :  { %4690 = vperm.xlu0 %5264, %v4552_v44  }
 0x581   :  { %4350 = vperm.xlu1 %5263, %v4036_v45   ;;  %v4043_v45 = vsub.f32 %v3499_v59, %v4011_v37 }
 0x582   :  { %v4054_v11 = vpop.permute.xlu1 %4053 }
 0x583   :  { %4695 = vperm.xlu0 %5264, %v4553_v53   ;;  %v4207_v3 = vmul.f32 %v4054_v11, %v8252_v46  ;;  %v4555_v53 = vld [vmem:[%s9049_s7 + $0xe8] sm:$0xff] }
 0x585   :  { %4375 = vperm.xlu1 %5263, %v4041_v6  }
 0x586   :  { %v4241_v28 = vpop.permute.xlu1 %4240  ;;  %v4246_v50 = vpop.permute.xlu0 %4245 }
 0x587   :  { %v4398_v62 = vadd.f32 %v4241_v28, %v4206_v30  ;;  %v4399_v23 = vadd.f32 %v4246_v50, %v4207_v3  ;;  %4700 = vperm.xlu0 %5264, %v4554_v54  }
 0x589   :  { %vm4430_vm9 = vcmp.ge.f32.partialorder %v4398_v62, 0.0  ;;  %v4462_v46 = vmul.f32 0.25, %v4398_v62  ;;  %vm4431_vm10 = vcmp.ge.f32.partialorder %v4399_v23, 0.0  ;;  %v4463_v22 = vmul.f32 0.25, %v4399_v23  ;;  %4380 = vperm.xlu1 %5263, %v4042_v39  }
 0x58a   :  { %v4059_v15 = vpop.permute.xlu1 %4058  ;;  %v4064_v4 = vpop.permute.xlu0 %4063 }
 0x58b   :  { %v4494_v44 = vsel %vm4430_vm9, %v4398_v62, %v4462_v46  ;;  %v4495_v47 = vsel %vm4431_vm10, %v4399_v23, %v4463_v22  ;;  %4203 = vperm.xlu0 %5264, %v3981_v20   ;;  %v4208_v52 = vmul.f32 %v4059_v15, %v8259_v16  ;;  %v4209_v17 = vmul.f32 %v4064_v4, %v8267_v40  ;;  %v4557_v16 = vld [vmem:[%s9049_s7 + $0xf8] sm:$0xff]  ;;  %v4556_v46 = vld [vmem:[%s9049_s7 + $0xf0] sm:$0xff]  ;;  %s5488_s7 = smov [#allocation3]  }
 0x58c   :  { %v4718_v55 = vmul.f32 %v8373_v0, %v4494_v44  ;;  %v4719_v56 = vmul.f32 %v8438_v38, %v4495_v47  ;;  %v4013_v38 = vmul.f32 %v3981_v20, %v8829_v24  ;;  %v3501_v40 = vld [vmem:[%s9048_s6 + $0xf8] sm:$0xff]  ;;  %v4819_v47 = vld [vmem:[#allocation2] sm:$0x1]  ;;  %s4844_s8 = sshll.u32 %s5488_s7, 4  ;;  %s4845_s8 = int_to_ptr.vmem [resolvable:$true] %s4844_s8 }
 0x58d   :  { %4385 = vperm.xlu1 %5263, %v4043_v45   ;;  %s5461_s17 = scalar_lea.vmem %s4845_s8, 16  ;;  %s5465_s18 = scalar_lea.vmem %s4845_s8, 32 }
 0x58e   :  { %v4750_v12 = vsel %vm811_vm4, %v4718_v55, 0.0  ;;  %v4751_v43 = vsel %vm811_vm4, %v4719_v56, 0.0  ;;  %v4251_v11 = vpop.permute.xlu1 %4250  ;;  %v4256_v6 = vpop.permute.xlu0 %4255  ;;  %v4045_v50 = vsub.f32 %v3501_v40, %v4013_v38  ;;  %p5462_p0 = scmp.ne.s32.totalorder %s4845_s8, %s5461_s17  ;;  %p5466_p1 = scmp.lt.s32.totalorder %s4845_s8, %s4845_s8 }
 0x58f   :  { %v4752_v54 = vadd.f32 %v4751_v43, %v4750_v12  ;;  %v4400_v0 = vadd.f32 %v4251_v11, %v4208_v52  ;;  %v4401_v42 = vadd.f32 %v4256_v6, %v4209_v17  ;;  %4705 = vperm.xlu0 %5264, %v4555_v53   ;;  %p5467_p2 = scmp.lt.s32.totalorder %s5465_s18, %s5461_s17 }
 0x591   :  { %vm4432_vm11 = vcmp.ge.f32.partialorder %v4400_v0, 0.0  ;;  %v4464_v9 = vmul.f32 0.25, %v4400_v0  ;;  %v4465_v30 = vmul.f32 0.25, %v4401_v42  ;;  %4390 = vperm.xlu1 %5263, %v4044_v29   ;;  %vm4433_vm12 = vcmp.ge.f32.partialorder %v4401_v42, 0.0  ;;  %p5468_p3 = por %p5467_p2, %p5466_p1 }
 0x592   :  { %v4069_v3 = vpop.permute.xlu1 %4068  ;;  %v4074_v21 = vpop.permute.xlu0 %4073 }
 0x593   :  { %v4496_v28 = vsel %vm4432_vm11, %v4400_v0, %v4464_v9  ;;  %4715 = vperm.xlu0 %5264, %v4557_v16   ;;  %v4497_v62 = vsel %vm4433_vm12, %v4401_v42, %v4465_v30  ;;  %v4210_v23 = vmul.f32 %v4069_v3, %v8280_v57  ;;  %v4211_v39 = vmul.f32 %v4074_v21, %v8287_v14  ;;  %p5469_p4 = pnand %p5468_p3, %p5462_p0 }
 0x594   :  { %v4720_v24 = vmul.f32 %v8385_v63, %v4496_v28  ;;  %v4721_v48 = vmul.f32 %v8453_v19, %v4497_v62 }
 0x595   :  { %4395 = vperm.xlu1 %5263, %v4045_v50  }
 0x596   :  { %v4753_v37 = vsel %vm811_vm4, %v4720_v24, 0.0  ;;  %v4261_v20 = vpop.permute.xlu1 %4260  ;;  %v4266_v59 = vpop.permute.xlu0 %4265  ;;  %v4755_v31 = vsel %vm811_vm4, %v4721_v48, 0.0 }
 0x597   :  { %v4754_v22 = vadd.f32 %v4753_v37, %v4752_v54  ;;  %v4402_v15 = vadd.f32 %v4261_v20, %v4210_v23  ;;  %v4403_v4 = vadd.f32 %v4266_v59, %v4211_v39 }
 0x599   :  { %vm4434_vm13 = vcmp.ge.f32.partialorder %v4402_v15, 0.0  ;;  %v4466_v63 = vmul.f32 0.25, %v4402_v15  ;;  %4710 = vperm.xlu1 %5263, %v4556_v46   ;;  %vm4435_vm14 = vcmp.ge.f32.partialorder %v4403_v4, 0.0  ;;  %v4467_v57 = vmul.f32 0.25, %v4403_v4 }
 0x59a   :  { %v4079_v14 = vpop.permute.xlu1 %4078  ;;  %v4084_v44 = vpop.permute.xlu0 %4083  ;;  %v4756_v56 = vadd.f32 %v4755_v31, %v4754_v22 }
 0x59b   :  { %v4498_v45 = vsel %vm4434_vm13, %v4402_v15, %v4466_v63  ;;  %v4499_v53 = vsel %vm4435_vm14, %v4403_v4, %v4467_v57  ;;  %v4212_v52 = vmul.f32 %v4079_v14, %v8300_v34  ;;  %v4213_v17 = vmul.f32 %v4084_v44, %v8307_v35 }
 0x59c   :  { %v4722_v55 = vmul.f32 %v8400_v61, %v4498_v45  ;;  %v4723_v54 = vmul.f32 %v8463_v49, %v4499_v53 }
 0x59d   :  { %4822 = vperm.xlu1 %5263, %v4819_v47  }
 0x59e   :  { %v4757_v19 = vsel %vm811_vm4, %v4722_v55, 0.0  ;;  %v4271_v12 = vpop.permute.xlu1 %4270  ;;  %v4276_v43 = vpop.permute.xlu0 %4275  ;;  %v4759_v34 = vsel %vm811_vm4, %v4723_v54, 0.0 }
 0x59f   :  { %v4758_v11 = vadd.f32 %v4757_v19, %v4756_v56  ;;  %v4404_v6 = vadd.f32 %v4271_v12, %v4212_v52  ;;  %v4405_v29 = vadd.f32 %v4276_v43, %v4213_v17 }
 0x5a1   :  { %vm4436_vm15 = vcmp.ge.f32.partialorder %v4404_v6, 0.0  ;;  %v4468_v0 = vmul.f32 0.25, %v4404_v6  ;;  %vm4437_vm0 = vcmp.ge.f32.partialorder %v4405_v29, 0.0  ;;  %v4469_v61 = vmul.f32 0.25, %v4405_v29 }
 0x5a2   :  { %v4089_v42 = vpop.permute.xlu1 %4088  ;;  %v4094_v38 = vpop.permute.xlu0 %4093  ;;  %v4760_v40 = vadd.f32 %v4759_v34, %v4758_v11 }
 0x5a3   :  { %v4500_v16 = vsel %vm4436_vm15, %v4404_v6, %v4468_v0  ;;  %v4501_v9 = vsel %vm4437_vm0, %v4405_v29, %v4469_v61  ;;  %v4214_v30 = vmul.f32 %v4089_v42, %v8320_v58  ;;  %v4215_v52 = vmul.f32 %v4094_v38, %v8327_v41 }
 0x5a4   :  { %v4724_v35 = vmul.f32 %v8413_v32, %v4500_v16  ;;  %v4725_v24 = vmul.f32 %v8476_v27, %v4501_v9 }
 0x5a6   :  { %v4761_v3 = vsel %vm811_vm4, %v4724_v35, 0.0  ;;  %v4281_v21 = vpop.permute.xlu1 %4280  ;;  %v4286_v28 = vpop.permute.xlu0 %4285  ;;  %v4763_v20 = vsel %vm811_vm4, %v4725_v24, 0.0 }
 0x5a7   :  { %v4762_v49 = vadd.f32 %v4761_v3, %v4760_v40  ;;  %v4406_v50 = vadd.f32 %v4281_v21, %v4214_v30  ;;  %v4407_v17 = vadd.f32 %v4286_v28, %v4215_v52  ;;  %v9344_v52 = vld [vmem:[#allocation71_spill] sm:$0xff] }
 0x5a9   :  { %vm4438_vm1 = vcmp.ge.f32.partialorder %v4406_v50, 0.0  ;;  %v4470_v62 = vmul.f32 0.25, %v4406_v50  ;;  %v4764_v59 = vadd.f32 %v4763_v20, %v4762_v49  ;;  %v4471_v6 = vmul.f32 0.25, %v4407_v17 }
 0x5aa   :  { %v4099_v23 = vpop.permute.xlu1 %4098  ;;  %v4104_v39 = vpop.permute.xlu0 %4103  ;;  %vm4439_vm2 = vcmp.ge.f32.partialorder %v4407_v17, 0.0 }
 0x5ab   :  { %v4502_v37 = vsel %vm4438_vm1, %v4406_v50, %v4470_v62  ;;  %v4216_v19 = vmul.f32 %v4099_v23, %v8338_v10  ;;  %v4217_v54 = vmul.f32 %v4104_v39, %v8343_v33  ;;  %v4503_v41 = vsel %vm4439_vm2, %v4407_v17, %v4471_v6 }
 0x5ac   :  { %v4726_v32 = vmul.f32 %v8427_v8, %v4502_v37  ;;  %v4727_v40 = vmul.f32 %v8488_v7, %v4503_v41 }
 0x5ae   :  { %v4765_v58 = vsel %vm811_vm4, %v4726_v32, 0.0  ;;  %v4291_v46 = vpop.permute.xlu1 %4290  ;;  %v4296_v22 = vpop.permute.xlu0 %4295  ;;  %v4767_v62 = vsel %vm811_vm4, %v4727_v40, 0.0 }
 0x5af   :  { %v4766_v15 = vadd.f32 %v4765_v58, %v4764_v59  ;;  %v4408_v11 = vadd.f32 %v4291_v46, %v4216_v19  ;;  %v4409_v16 = vadd.f32 %v4296_v22, %v4217_v54  ;;  %v9346_v54 = vld [vmem:[#allocation17_spill] sm:$0xff] }
 0x5b1   :  { %v4472_v0 = vmul.f32 0.25, %v4408_v11  ;;  %vm4440_vm3 = vcmp.ge.f32.partialorder %v4408_v11, 0.0  ;;  %v4473_v9 = vmul.f32 0.25, %v4409_v16  ;;  %vm4441_vm5 = vcmp.ge.f32.partialorder %v4409_v16, 0.0 }
 0x5b2   :  { %v4109_v4 = vpop.permute.xlu1 %4108  ;;  %v4114_v48 = vpop.permute.xlu0 %4113  ;;  %v4768_v37 = vadd.f32 %v4767_v62, %v4766_v15  ;;  %v9349_v62 = vld [vmem:[#allocation74_spill] sm:$0xff] }
 0x5b3   :  { %v4218_v61 = vmul.f32 %v4109_v4, %v8354_v18  ;;  %v4504_v10 = vsel %vm4440_vm3, %v4408_v11, %v4472_v0  ;;  %v4219_v30 = vmul.f32 %v4114_v48, %v8359_v26  ;;  %v4505_v24 = vsel %vm4441_vm5, %v4409_v16, %v4473_v9  ;;  %v9345_v11 = vld [vmem:[#allocation70_spill] sm:$0xff] }
 0x5b4   :  { %v4728_v18 = vmul.f32 %v8443_v60, %v4504_v10  ;;  %v4729_v60 = vmul.f32 %v8499_v5, %v4505_v24 }
 0x5b6   :  { %v4301_v63 = vpop.permute.xlu1 %4300  ;;  %v4306_v57 = vpop.permute.xlu0 %4305 }
 0x5b7   :  { %v4410_v38 = vadd.f32 %v4301_v63, %v4218_v61  ;;  %v4411_v28 = vadd.f32 %v4306_v57, %v4219_v30  ;;  %v9347_v30 = vld [vmem:[#allocation14_spill] sm:$0xff] }
 0x5b9   :  { %v4474_v3 = vmul.f32 0.25, %v4410_v38  ;;  %vm4442_vm6 = vcmp.ge.f32.partialorder %v4410_v38, 0.0  ;;  %vm4443_vm7 = vcmp.ge.f32.partialorder %v4411_v28, 0.0  ;;  %v4475_v32 = vmul.f32 0.25, %v4411_v28 }
 0x5ba   :  { %v4119_v27 = vpop.permute.xlu1 %4118 }
 0x5bb   :  { %v4220_v33 = vmul.f32 %v4119_v27, %v8370_v25  ;;  %v4506_v7 = vsel %vm4442_vm6, %v4410_v38, %v4474_v3  ;;  %v4769_v25 = vsel %vm811_vm4, %v4728_v18, 0.0  ;;  %v4771_v27 = vsel %vm811_vm4, %v4729_v60, 0.0 }
 0x5bc   :  { %v4770_v22 = vadd.f32 %v4769_v25, %v4768_v37 }
 0x5be   :  { %v4124_v14 = vpop.permute.xlu0 %4123  ;;  %v4311_v44 = vpop.permute.xlu1 %4310 }
 0x5bf   :  { %v4412_v49 = vadd.f32 %v4311_v44, %v4220_v33  ;;  %v4221_v50 = vmul.f32 %v4124_v14, %v8377_v13  ;;  %v4730_v13 = vmul.f32 %v8458_v51, %v4506_v7 }
 0x5c1   :  { %v4476_v59 = vmul.f32 0.25, %v4412_v49  ;;  %vm4444_vm8 = vcmp.ge.f32.partialorder %v4412_v49, 0.0  ;;  %v4773_v14 = vsel %vm811_vm4, %v4730_v13, 0.0 }
 0x5c2   :  { %v8932_v47 = vpop.permute.xlu0 %4163 }
 0x5c3   :  { %v4508_v57 = vsel %vm4444_vm8, %v4412_v49, %v4476_v59  ;;  %v9348_v49 = vld [vmem:[#allocation12_spill] sm:$0xff] }
 0x5c4   :  { %v4129_v45 = vpop.permute.xlu1 %4128  ;;  %v4732_v17 = vmul.f32 %v9344_v52, %v4508_v57  ;;  %v9355_v52 = vld [vmem:[#allocation85_spill] sm:$0xff] }
 0x5c5   :  { %v4222_v20 = vmul.f32 %v4129_v45, %v8388_v36  ;;  %v4507_v36 = vsel %vm4443_vm7, %v4411_v28, %v4475_v32  ;;  %v4772_v45 = vadd.f32 %v4771_v27, %v4770_v22  ;;  %v9351_v32 = vld [vmem:[#allocation15_spill] sm:$0xff] }
 0x5c6   :  { %v4316_v55 = vpop.permute.xlu0 %4315  ;;  %v4777_v10 = vsel %vm811_vm4, %v4732_v17, 0.0 }
 0x5c7   :  { %v4413_v23 = vadd.f32 %v4316_v55, %v4221_v50  ;;  %v4774_v6 = vadd.f32 %v4773_v14, %v4772_v45 }
 0x5c8   :  { %v8934_v31 = vpop.permute.xlu1 %4168 }
 0x5c9   :  { %v4477_v4 = vmul.f32 0.25, %v4413_v23  ;;  %vm4445_vm9 = vcmp.ge.f32.partialorder %v4413_v23, 0.0 }
 0x5cc   :  { %v8936_v8 = vpop.permute.xlu1 %4355 }
 0x5ce   :  { %v4134_v56 = vpop.permute.xlu0 %4133 }
 0x5cf   :  { %v4223_v58 = vmul.f32 %v4134_v56, %v8396_v1  ;;  %v4509_v1 = vsel %vm4445_vm9, %v4413_v23, %v4477_v4  ;;  %v9343_v56 = vld [vmem:[#allocation16_spill] sm:$0xff]  ;;  %v9352_v4 = vld [vmem:[#allocation6_spill] sm:$0xff] }
 0x5d0   :  { %v4321_v53 = vpop.permute.xlu1 %4320  ;;  %v4733_v0 = vmul.f32 %v9346_v54, %v4509_v1  ;;  %v9356_v54 = vld [vmem:[#allocation7_spill] sm:$0xff] }
 0x5d1   :  { %v4414_v46 = vadd.f32 %v4321_v53, %v4222_v20  ;;  %v4731_v53 = vmul.f32 %v9343_v56, %v4507_v36 }
 0x5d2   :  { %v8940_v12 = vpop.permute.xlu0 %4173  ;;  %v4779_v33 = vsel %vm811_vm4, %v4733_v0, 0.0 }
 0x5d3   :  { %v4478_v51 = vmul.f32 0.25, %v4414_v46  ;;  %vm4446_vm10 = vcmp.ge.f32.partialorder %v4414_v46, 0.0  ;;  %v4775_v38 = vsel %vm811_vm4, %v4731_v53, 0.0  ;;  %v4231_v0 = vmul.f32 %v8940_v12, %v9356_v54 }
 0x5d4   :  { %v8942_v43 = vpop.permute.xlu1 %4360  ;;  %v4776_v9 = vadd.f32 %v4775_v38, %v4774_v6 }
 0x5d5   :  { %v4510_v61 = vsel %vm4446_vm10, %v4414_v46, %v4478_v51 }
 0x5d6   :  { %v4326_v42 = vpop.permute.xlu0 %4325  ;;  %v4734_v3 = vmul.f32 %v9347_v30, %v4510_v61  ;;  %v4778_v24 = vadd.f32 %v4777_v10, %v4776_v9  ;;  %v9357_v61 = vld [vmem:[#allocation13_spill] sm:$0xff]  ;;  %v9359_v10 = vld [vmem:[#allocation79_spill] sm:$0xff] }
 0x5d7   :  { %v4415_v15 = vadd.f32 %v4326_v42, %v4223_v58 }
 0x5d8   :  { %v4139_v29 = vpop.permute.xlu1 %4138  ;;  %v4780_v20 = vadd.f32 %v4779_v33, %v4778_v24  ;;  %v4781_v60 = vsel %vm811_vm4, %v4734_v3, 0.0 }
 0x5d9   :  { %v4224_v63 = vmul.f32 %v4139_v29, %v8406_v2  ;;  %v4479_v19 = vmul.f32 0.25, %v4415_v15  ;;  %vm4447_vm11 = vcmp.ge.f32.partialorder %v4415_v15, 0.0 }
 0x5da   :  { %v4782_v57 = vadd.f32 %v4781_v60, %v4780_v20 }
 0x5db   :  { %v4511_v40 = vsel %vm4447_vm11, %v4415_v15, %v4479_v19  ;;  %v4229_v15 = vmul.f32 %v8932_v47, %v9352_v4 }
 0x5dc   :  { %v8946_v34 = vpop.permute.xlu1 %4178  ;;  %v4735_v7 = vmul.f32 %v9349_v62, %v4511_v40 }
 0x5dd   :  { %v4421_v14 = vadd.f32 %v8936_v8, %v4229_v15 }
 0x5de   :  { %v4144_v35 = vpop.permute.xlu0 %4143 }
 0x5df   :  { %v4225_v2 = vmul.f32 %v4144_v35, %v9345_v11  ;;  %v4485_v6 = vmul.f32 0.25, %v4421_v14  ;;  %vm4453_vm0 = vcmp.ge.f32.partialorder %v4421_v14, 0.0 }
 0x5e0   :  { %v8951_v21 = vpop.permute.xlu1 %4365 }
 0x5e1   :  { %v4423_v30 = vadd.f32 %v8951_v21, %v4231_v0  ;;  %v9366_v0 = vld [vmem:[#allocation72_spill] sm:$0xff] }
 0x5e2   :  { %v8956_v39 = vpop.permute.xlu0 %4183 }
 0x5e3   :  { %vm4455_vm3 = vcmp.ge.f32.partialorder %v4423_v30, 0.0 }
 0x5e4   :  { %v4331_v26 = vpop.permute.xlu1 %4330 }
 0x5e5   :  { %v4416_v44 = vadd.f32 %v4331_v26, %v4224_v63  ;;  %v9350_v26 = vld [vmem:[#allocation75_spill] sm:$0xff]  ;;  %v4783_v63 = vsel %vm811_vm4, %v4735_v7, 0.0 }
 0x5e6   :  { %v4336_v5 = vpop.permute.xlu0 %4335  ;;  %v4784_v53 = vadd.f32 %v4783_v63, %v4782_v57 }
 0x5e7   :  { %v4480_v42 = vmul.f32 0.25, %v4416_v44  ;;  %v4417_v16 = vadd.f32 %v4336_v5, %v4225_v2  ;;  %vm4448_vm12 = vcmp.ge.f32.partialorder %v4416_v44, 0.0 }
 0x5e8   :  { %v8963_v48 = vpop.permute.xlu1 %4370 }
 0x5e9   :  { %v4512_v18 = vsel %vm4448_vm12, %v4416_v44, %v4480_v42  ;;  %v4481_v28 = vmul.f32 0.25, %v4417_v16  ;;  %vm4449_vm13 = vcmp.ge.f32.partialorder %v4417_v16, 0.0  ;;  %v9353_v44 = vld [vmem:[#allocation76_spill] sm:$0xff] }
 0x5ea   :  { %v4736_v59 = vmul.f32 %v9351_v32, %v4512_v18  ;;  %v4517_v18 = vsel %vm4453_vm0, %v4421_v14, %v4485_v6  ;;  %v9362_v32 = vld [vmem:[#allocation73_spill] sm:$0xff]  ;;  %v9365_v14 = vld [vmem:[#allocation84_spill] sm:$0xff] }
 0x5eb   :  { %v4513_v58 = vsel %vm4449_vm13, %v4417_v16, %v4481_v28 }
 0x5ec   :  { %v4149_v55 = vpop.permute.xlu1 %4148  ;;  %v4785_v51 = vsel %vm811_vm4, %v4736_v59, 0.0  ;;  %v4737_v45 = vmul.f32 %v9353_v44, %v4513_v58 }
 0x5ed   :  { %v4226_v50 = vmul.f32 %v4149_v55, %v9348_v49  ;;  %v9354_v55 = vld [vmem:[#allocation83_spill] sm:$0xff]  ;;  %v4786_v11 = vadd.f32 %v4785_v51, %v4784_v53  ;;  %v9360_v49 = vld [vmem:[#allocation9_spill] sm:$0xff] }
 0x5ee   :  { %v4154_v29 = vpop.permute.xlu0 %4153  ;;  %v4230_v56 = vmul.f32 %v8934_v31, %v9354_v55  ;;  %v4787_v8 = vsel %vm811_vm4, %v4737_v45, 0.0  ;;  %v9358_v31 = vld [vmem:[#allocation8_spill] sm:$0xff] }
 0x5ef   :  { %v4227_v37 = vmul.f32 %v4154_v29, %v9350_v26  ;;  %v4232_v16 = vmul.f32 %v8946_v34, %v9358_v31  ;;  %v4788_v3 = vadd.f32 %v4787_v8, %v4786_v11  ;;  %v4487_v26 = vmul.f32 0.25, %v4423_v30 }
 0x5f0   :  { %v8972_v41 = vpop.permute.xlu1 %4188  ;;  %v4422_v19 = vadd.f32 %v8942_v43, %v4230_v56 }
 0x5f1   :  { %v4424_v28 = vadd.f32 %v8963_v48, %v4232_v16 }
 0x5f2   :  { %v8977_v35 = vpop.permute.xlu0 %4193  ;;  %v4486_v9 = vmul.f32 0.25, %v4422_v19  ;;  %vm4454_vm1 = vcmp.ge.f32.partialorder %v4422_v19, 0.0 }
 0x5f3   :  { %v4488_v60 = vmul.f32 0.25, %v4424_v28  ;;  %vm4456_vm5 = vcmp.ge.f32.partialorder %v4424_v28, 0.0  ;;  %v4235_v51 = vmul.f32 %v8977_v35, %v9365_v14 }
 0x5f4   :  { %v4341_v23 = vpop.permute.xlu1 %4340 }
 0x5f5   :  { %v4418_v25 = vadd.f32 %v4341_v23, %v4226_v50  ;;  %v4233_v50 = vmul.f32 %v8956_v39, %v9360_v49  ;;  %v4518_v23 = vsel %vm4454_vm1, %v4422_v19, %v4486_v9  ;;  %v4520_v45 = vsel %vm4456_vm5, %v4424_v28, %v4488_v60 }
 0x5f6   :  { %v4346_v13 = vpop.permute.xlu0 %4345 }
 0x5f7   :  { %vm4450_vm14 = vcmp.ge.f32.partialorder %v4418_v25, 0.0  ;;  %v4482_v46 = vmul.f32 0.25, %v4418_v25  ;;  %v4419_v22 = vadd.f32 %v4346_v13, %v4227_v37  ;;  %v9363_v13 = vld [vmem:[#allocation10_spill] sm:$0xff] }
 0x5f8   :  { %v4159_v36 = vpop.permute.xlu1 %4158  ;;  %v4234_v39 = vmul.f32 %v8972_v41, %v9363_v13 }
 0x5f9   :  { %v4514_v5 = vsel %vm4450_vm14, %v4418_v25, %v4482_v46  ;;  %v4483_v27 = vmul.f32 0.25, %v4419_v22  ;;  %vm4451_vm15 = vcmp.ge.f32.partialorder %v4419_v22, 0.0  ;;  %v4228_v42 = vmul.f32 %v4159_v36, %v9357_v61  ;;  %v9361_v25 = vld [vmem:[#allocation18_spill] sm:$0xff] }
 0x5fa   :  { %v4686_v1 = vpop.permute.xlu0 %4685  ;;  %v4738_v47 = vmul.f32 %v9355_v52, %v4514_v5  ;;  %v4741_v20 = vmul.f32 %v9361_v25, %v4517_v18  ;;  %v4519_v36 = vsel %vm4455_vm3, %v4423_v30, %v4487_v26  ;;  %v9367_v30 = vld [vmem:[#allocation11_spill] sm:$0xff] }
 0x5fb   :  { %v4515_v2 = vsel %vm4451_vm15, %v4419_v22, %v4483_v27  ;;  %v9364_v22 = vld [vmem:[#allocation19_spill] sm:$0xff]  ;;  %v4743_v44 = vmul.f32 %v4686_v1, %v4519_v36 }
 0x5fc   :  { %v8994_v17 = vpop.permute.xlu1 %4198  ;;  %v4789_v38 = vsel %vm811_vm4, %v4738_v47, 0.0  ;;  %v4739_v40 = vmul.f32 %v9359_v10, %v4515_v2  ;;  %v4742_v4 = vmul.f32 %v9364_v22, %v4518_v23  ;;  %v4795_v27 = vsel %vm811_vm4, %v4741_v20, 0.0 }
 0x5fd   :  { %v4790_v24 = vadd.f32 %v4789_v38, %v4788_v3  ;;  %v4799_v8 = vsel %vm811_vm4, %v4743_v44, 0.0  ;;  %v4236_v35 = vmul.f32 %v8994_v17, %v9366_v0 }
 0x5fe   :  { %v4691_v29 = vpop.permute.xlu0 %4690  ;;  %v4791_v62 = vsel %vm811_vm4, %v4739_v40, 0.0  ;;  %v4797_v52 = vsel %vm811_vm4, %v4742_v4, 0.0 }
 0x5ff   :  { %v4792_v58 = vadd.f32 %v4791_v62, %v4790_v24  ;;  %v4744_v47 = vmul.f32 %v4691_v29, %v4520_v45 }
 0x600   :  { %v4351_v43 = vpop.permute.xlu1 %4350 }
 0x601   :  { %v4420_v33 = vadd.f32 %v4351_v43, %v4228_v42  ;;  %v4801_v42 = vsel %vm811_vm4, %v4744_v47, 0.0 }
 0x602   :  { %v4696_v12 = vpop.permute.xlu0 %4695 }
 0x603   :  { %vm4452_vm2 = vcmp.ge.f32.partialorder %v4420_v33, 0.0  ;;  %v4484_v34 = vmul.f32 0.25, %v4420_v33 }
 0x604   :  { %v4376_v7 = vpop.permute.xlu1 %4375 }
 0x605   :  { %v4516_v37 = vsel %vm4452_vm2, %v4420_v33, %v4484_v34  ;;  %v4425_v21 = vadd.f32 %v4376_v7, %v4233_v50 }
 0x606   :  { %v4740_v48 = vmul.f32 %v9362_v32, %v4516_v37  ;;  %v4701_v59 = vpop.permute.xlu0 %4700 }
 0x607   :  { %v4489_v46 = vmul.f32 0.25, %v4425_v21  ;;  %vm4457_vm6 = vcmp.ge.f32.partialorder %v4425_v21, 0.0 }
 0x608   :  { %v4793_v15 = vsel %vm811_vm4, %v4740_v48, 0.0  ;;  %v4381_v63 = vpop.permute.xlu1 %4380  ;;  %v4825_v48 = vlaneseq }
 0x609   :  { %v4794_v57 = vadd.f32 %v4793_v15, %v4792_v58  ;;  %v4426_v5 = vadd.f32 %v4381_v63, %v4234_v39  ;;  %v4521_v55 = vsel %vm4457_vm6, %v4425_v21, %v4489_v46 }
 0x60a   :  { %v4204_v53 = vpop.permute.xlu0 %4203  ;;  %v4745_v54 = vmul.f32 %v4696_v12, %v4521_v55  ;;  %v4826_v39 = vshrl.u32 %v4825_v48, 7 }
 0x60b   :  { %v4796_v41 = vadd.f32 %v4795_v27, %v4794_v57  ;;  %vm4458_vm7 = vcmp.ge.f32.partialorder %v4426_v5, 0.0  ;;  %v4490_v56 = vmul.f32 0.25, %v4426_v5  ;;  %v4237_v3 = vmul.f32 %v4204_v53, %v9367_v30 }
 0x60c   :  { %v4386_v19 = vpop.permute.xlu1 %4385  ;;  %v4803_v43 = vsel %vm811_vm4, %v4745_v54, 0.0  ;;  %v4827_v46 = vsub.s32 0, %v4826_v39 }
 0x60d   :  { %v4798_v11 = vadd.f32 %v4797_v52, %v4796_v41  ;;  %v4522_v2 = vsel %vm4458_vm7, %v4426_v5, %v4490_v56  ;;  %v4427_v6 = vadd.f32 %v4386_v19, %v4235_v51 }
 0x60e   :  { %v4746_v31 = vmul.f32 %v4701_v59, %v4522_v2  ;;  %v4706_v29 = vpop.permute.xlu0 %4705 }
 0x60f   :  { %v4491_v1 = vmul.f32 0.25, %v4427_v6  ;;  %vm4459_vm8 = vcmp.ge.f32.partialorder %v4427_v6, 0.0  ;;  %v4800_v61 = vadd.f32 %v4799_v8, %v4798_v11 }
 0x610   :  { %v4391_v16 = vpop.permute.xlu1 %4390  ;;  %v4805_v18 = vsel %vm811_vm4, %v4746_v31, 0.0 }
 0x611   :  { %v4523_v38 = vsel %vm4459_vm8, %v4427_v6, %v4491_v1  ;;  %v4802_v10 = vadd.f32 %v4801_v42, %v4800_v61  ;;  %v4428_v40 = vadd.f32 %v4391_v16, %v4236_v35 }
 0x612   :  { %v4747_v9 = vmul.f32 %v4706_v29, %v4523_v38  ;;  %v4716_v23 = vpop.permute.xlu0 %4715 }
 0x613   :  { %v4804_v33 = vadd.f32 %v4803_v43, %v4802_v10  ;;  %v4492_v17 = vmul.f32 0.25, %v4428_v40  ;;  %vm4460_vm9 = vcmp.ge.f32.partialorder %v4428_v40, 0.0 }
 0x614   :  { %v4396_v28 = vpop.permute.xlu1 %4395  ;;  %v4807_v50 = vsel %vm811_vm4, %v4747_v9, 0.0 }
 0x615   :  { %v4806_v12 = vadd.f32 %v4805_v18, %v4804_v33  ;;  %v4429_v49 = vadd.f32 %v4396_v28, %v4237_v3  ;;  %v4524_v62 = vsel %vm4460_vm9, %v4428_v40, %v4492_v17 }
 0x617   :  { %v4808_v24 = vadd.f32 %v4807_v50, %v4806_v12  ;;  %vm4461_vm10 = vcmp.ge.f32.partialorder %v4429_v49, 0.0  ;;  %v4493_v34 = vmul.f32 0.25, %v4429_v49 }
 0x618   :  { %v4711_v7 = vpop.permute.xlu1 %4710 }
 0x619   :  { %v4525_v26 = vsel %vm4461_vm10, %v4429_v49, %v4493_v34  ;;  %v4748_v37 = vmul.f32 %v4711_v7, %v4524_v62 }
 0x61a   :  { %v4749_v21 = vmul.f32 %v4716_v23, %v4525_v26 }
 0x61b   :  { %v4809_v25 = vsel %vm811_vm4, %v4748_v37, 0.0 }
 0x61c   :  { %v4810_v20 = vadd.f32 %v4809_v25, %v4808_v24  ;;  %v4811_v60 = vsel %vm811_vm4, %v4749_v21, 0.0  ;;  %v4823_v4 = vpop.permute.xlu1 %4822  ;;  %vm4836_vm4 = vcmask 57344  }
 0x61d   :  { %v4828_v36 = vrot.slane %v4823_v4, %v4827_v46 }
 0x61e   :  { %v4812_v32 = vadd.f32 %v4811_v60, %v4810_v20 }
 0x620   :  { %v4813_v59 = vrot.slane %v4812_v32, 4 }
 0x622   :  { %v4814_v13 = vadd.f32 %v4813_v59, %v4812_v32 }
 0x624   :  { %v4815_v58 = vrot.slane %v4814_v13, 2 }
 0x626   :  { %v4816_v22 = vadd.f32 %v4815_v58, %v4814_v13 }
 0x628   :  { %v4817_v15 = vrot.slane %v4816_v22, 1 }
 0x62a   :  { %v4818_v63 = vadd.f32 %v4817_v15, %v4816_v22 }
 0x62c   :  { %v4829_v57 = vadd.f32 %v4828_v36, %v4818_v63 }
 0x62e   :  { %v4917_v5 = vmul.f32 -1.442695, %v4829_v57 }
 0x630   :  { %5457 = vpow2.f32 %v4917_v5 }
 0x63a   :  { %v5458_v27 = vpop.eup %5457 }
 0x63b   :  { %v4833_v14 = vadd.f32 1.0, %v5458_v27 }
 0x63d   :  { %5459 = vrcp.f32 %v4833_v14 }
 0x647   :  { %v5460_v51 = vpop.eup %5459 }
 0x648   :  { %4837 = vst.msk [vmem:[#allocation3] sm:$0x1] %vm4836_vm4, %v5460_v51 }
 0x649   :  { %5472 = shalt.err (!%p5469_p4)
}
 0x64a   :  { %s5473_s20 = scalar_lea.hbm %s9051_s9, 16 }
 0x64b   :  { %p5474_p5 = scmp.ne.s32.totalorder %s9051_s9, %s5473_s20  ;;  %p5477_p6 = scmp.lt.u32.totalorder %s5473_s20, %s9051_s9 }
 0x64d   :  { %p5479_p7 = pnand %p5477_p6, %p5474_p5 }
 0x64f   :  { %5482 = shalt.err (!%p5479_p7)
}
 0x650   :  { %4847 = dma.vmem_to_hbm [thread:$0]  %s4845_s8, 16, %s9051_s9, [#allocation4]  }
 0x651   :  { %5483 = dma.done.wait [#allocation4], 16  }
 0x652   :  { %5484 = vsyncadd [#allocation4], 4294967280 }
 0x653   :  { %4851 = vsyncpa [#allocation4], 1 }

</bundles_post_ra>
